<compile_context>
chip_gen: v6e
topology: v6e:2x2x1
jax: 0.10.0
libtpu: 0.0.40
codegen_flags: <defaults>
</compile_context>

<pallas_src>
import functools
import math

import jax
import jax.numpy as jnp
from jax import lax
from jax.experimental import pallas as pl
from jax.experimental.pallas import tpu as pltpu


def _mha_kernel(xq_ref, xk_ref, xv_ref, wq_ref, wk_ref, wv_ref, wo_ref,
                out_ref, *, num_heads, d_k):
    bb, seq_len, d_model = xq_ref.shape
    n = bb * seq_len            # flattened (batch, position) rows
    bh = bb * num_heads

    # Flat (rows, channels) views: the 1x1 conv is position-wise, so a single
    # 2-D matmul covers every batch element / position in this block.
    xq = xq_ref[...].reshape(n, d_model)     # bf16
    xk = xk_ref[...].reshape(n, d_model)
    xv = xv_ref[...].reshape(n, d_model)

    wq = wq_ref[...]                          # bf16, 1/sqrt(d_k) pre-folded
    wk = wk_ref[...]
    wv = wv_ref[...]
    wo = wo_ref[...]

    # 1x1 Conv1d (no bias): y[p, o] = sum_i x[p, i] * W[o, i].
    # bf16 operands, f32 accumulation; contract channel axes -> no transpose.
    cn = (((1,), (1,)), ((), ()))
    q = lax.dot_general(xq, wq, cn, preferred_element_type=jnp.float32)
    k = lax.dot_general(xk, wk, cn, preferred_element_type=jnp.float32)
    v = lax.dot_general(xv, wv, cn, preferred_element_type=jnp.float32)

    # Heads chunk the length axis: each batch element's rows split into
    # num_heads contiguous groups of d_k rows -> leading-axis reshape only.
    # Cast back to bf16 for the MXU; accumulation stays f32.
    qh = q.reshape(bh, d_k, d_model).astype(jnp.bfloat16)
    kh = k.reshape(bh, d_k, d_model).astype(jnp.bfloat16)
    vh = v.reshape(bh, d_k, d_model).astype(jnp.bfloat16)

    # scores[b, i, j] = sum_m qh[b, m, i] * kh[b, m, j]   (i, j are channels)
    # NOTE: K = d_k (16 here) under-fills the MXU; kept as ONE batched
    # dot_general (no per-head loop) in bf16 -- see perf review item on
    # per-head under-fill.
    scores = lax.dot_general(
        qh, kh, (((1,), (1,)), ((0,), (0,))),
        preferred_element_type=jnp.float32)                   # (bh, D, D) f32

    # Softmax in f32, but WITHOUT normalizing p here -- normalization is
    # deferred past the PV matmul onto the (bh, d_k, D) result.
    scores = scores - jnp.max(scores, axis=-1, keepdims=True)
    p = jnp.exp(scores)
    denom = jnp.sum(p, axis=-1)                                # (bh, D) f32
    pb = p.astype(jnp.bfloat16)                                # MXU operand

    # attn[b, m, i] = sum_j vh[b, m, j] * p[b, i, j]
    attn = lax.dot_general(
        vh, pb, (((2,), (2,)), ((0,), (0,))),
        preferred_element_type=jnp.float32)                   # (bh, d_k, D)

    # Deferred softmax normalization: divide on the small tensor, using the
    # otherwise idle EUP reciprocal slot.
    inv = pl.reciprocal(denom, approx=True).reshape(bh, 1, d_model)
    attn = attn * inv

    # Residual in f32, then bf16 operand for the output projection.
    resid = (xq.astype(jnp.float32) - attn.reshape(n, d_model))
    out = lax.dot_general(resid.astype(jnp.bfloat16), wo, cn,
                          preferred_element_type=jnp.float32)
    out_ref[...] = out.reshape(bb, seq_len, d_model).astype(out_ref.dtype)


def _vmem_limit_bytes():
    """Per-generation scoped VMEM budget (don't leak the v7x cap to v5e/v6e)."""
    phys = None
    get_info = getattr(pltpu, "get_tpu_info", None)
    if get_info is not None:
        try:
            phys = getattr(get_info(), "vmem_capacity_bytes", None)
        except Exception:
            phys = None
    if phys is None:
        phys = 64 * 1024 * 1024          # conservative: assume v7x
    if phys >= 128 * 1024 * 1024:        # v5e / v6e: 128 MiB physical
        return 96 * 1024 * 1024
    return 32 * 1024 * 1024              # v7x: stay inside the scoped default


def _block_vmem_bytes(bb, seq_len, d_model, num_heads):
    """Rough per-grid-step VMEM footprint for the kernel above."""
    slab = bb * seq_len * d_model
    b = 0
    b += 3 * 2 * slab * 2                        # bf16 inputs, double-buffered
    b += 2 * slab * 4                            # f32 output, double-buffered
    b += 4 * slab * 4                            # q/k/v/attn f32 intermediates
    b += bb * num_heads * d_model * d_model * (4 + 2)   # scores f32 + p bf16
    b += 2 * 4 * d_model * d_model * 2           # 4 bf16 weights (x2 worst case)
    return b


def _pick_batch_tile(batch, seq_len, d_model, num_heads, vmem_budget):
    # Prefer bb*seq_len >= 256 so the projection matmuls fill the 256-wide MXU
    # on v6e/v7x, but keep >= 2 grid steps whenever the batch allows so both
    # v7x TensorCores get work and the input DMAs overlap with compute.
    want = max(1, -(-256 // seq_len))            # ceil(256 / L)
    if batch >= 2 * want:
        bb = want
    elif batch >= 2:
        bb = max(1, batch // 2)
    else:
        bb = 1
    # Grow to amortize the ~0.35us/step grid overhead while both TCs still get
    # >= 2 steps each and the block fits the VMEM budget.
    while (batch >= 4 * (bb * 2)
           and _block_vmem_bytes(bb * 2, seq_len, d_model, num_heads)
           <= vmem_budget):
        bb *= 2
    # Shrink to fit VMEM (large d_model / num_heads cases).
    while bb > 1 and _block_vmem_bytes(bb, seq_len, d_model,
                                       num_heads) > vmem_budget:
        bb -= 1
    return min(bb, batch)


def multi_headed_attention(x_query, x_key, x_value, wq, wk, wv, wo, *, num_heads):
    """x_*: (B, d_model, L) float32; w_*: (d_model, d_model) float32."""
    B, D, L = x_query.shape
    assert L % num_heads == 0, "length must chunk evenly into heads"
    d_k = L // num_heads

    vmem_limit = _vmem_limit_bytes()
    bb = _pick_batch_tile(B, L, D, num_heads, int(vmem_limit * 0.8))
    n_blocks = pl.cdiv(B, bb)
    Bp = n_blocks * bb

    def prep(x):
        # (B, D, L) -> (B, L, D): channel axis on lanes (lane-dense I/O).
        # The bf16 cast fuses into the same XLA transpose pass and halves the
        # bytes written / the kernel's input read traffic.
        xt = jnp.transpose(x, (0, 2, 1)).astype(jnp.bfloat16)
        if Bp != B:
            xt = jnp.pad(xt, ((0, Bp - B), (0, 0), (0, 0)))
        return xt

    xq_t, xk_t, xv_t = prep(x_query), prep(x_key), prep(x_value)

    # Fold the 1/sqrt(d_k) score scale into wq once (tiny one-time DxD op,
    # not per-step activation scaling), and cast weights to bf16 for the MXU.
    scale = 1.0 / math.sqrt(d_k)                 # reference: d_k = L // heads
    wq_b = (wq.astype(jnp.float32) * scale).astype(jnp.bfloat16)
    wk_b = wk.astype(jnp.bfloat16)
    wv_b = wv.astype(jnp.bfloat16)
    wo_b = wo.astype(jnp.bfloat16)

    kernel = functools.partial(_mha_kernel, num_heads=num_heads, d_k=d_k)

    x_spec = pl.BlockSpec((bb, L, D), lambda b: (b, 0, 0))
    # Constant index_map -> the weights stay resident across grid steps
    # (no re-fetch after step 0); at bf16 they are only 2*D*D bytes each.
    w_spec = pl.BlockSpec((D, D), lambda b: (0, 0))

    flops = 12 * Bp * L * D * D                  # 4 projections + QK^T + PV
    transcendentals = Bp * num_heads * D * D     # softmax exp
    bytes_accessed = 3 * Bp * L * D * 2 + Bp * L * D * 4 + 4 * D * D * 2

    out_t = pl.pallas_call(
        kernel,
        # f32 output for fidelity; emit bf16 here if downstream tolerates it
        # (halves the output DMA / transpose-back traffic).
        out_shape=jax.ShapeDtypeStruct((Bp, L, D), jnp.float32),
        grid_spec=pltpu.PrefetchScalarGridSpec(
            num_scalar_prefetch=0,
            grid=(n_blocks,),
            in_specs=[x_spec, x_spec, x_spec, w_spec, w_spec, w_spec, w_spec],
            out_specs=pl.BlockSpec((bb, L, D), lambda b: (b, 0, 0)),
        ),
        compiler_params=pltpu.CompilerParams(
            dimension_semantics=("parallel",),
            vmem_limit_bytes=int(vmem_limit),
        ),
        cost_estimate=pl.CostEstimate(
            flops=int(flops),
            transcendentals=int(transcendentals),
            bytes_accessed=int(bytes_accessed)),
    )(xq_t, xk_t, xv_t, wq_b, wk_b, wv_b, wo_b)

    # Back to the PyTorch NCL layout; drop batch padding.
    return jnp.transpose(out_t[:B], (0, 2, 1))


def _reference(x_query, x_key, x_value, wq, wk, wv, wo, *, num_heads):
    """Pure-JAX f32 re-implementation of the PyTorch forward (dropout off)."""
    B, D, L = x_query.shape
    d_k = L // num_heads
    hp = jax.lax.Precision.HIGHEST

    def proj(w, x):  # 1x1 conv, no bias
        return jnp.einsum("oi,bil->bol", w, x, precision=hp)

    q = proj(wq, x_query)
    k = proj(wk, x_key)
    v = proj(wv, x_value)

    # chunk along L into heads, concat along batch: (B*H, D, d_k)
    def split_heads(t):
        return jnp.concatenate(jnp.split(t, num_heads, axis=-1), axis=0)

    qh, kh, vh = split_heads(q), split_heads(k), split_heads(v)
    scores = jnp.einsum("bdk,bek->bde", qh, kh, precision=hp)
    scores = scores / jnp.sqrt(jnp.float32(d_k))
    p = jax.nn.softmax(scores, axis=-1)
    x = jnp.einsum("bde,bek->bdk", p, vh, precision=hp)        # (B*H, D, d_k)
    attn_heads = jnp.concatenate(jnp.split(x, num_heads, axis=0), axis=-1)
    return proj(wo, x_query - attn_heads)


if __name__ == "__main__":
    B, D, L, H = 4, 128, 64, 4   # batch, d_model, seq length, num_heads

    key = jax.random.PRNGKey(0)
    k_xq, k_xk, k_xv, k_wq, k_wk, k_wv, k_wo = jax.random.split(key, 7)

    x_query = jax.random.normal(k_xq, (B, D, L), dtype=jnp.float32)
    x_key = jax.random.normal(k_xk, (B, D, L), dtype=jnp.float32)
    x_value = jax.random.normal(k_xv, (B, D, L), dtype=jnp.float32)

    # Conv1d(d_model, d_model, 1, bias=False) weights, squeezed kernel dim.
    winit = 1.0 / math.sqrt(D)
    wq = jax.random.uniform(k_wq, (D, D), jnp.float32, -winit, winit)
    wk = jax.random.uniform(k_wk, (D, D), jnp.float32, -winit, winit)
    wv = jax.random.uniform(k_wv, (D, D), jnp.float32, -winit, winit)
    wo = jax.random.uniform(k_wo, (D, D), jnp.float32, -winit, winit)

    out = multi_headed_attention(x_query, x_key, x_value, wq, wk, wv, wo,
                                 num_heads=H)
    out = jax.block_until_ready(out)

    ref = _reference(x_query, x_key, x_value, wq, wk, wv, wo, num_heads=H)
    assert out.shape == (B, D, L)
    # Tolerance sized for bf16 MXU operands with f32 accumulation (plus the
    # EUP approximate reciprocal in the deferred softmax normalization).
    assert jnp.allclose(out, ref, atol=3e-2, rtol=3e-2)

    print("KERNEL_OK")
</pallas_src>

<mosaic_0001>
module attributes {stable_mosaic.version = 11 : i64} {
  func.func @_mha_kernel(%arg0: i32, %arg1: memref<2x64x128xbf16, #tpu.memory_space<vmem>>, %arg2: memref<2x64x128xbf16, #tpu.memory_space<vmem>>, %arg3: memref<2x64x128xbf16, #tpu.memory_space<vmem>>, %arg4: memref<128x128xbf16, #tpu.memory_space<vmem>>, %arg5: memref<128x128xbf16, #tpu.memory_space<vmem>>, %arg6: memref<128x128xbf16, #tpu.memory_space<vmem>>, %arg7: memref<128x128xbf16, #tpu.memory_space<vmem>>, %arg8: memref<2x64x128xf32, #tpu.memory_space<vmem>>) attributes {dimension_semantics = [#tpu.dimension_semantics<parallel>], iteration_bounds = array<i64: 2>, scalar_prefetch = 0 : i64, scratch_operands = 0 : i64, tpu.core_type = #tpu.core_type<tc>, window_params = [{transform_indices = @transform_0, window_bounds = array<i64: 2, 64, 128>}, {transform_indices = @transform_1, window_bounds = array<i64: 2, 64, 128>}, {transform_indices = @transform_2, window_bounds = array<i64: 2, 64, 128>}, {pipeline_mode = #tpu.pipeline_mode<synchronous>, transform_indices = @transform_3, window_bounds = array<i64: 128, 128>}, {pipeline_mode = #tpu.pipeline_mode<synchronous>, transform_indices = @transform_4, window_bounds = array<i64: 128, 128>}, {pipeline_mode = #tpu.pipeline_mode<synchronous>, transform_indices = @transform_5, window_bounds = array<i64: 128, 128>}, {pipeline_mode = #tpu.pipeline_mode<synchronous>, transform_indices = @transform_6, window_bounds = array<i64: 128, 128>}, {transform_indices = @transform_7, window_bounds = array<i64: 2, 64, 128>}]} {
    %c0 = arith.constant 0 : index
    %c0_0 = arith.constant 0 : index
    %c0_1 = arith.constant 0 : index
    %0 = vector.load %arg1[%c0, %c0_0, %c0_1] : memref<2x64x128xbf16, #tpu.memory_space<vmem>>, vector<2x64x128xbf16>
    %1 = vector.shape_cast %0 : vector<2x64x128xbf16> to vector<128x128xbf16>
    %c0_2 = arith.constant 0 : index
    %c0_3 = arith.constant 0 : index
    %c0_4 = arith.constant 0 : index
    %2 = vector.load %arg2[%c0_2, %c0_3, %c0_4] : memref<2x64x128xbf16, #tpu.memory_space<vmem>>, vector<2x64x128xbf16>
    %3 = vector.shape_cast %2 : vector<2x64x128xbf16> to vector<128x128xbf16>
    %c0_5 = arith.constant 0 : index
    %c0_6 = arith.constant 0 : index
    %c0_7 = arith.constant 0 : index
    %4 = vector.load %arg3[%c0_5, %c0_6, %c0_7] : memref<2x64x128xbf16, #tpu.memory_space<vmem>>, vector<2x64x128xbf16>
    %5 = vector.shape_cast %4 : vector<2x64x128xbf16> to vector<128x128xbf16>
    %c0_8 = arith.constant 0 : index
    %c0_9 = arith.constant 0 : index
    %6 = vector.load %arg4[%c0_8, %c0_9] : memref<128x128xbf16, #tpu.memory_space<vmem>>, vector<128x128xbf16>
    %c0_10 = arith.constant 0 : index
    %c0_11 = arith.constant 0 : index
    %7 = vector.load %arg5[%c0_10, %c0_11] : memref<128x128xbf16, #tpu.memory_space<vmem>>, vector<128x128xbf16>
    %c0_12 = arith.constant 0 : index
    %c0_13 = arith.constant 0 : index
    %8 = vector.load %arg6[%c0_12, %c0_13] : memref<128x128xbf16, #tpu.memory_space<vmem>>, vector<128x128xbf16>
    %c0_14 = arith.constant 0 : index
    %c0_15 = arith.constant 0 : index
    %9 = vector.load %arg7[%c0_14, %c0_15] : memref<128x128xbf16, #tpu.memory_space<vmem>>, vector<128x128xbf16>
    %cst = arith.constant dense<0.000000e+00> : vector<128x128xf32>
    %10 = tpu.matmul %1, %6, %cst {dimension_numbers = #tpu.dot_dimension_numbers<[1], [1], [0], [0], [0, 0, 1, 0], [], []>} : vector<128x128xbf16>, vector<128x128xbf16>, vector<128x128xf32> -> vector<128x128xf32>
    %cst_16 = arith.constant dense<0.000000e+00> : vector<128x128xf32>
    %11 = tpu.matmul %3, %7, %cst_16 {dimension_numbers = #tpu.dot_dimension_numbers<[1], [1], [0], [0], [0, 0, 1, 0], [], []>} : vector<128x128xbf16>, vector<128x128xbf16>, vector<128x128xf32> -> vector<128x128xf32>
    %cst_17 = arith.constant dense<0.000000e+00> : vector<128x128xf32>
    %12 = tpu.matmul %5, %8, %cst_17 {dimension_numbers = #tpu.dot_dimension_numbers<[1], [1], [0], [0], [0, 0, 1, 0], [], []>} : vector<128x128xbf16>, vector<128x128xbf16>, vector<128x128xf32> -> vector<128x128xf32>
    %13 = vector.shape_cast %10 : vector<128x128xf32> to vector<8x16x128xf32>
    %14 = arith.truncf %13 : vector<8x16x128xf32> to vector<8x16x128xbf16>
    %15 = vector.shape_cast %11 : vector<128x128xf32> to vector<8x16x128xf32>
    %16 = arith.truncf %15 : vector<8x16x128xf32> to vector<8x16x128xbf16>
    %17 = vector.shape_cast %12 : vector<128x128xf32> to vector<8x16x128xf32>
    %18 = arith.truncf %17 : vector<8x16x128xf32> to vector<8x16x128xbf16>
    %cst_18 = arith.constant dense<0.000000e+00> : vector<8x128x128xf32>
    %19 = tpu.matmul %14, %16, %cst_18 {dimension_numbers = #tpu.dot_dimension_numbers<[1], [1], [2], [2], [0, 0, 0, 2, 1, 2], [0], [0]>} : vector<8x16x128xbf16>, vector<8x16x128xbf16>, vector<8x128x128xf32> -> vector<8x128x128xf32>
    %cst_19 = arith.constant dense<0xFF800000> : vector<8x128xf32>
    %20 = vector.multi_reduction <maximumf>, %19, %cst_19 [2] : vector<8x128x128xf32> to vector<8x128xf32>
    %21 = vector.shape_cast %20 : vector<8x128xf32> to vector<8x128x1xf32>
    %22 = vector.broadcast %21 : vector<8x128x1xf32> to vector<8x128x128xf32>
    %23 = arith.subf %19, %22 : vector<8x128x128xf32>
    %24 = math.exp %23 : vector<8x128x128xf32>
    %cst_20 = arith.constant dense<0.000000e+00> : vector<8x128xf32>
    %25 = vector.multi_reduction <add>, %24, %cst_20 [2] : vector<8x128x128xf32> to vector<8x128xf32>
    %26 = arith.truncf %24 : vector<8x128x128xf32> to vector<8x128x128xbf16>
    %cst_21 = arith.constant dense<0.000000e+00> : vector<8x16x128xf32>
    %27 = tpu.matmul %18, %26, %cst_21 {dimension_numbers = #tpu.dot_dimension_numbers<[2], [2], [1], [1], [0, 0, 0, 1, 1, 1], [0], [0]>} : vector<8x16x128xbf16>, vector<8x128x128xbf16>, vector<8x16x128xf32> -> vector<8x16x128xf32>
    %28 = tpu.reciprocal %25 {approx = true} : vector<8x128xf32> -> vector<8x128xf32>
    %29 = vector.shape_cast %28 : vector<8x128xf32> to vector<8x1x128xf32>
    %30 = vector.broadcast %29 : vector<8x1x128xf32> to vector<8x16x128xf32>
    %31 = arith.mulf %27, %30 : vector<8x16x128xf32>
    %32 = arith.extf %1 : vector<128x128xbf16> to vector<128x128xf32>
    %33 = vector.shape_cast %31 : vector<8x16x128xf32> to vector<128x128xf32>
    %34 = arith.subf %32, %33 : vector<128x128xf32>
    %35 = arith.truncf %34 : vector<128x128xf32> to vector<128x128xbf16>
    %cst_22 = arith.constant dense<0.000000e+00> : vector<128x128xf32>
    %36 = tpu.matmul %35, %9, %cst_22 {dimension_numbers = #tpu.dot_dimension_numbers<[1], [1], [0], [0], [0, 0, 1, 0], [], []>} : vector<128x128xbf16>, vector<128x128xbf16>, vector<128x128xf32> -> vector<128x128xf32>
    %37 = vector.shape_cast %36 : vector<128x128xf32> to vector<2x64x128xf32>
    %c0_23 = arith.constant 0 : index
    %c0_24 = arith.constant 0 : index
    %c0_25 = arith.constant 0 : index
    %38 = vector.load %arg8[%c0_23, %c0_24, %c0_25] : memref<2x64x128xf32, #tpu.memory_space<vmem>>, vector<2x64x128xf32>
    tpu.vector_store %arg8[%c0_23, %c0_24, %c0_25], %37 {strides = array<i32>} : memref<2x64x128xf32, #tpu.memory_space<vmem>>, vector<2x64x128xf32>,
    return
  }
  func.func @transform_0(%arg0: i32) -> (i32, i32, i32) {
    %c0_i32 = arith.constant 0 : i32
    %c0_i32_0 = arith.constant 0 : i32
    %c0_i32_1 = arith.constant 0 : i32
    return %arg0, %c0_i32, %c0_i32_0 : i32, i32, i32
  }
  func.func @transform_1(%arg0: i32) -> (i32, i32, i32) {
    %c0_i32 = arith.constant 0 : i32
    %c0_i32_0 = arith.constant 0 : i32
    %c0_i32_1 = arith.constant 0 : i32
    return %arg0, %c0_i32, %c0_i32_0 : i32, i32, i32
  }
  func.func @transform_2(%arg0: i32) -> (i32, i32, i32) {
    %c0_i32 = arith.constant 0 : i32
    %c0_i32_0 = arith.constant 0 : i32
    %c0_i32_1 = arith.constant 0 : i32
    return %arg0, %c0_i32, %c0_i32_0 : i32, i32, i32
  }
  func.func @transform_3(%arg0: i32) -> (i32, i32) {
    %c0_i32 = arith.constant 0 : i32
    %c0_i32_0 = arith.constant 0 : i32
    %c0_i32_1 = arith.constant 0 : i32
    return %c0_i32, %c0_i32_0 : i32, i32
  }
  func.func @transform_4(%arg0: i32) -> (i32, i32) {
    %c0_i32 = arith.constant 0 : i32
    %c0_i32_0 = arith.constant 0 : i32
    %c0_i32_1 = arith.constant 0 : i32
    return %c0_i32, %c0_i32_0 : i32, i32
  }
  func.func @transform_5(%arg0: i32) -> (i32, i32) {
    %c0_i32 = arith.constant 0 : i32
    %c0_i32_0 = arith.constant 0 : i32
    %c0_i32_1 = arith.constant 0 : i32
    return %c0_i32, %c0_i32_0 : i32, i32
  }
  func.func @transform_6(%arg0: i32) -> (i32, i32) {
    %c0_i32 = arith.constant 0 : i32
    %c0_i32_0 = arith.constant 0 : i32
    %c0_i32_1 = arith.constant 0 : i32
    return %c0_i32, %c0_i32_0 : i32, i32
  }
  func.func @transform_7(%arg0: i32) -> (i32, i32, i32) {
    %c0_i32 = arith.constant 0 : i32
    %c0_i32_0 = arith.constant 0 : i32
    %c0_i32_1 = arith.constant 0 : i32
    return %arg0, %c0_i32, %c0_i32_0 : i32, i32, i32
  }
}

</mosaic_0001>

<bundles_post_ra>
// kernel: tpu_custom_call.1
= control target key start
LH: loop header
LB: loop body
LE: loop exit
PB: predicated region body
PF: predicated region fallthrough
CT: control target
= control target key end

     0   :  { %s8992_s0 = inlined_call_operand.hbm [shape: bf16[4,64,128], index: 0, kind: input, shape index: {}]   ;;  %s8993_s1 = inlined_call_operand.hbm [shape: bf16[4,64,128], index: 1, kind: input, shape index: {}]   ;;  %s8994_s2 = inlined_call_operand.hbm [shape: bf16[4,64,128], index: 2, kind: input, shape index: {}]   ;;  %s8995_s3 = inlined_call_operand.hbm [shape: bf16[128,128], index: 3, kind: input, shape index: {}]   ;;  %s8996_s4 = inlined_call_operand.hbm [shape: bf16[128,128], index: 4, kind: input, shape index: {}]   ;;  %s8997_s5 = inlined_call_operand.hbm [shape: bf16[128,128], index: 5, kind: input, shape index: {}]   ;;  %s8998_s6 = inlined_call_operand.hbm [shape: bf16[128,128], index: 6, kind: input, shape index: {}]   ;;  %s8999_s7 = inlined_call_operand.hbm [shape: f32[4,64,128], index: 7, kind: output, shape index: {}]  }
   0x1   :  { %9170 = sst [smem:[#allocation131_spill]] %s8993_s1 }
   0x2   :  { %9171 = sst [smem:[#allocation132_spill]] %s8995_s3 }
   0x3   :  { %9172 = sst [smem:[#allocation133_spill]] %s8997_s5 }
   0x4   :  { %12 = vsyncpa [#allocation3], 0 }
   0x5   :  { %14 = vsyncpa [#allocation3 + $0x1], 0 }
   0x6   :  { %15 = vsyncpa [#allocation6], 0 }
   0x7   :  { %17 = vsyncpa [#allocation6 + $0x1], 0 }
   0x8   :  { %18 = vsyncpa [#allocation9], 0 }
   0x9   :  { %19 = vsyncpa [#allocation12], 0 }
   0xa   :  { %20 = vsyncpa [#allocation4], 0 }
   0xb   :  { %22 = vsyncpa [#allocation4 + $0x1], 0  ;;  %s6720_s24 = smov 0   ;;  %s6722_s25 = smov 0  }
   0xc   :  { %s6724_s26 = smov 0   ;;  %s6726_s27 = smov 0  }
   0xd LB: > { %9173 = sst [smem:[#allocation20_spill]] %s6664_s27  ;;  %s6741_s28 = sadd.s32 4294967295, %s6664_s27   ;;  %s6664_s27 = sphi %s6726_s27, %s9522_s27   ;;  %s6660_s26 = sphi %s6724_s26, %s9526_s26   ;;  %s6656_s25 = sphi %s6722_s25, %s9525_s25   ;;  %s6652_s24 = sphi %s6720_s24, %s9524_s24  }
   0xe   : > { %s4908_s29 = sadd.s32 4294967294, %s6664_s27   ;;  %p48_p0 = scmp.ne.s32.totalorder %s6656_s25, %s6652_s24 }
   0xf   : > { %p9007_p1 = scmp.eq.s32.totalorder %s6741_s28, 0  ;;  %p208_p2 = scmp.eq.s32.totalorder %s6741_s28, 1 }
  0x10   : > { %p214_p3 = scmp.eq.s32.totalorder %s4908_s29, 1  ;;  %p4909_p5 = scmp.ge.s32.totalorder %s6664_s27, 1 }
  0x11   : > { %p6750_p4 = por %p9007_p1, %p48_p0  ;;  %p221_p7 = scmp.lt.s32.totalorder %s6664_s27, 3 }
  0x12   : > { %p6755_p6 = por %p214_p3, %p48_p0  ;;  %s6666_s10 = smov [#allocation8]  }
  0x13   : > { %s9174_s30 = scalar_select %p6750_p4, 1, 0 }
  0x14   : > { %s9175_s8 = scalar_select %p6755_p6, 1, 0 }
  0x15   : > { %p6760_p8 = pnand %p4909_p5, %p221_p7  ;;  %s233_s11 = sshll.u32 %s6666_s10, 4  ;;  %s234_s11 = int_to_ptr.vmem [resolvable:$true] %s233_s11 }
  0x16   : > { %s6667_s13 = smov [#allocation11]   ;;  %s6411_s15 = scalar_lea.vmem %s234_s11, 1024 }
  0x17   : > { %s9176_s9 = scalar_select %p6760_p8, 1, 0 }
  0x18   : > { %p5736_p9 = pneg %p6760_p8  ;;  %s259_s14 = sshll.u32 %s6667_s13, 4  ;;  %s260_s14 = int_to_ptr.vmem [resolvable:$true] %s259_s14 }
  0x19   : > { %p6412_p13 = scmp.ne.s32.totalorder %s234_s11, %s6411_s15  ;;  %p6419_p5 = scmp.lt.s32.totalorder %s234_s11, %s234_s11 }
  0x1a   : > { %p6769_p11 = pnand %p5736_p9, %p9007_p1  ;;  %p6420_p7 = scmp.lt.s32.totalorder %s6411_s15, %s6411_s15 }
  0x1c   : > { %s9177_s12 = scalar_select %p6769_p11, 1, 0 }
  0x1d   : > { %p9008_p12 = pneg %p6769_p11  ;;  %p6421_p10 = por %p6420_p7, %p6419_p5 }
  0x1f   : > { %p6414_p0 = pnand %p6412_p13, %p9008_p12 }
  0x21   : > { %p6415_p3 = pneg %p6414_p0 }
  0x23   : > { %p6422_p9 = pnand %p6421_p10, %p6415_p3 }
  0x25   : > { %6425 = shalt.err (!%p6422_p9)
}
  0x26   : > { %s9001_s16 = smov 64   ;;  %s9003_s17 = smov 4  }
  0x27   : > { %s9178_s3 = sld [smem:[#allocation132_spill]]  ;;  %s6437_s20 = scalar_lea.vmem %s260_s14, 1024 }
  0x28   : > { %p6438_p13 = scmp.ne.s32.totalorder %s260_s14, %s6437_s20  ;;  %p6445_p10 = scmp.lt.s32.totalorder %s260_s14, %s260_s14 }
  0x29   : > { %p6446_p3 = scmp.lt.s32.totalorder %s6437_s20, %s6437_s20 }
  0x2a   : > { %p6440_p0 = pnand %p6438_p13, %p9008_p12 }
  0x2b   : > { %p6447_p7 = por %p6446_p3, %p6445_p10 }
  0x2c   : > { %p6441_p5 = pneg %p6440_p0 }
  0x2d   : > { %5739 = dma.hbm_to_vmem [thread:$0]  (!%p6769_p11), %s9178_s3, 1024, %s234_s11, [#allocation9], %s9001_s16, %s9001_s16, %s9003_s17  }
  0x2e   : > { %p6448_p9 = pnand %p6447_p7, %p6441_p5 }
  0x30   : > { %6451 = shalt.err (!%p6448_p9)
}
  0x31   : > { %s9179_s5 = sld [smem:[#allocation133_spill]]  ;;  %s6798_s23 = sadd.s32 1, %s6664_s27  }
  0x32   : > { %9180 = sst [smem:[#allocation21_spill]] %s6798_s23  ;;  %s35_s29 = sadd.s32 1, %s6660_s26 }
  0x33   : > { %s32_s10 = ssub.s32 %s6664_s27, %s6798_s23  ;;  %p42_p13 = scmp.ne.s32.totalorder %s6660_s26, %s6656_s25 }
  0x34   : > { %p33_p0 = scmp.eq.s32.totalorder %s32_s10, 0  ;;  %p43_p5 = scmp.eq.s32.totalorder %s6664_s27, 0 }
  0x35   : > { %p6808_p10 = por %p208_p2, %p42_p13  ;;  %p5767_p3 = scmp.lt.s32.totalorder %s6664_s27, 2 }
  0x36   : > { %s6814_s13 = scalar_select %p33_p0, %s6660_s26, %s35_s29  }
  0x37   : > { %5745 = dma.hbm_to_vmem [thread:$0]  (!%p6769_p11), %s9179_s5, 1024, %s260_s14, [#allocation12], %s9001_s16, %s9001_s16, %s9003_s17  }
  0x38   : > { %s9181_s11 = scalar_select %p6808_p10, 1, 0 }
  0x39   : > { %9182 = sst [smem:[#allocation22_spill]] %s6814_s13  ;;  %p44_p7 = por %p43_p5, %p42_p13 }
  0x3a   : > { %s9000_s15 = sand.u32 1, %s6660_s26   ;;  %s6822_s18 = sshll.u32 %s6664_s27, 10 }
  0x3b   : > { %s6819_s14 = sshll.u32 %s9000_s15, 6  ;;  %p6824_p9 = pnand %p5767_p3, %p44_p7 }
  0x3c   : > { %s308_s20 = sand.u32 1, %s6664_s27   ;;  %s9184_s1 = sld [smem:[#allocation131_spill]] }
  0x3d   : > { %s312_s10 = scalar_lea.vmem [#allocation5], %s6819_s14  ;;  %s6670_s16 = smov [#allocation10]  }
  0x3e   : > { %s320_s15 = sshll.u32 %s312_s10, 4  ;;  %s6838_s17 = sshll.u32 %s6670_s16, 4  ;;  %s6836_s15 = int_to_ptr.vmem [resolvable:$true] %s320_s15  ;;  %s247_s17 = int_to_ptr.vmem [resolvable:$true] %s6838_s17 }
  0x3f   : > { %s6840_s3 = scalar_lea.sflag [#allocation6], %s308_s20  ;;  %p6846_p13 = pneg %p6824_p9 }
  0x42   : > { %s6833_s29 = scalar_lea.hbm %s9184_s1, %s6822_s18  ;;  %s6457_s10 = scalar_lea.hbm %s9184_s1, 2048 }
  0x43   : > { %s6452_s5 = scalar_lea.hbm %s6833_s29, 1024  ;;  %p6458_p3 = scmp.lt.s32.totalorder %s6833_s29, %s9184_s1 }
  0x44   : > { %p6453_p2 = scmp.ne.s32.totalorder %s6833_s29, %s6452_s5  ;;  %p6459_p7 = scmp.lt.s32.totalorder %s6457_s10, %s6452_s5 }
  0x46   : > { %p6455_p0 = pnand %p6846_p13, %p6453_p2  ;;  %p6460_p1 = por %p6459_p7, %p6458_p3 }
  0x48   : > { %p6456_p5 = pneg %p6455_p0 }
  0x4a   : > { %p6461_p12 = pnand %p6460_p1, %p6456_p5 }
  0x4c   : > { %6464 = shalt.err (!%p6461_p12)
}
  0x4d   : > { %s6465_s20 = scalar_lea.vmem %s6836_s15, 1024  ;;  %s6671_s27 = smov [#allocation5]  }
  0x4e   : > { %p6466_p6 = scmp.ne.s32.totalorder %s6836_s15, %s6465_s20  ;;  %s6470_s21 = sshll.u32 %s6671_s27, 4  ;;  %s6471_s21 = int_to_ptr.vmem [resolvable:$false] %s6470_s21 }
  0x4f   : > { %s6472_s22 = scalar_lea.vmem %s6471_s21, 2048  ;;  %p6473_p10 = scmp.lt.s32.totalorder %s6836_s15, %s6471_s21 }
  0x50   : > { %p6468_p2 = pnand %p6466_p6, %p6846_p13  ;;  %p6474_p4 = scmp.lt.s32.totalorder %s6472_s22, %s6465_s20 }
  0x52   : > { %p6469_p0 = pneg %p6468_p2  ;;  %p6475_p8 = por %p6474_p4, %p6473_p10 }
  0x54   : > { %p6476_p11 = pnand %p6475_p8, %p6469_p0 }
  0x56   : > { %6479 = shalt.err (!%p6476_p11)
}
  0x57   : > { %s9186_s5 = smov 4   ;;  %s9187_s23 = smov 64  }
  0x58   : > { %5755 = dma.hbm_to_vmem [thread:$0]  (!%p6824_p9), %s6833_s29, 1024, %s6836_s15, %s6840_s3, %s9187_s23, %s9187_s23, %s9186_s5  }
  0x59   : > { %s6491_s27 = scalar_lea.vmem %s247_s17, 1024  ;;  %p9188_p6 = scmp.ne.s32.totalorder %s9177_s12, 0 }
  0x5a   : > { %p6492_p1 = scmp.ne.s32.totalorder %s247_s17, %s6491_s27  ;;  %p6499_p8 = scmp.lt.s32.totalorder %s247_s17, %s247_s17 }
  0x5b   : > { %p9189_p12 = pneg %p9188_p6  ;;  %p6500_p11 = scmp.lt.s32.totalorder %s6491_s27, %s6491_s27 }
  0x5d   : > { %p6494_p5 = pnand %p6492_p1, %p9189_p12  ;;  %p6501_p10 = por %p6500_p11, %p6499_p8 }
  0x5f   : > { %p6495_p4 = pneg %p6494_p5 }
  0x61   : > { %p6502_p3 = pnand %p6501_p10, %p6495_p4 }
  0x63   : > { %6505 = shalt.err (!%p6502_p3)
}
  0x64   : > { %5742 = dma.hbm_to_vmem [thread:$0]  (!%p9188_p6), %s8996_s4, 1024, %s247_s17, [#allocation9], %s9187_s23, %s9187_s23, %s9186_s5  }
  0x65   : > { %s6672_s15 = smov [#allocation13]   ;;  %p9190_p2 = pmov %p9189_p12 }
  0x66   : > { %s272_s29 = sshll.u32 %s6672_s15, 4  ;;  %s273_s29 = int_to_ptr.vmem [resolvable:$true] %s272_s29 }
  0x67   : > { %s6517_s20 = scalar_lea.vmem %s273_s29, 1024  ;;  %p6525_p12 = scmp.lt.s32.totalorder %s273_s29, %s273_s29 }
  0x68   : > { %p6518_p7 = scmp.ne.s32.totalorder %s273_s29, %s6517_s20  ;;  %p6526_p5 = scmp.lt.s32.totalorder %s6517_s20, %s6517_s20 }
  0x6a   : > { %p6520_p0 = pnand %p6518_p7, %p9190_p2  ;;  %p6527_p4 = por %p6526_p5, %p6525_p12 }
  0x6c   : > { %p6521_p1 = pneg %p6520_p0 }
  0x6e   : > { %p6528_p8 = pnand %p6527_p4, %p6521_p1 }
  0x70   : > { %6531 = shalt.err (!%p6528_p8)
}
  0x71   : > { %5748 = dma.hbm_to_vmem [thread:$0]  (!%p9188_p6), %s8998_s6, 1024, %s273_s29, [#allocation12], %s9187_s23, %s9187_s23, %s9186_s5  }
  0x72   : > { %s6899_s10 = scalar_lea.hbm %s8992_s0, %s6822_s18  ;;  %s290_s12 = scalar_lea.vmem [#allocation2], %s6819_s14 }
  0x73   : > { %s298_s16 = sshll.u32 %s290_s12, 4  ;;  %s9191_s15 = sand.u32 1, %s6660_s26   ;;  %s6902_s16 = int_to_ptr.vmem [resolvable:$true] %s298_s16 }
  0x74   : > { %s287_s20 = scalar_lea.sflag [#allocation3], %s9191_s15  ;;  %s6532_s17 = scalar_lea.hbm %s6899_s10, 1024 }
  0x75   : > { %p6533_p11 = scmp.ne.s32.totalorder %s6899_s10, %s6532_s17  ;;  %s6537_s22 = scalar_lea.hbm %s8992_s0, 2048 }
  0x76   : > { %p6538_p6 = scmp.lt.s32.totalorder %s6899_s10, %s8992_s0  ;;  %p6539_p7 = scmp.lt.s32.totalorder %s6537_s22, %s6532_s17 }
  0x77   : > { %p6535_p10 = pnand %p6533_p11, %p6846_p13 }
  0x78   : > { %p6540_p2 = por %p6539_p7, %p6538_p6 }
  0x79   : > { %p6536_p3 = pneg %p6535_p10 }
  0x7b   : > { %p6541_p0 = pnand %p6540_p2, %p6536_p3 }
  0x7d   : > { %6544 = shalt.err (!%p6541_p0)
}
  0x7e   : > { %s6545_s12 = scalar_lea.vmem %s6902_s16, 1024  ;;  %s6673_s15 = smov [#allocation2]  }
  0x7f   : > { %p6546_p1 = scmp.ne.s32.totalorder %s6902_s16, %s6545_s12  ;;  %s6550_s29 = sshll.u32 %s6673_s15, 4  ;;  %s6551_s29 = int_to_ptr.vmem [resolvable:$false] %s6550_s29 }
  0x80   : > { %s6552_s21 = scalar_lea.vmem %s6551_s29, 2048  ;;  %p6553_p4 = scmp.lt.s32.totalorder %s6902_s16, %s6551_s29 }
  0x81   : > { %p6548_p12 = pnand %p6546_p1, %p6846_p13  ;;  %p6554_p8 = scmp.lt.s32.totalorder %s6552_s21, %s6545_s12 }
  0x83   : > { %p6549_p5 = pneg %p6548_p12  ;;  %p6555_p11 = por %p6554_p8, %p6553_p4 }
  0x85   : > { %p6556_p10 = pnand %p6555_p11, %p6549_p5 }
  0x87   : > { %6559 = shalt.err (!%p6556_p10)
}
  0x88   : > { %5752 = dma.hbm_to_vmem [thread:$0]  (!%p6824_p9), %s6899_s10, 1024, %s6902_s16, %s287_s20, %s9187_s23, %s9187_s23, %s9186_s5  }
  0x89   : > { %s6933_s22 = scalar_lea.hbm %s8994_s2, %s6822_s18  ;;  %s334_s27 = scalar_lea.vmem [#allocation7], %s6819_s14 }
  0x8a   : > { %s342_s12 = sshll.u32 %s334_s27, 4  ;;  %s6560_s15 = scalar_lea.hbm %s6933_s22, 1024  ;;  %s343_s12 = int_to_ptr.vmem [resolvable:$true] %s342_s12 }
  0x8b   : > { %p6561_p3 = scmp.ne.s32.totalorder %s6933_s22, %s6560_s15  ;;  %s6565_s10 = scalar_lea.hbm %s8994_s2, 2048 }
  0x8c   : > { %p6566_p2 = scmp.lt.s32.totalorder %s6933_s22, %s8994_s2  ;;  %p6567_p0 = scmp.lt.s32.totalorder %s6565_s10, %s6560_s15 }
  0x8d   : > { %p6563_p6 = pnand %p6561_p3, %p6846_p13 }
  0x8e   : > { %p6568_p1 = por %p6567_p0, %p6566_p2 }
  0x8f   : > { %p6564_p7 = pneg %p6563_p6 }
  0x91   : > { %p6569_p12 = pnand %p6568_p1, %p6564_p7 }
  0x93   : > { %6572 = shalt.err (!%p6569_p12)
}
  0x94   : > { %s6573_s14 = scalar_lea.vmem %s343_s12, 1024  ;;  %s6674_s18 = smov [#allocation7]  }
  0x95   : > { %p6574_p5 = scmp.ne.s32.totalorder %s343_s12, %s6573_s14  ;;  %s6578_s1 = sshll.u32 %s6674_s18, 4  ;;  %s6579_s1 = int_to_ptr.vmem [resolvable:$false] %s6578_s1 }
  0x96   : > { %s6580_s17 = scalar_lea.vmem %s6579_s1, 2048  ;;  %p6581_p11 = scmp.lt.s32.totalorder %s343_s12, %s6579_s1 }
  0x97   : > { %p6576_p4 = pnand %p6574_p5, %p6846_p13  ;;  %p6582_p10 = scmp.lt.s32.totalorder %s6580_s17, %s6573_s14 }
  0x99   : > { %p6577_p8 = pneg %p6576_p4  ;;  %p6583_p3 = por %p6582_p10, %p6581_p11 }
  0x9b   : > { %p6584_p6 = pnand %p6583_p3, %p6577_p8 }
  0x9d   : > { %6587 = shalt.err (!%p6584_p6)
}
  0x9e   : > { %5758 = dma.hbm_to_vmem [thread:$0]  (!%p6824_p9), %s6933_s22, 1024, %s343_s12, %s6840_s3, %s9187_s23, %s9187_s23, %s9186_s5  }
  0x9f   : > { %p9192_p13 = scmp.ne.s32.totalorder %s9176_s9, 0 }
  0xa1   : > { %354 = sbr.rel (%p9192_p13) target bundleno = 1684 (0x694), region = 48 }
  0xa6   : > { %s6959_s13 = sand.u32 1, %s6656_s25   ;;  %p9193_p7 = scmp.ne.s32.totalorder %s9174_s30, 0 }
  0xa7   : > { %s4928_s27 = sshll.u32 %s6959_s13, 6  ;;  %s357_s15 = scalar_lea.sflag [#allocation3], %s6959_s13 }
  0xa8   : > { %s6963_s29 = scalar_lea.vmem [#allocation2], %s4928_s27 }
  0xa9   : > { %6631 = dma.done.wait (%p9193_p7), %s357_s15, 1024  }
  0xaa   : > { %6633 = vsyncadd (%p9193_p7), %s357_s15, 4294966272  ;;  %s365_s3 = sand.u32 1, %s6741_s28   ;;  %s6970_s19 = scalar_lea.vmem [#allocation5], %s4928_s27 }
  0xab   : > { %s366_s9 = scalar_lea.sflag [#allocation6], %s365_s3 }
  0xac   : > { %6635 = dma.done.wait (%p9193_p7), %s366_s9, 2048  }
  0xad   : > { %6637 = vsyncadd (%p9193_p7), %s366_s9, 4294965248  ;;  %s6976_s5 = scalar_lea.vmem [#allocation7], %s4928_s27  ;;  %p9194_p9 = scmp.eq.s32.totalorder %s6741_s28, 0 }
  0xaf   : > { %6639 = dma.done.wait (%p9194_p9), [#allocation9], 2048   ;;  %p9195_p2 = pmov %p9194_p9 }
  0xb1   : > { %6641 = vsyncadd (%p9195_p2), [#allocation9], 4294965248  ;;  %p9196_p0 = pmov %p9195_p2 }
  0xb3   : > { %6643 = dma.done.wait (%p9196_p0), [#allocation12], 2048   ;;  %p9197_p1 = pmov %p9196_p0 }
  0xb4   : > { %v5816_v0 = vld [vmem:[#allocation8 + $0x38] sm:$0xff]   ;;  %v5817_v1 = vld [vmem:[#allocation8 + $0x30] sm:$0xff]   ;;  %v5818_v2 = vld [vmem:[#allocation8 + $0x28] sm:$0xff]   ;;  %vm1171_vm0 = vcmask 130048   ;;  %vm6676_vm1 = vmmov 0   ;;  %vm3807_vm2 = vcmask 130112  }
  0xb5   : > { %6645 = vsyncadd (%p9197_p1), [#allocation12], 4294965248  ;;  %5278 = vmatprep.subr.bf16.mxu0 %v5816_v0  ;;  %v5824_v3 = vld [vmem:[#allocation10 + $0x38] sm:$0xff]   ;;  %v440_v4 = vld [vmem:[%s6963_s29] sm:$0xff]   ;;  %vm3814_vm3 = vcmask 195712   ;;  %vm3821_vm4 = vcmask 261312  }
  0xb6   : > { %5279 = vmatpush3.bf16.xpose.msra.mxu0 %v5816_v0  ;;  %5310 = vmatprep.subr.bf16.mxu1 %v5824_v3  ;;  %v5827_v5 = vld [vmem:[#allocation10 + $0x30] sm:$0xff]   ;;  %v5819_v6 = vld [vmem:[#allocation8 + $0x20] sm:$0xff]   ;;  %v5828_v7 = vld [vmem:[#allocation10 + $0x28] sm:$0xff]   ;;  %vm3828_vm5 = vcmask 326912   ;;  %vm3835_vm6 = vcmask 392512   ;;  %vm3842_vm7 = vcmask 458112  }
  0xb7   : > { %5280 = vmatprep.subr.bf16.mxu0 %v5817_v1  ;;  %5311 = vmatpush3.bf16.xpose.msra.mxu1 %v5824_v3  ;;  %v5836_v8 = vld [vmem:[%s6970_s19] sm:$0xff]   ;;  %v5820_v9 = vld [vmem:[#allocation8 + $0x18] sm:$0xff]   ;;  %v5821_v11 = vld [vmem:[#allocation8 + $0x10] sm:$0xff]   ;;  %vm3849_vm8 = vcmask 523712   ;;  %vm3856_vm9 = vcmask 589312   ;;  %vm3863_vm10 = vcmask 654912  }
  0xb8   : > { %5294 = vmatprep.mubr.bf16.mxu0 %v440_v4  ;;  %5312 = vmatprep.subr.bf16.mxu1 %v5827_v5  ;;  %v5829_v10 = vld [vmem:[#allocation10 + $0x20] sm:$0xff]   ;;  %v5832_v12 = vld [vmem:[#allocation10 + $0x18] sm:$0xff]   ;;  %v5822_v13 = vld [vmem:[#allocation8 + $0x8] sm:$0xff]   ;;  %vm3870_vm11 = vcmask 720512   ;;  %vm3877_vm12 = vcmask 786112   ;;  %vm3884_vm13 = vcmask 851712  }
  0xb9   : > { %5326 = vmatprep.mubr.bf16.mxu1 %v5836_v8  ;;  %v5833_v14 = vld [vmem:[#allocation10 + $0x10] sm:$0xff]   ;;  %v5823_v15 = vld [vmem:[#allocation8] sm:$0xff]   ;;  %v5834_v16 = vld [vmem:[#allocation10 + $0x8] sm:$0xff]   ;;  %vm3891_vm14 = vcmask 917312   ;;  %vm3898_vm15 = vcmask 982912   ;;  %s4935_s30 = sshll.u32 %s6959_s13, 7 }
  0xba   : > { %v5835_v17 = vld [vmem:[#allocation10] sm:$0xff]   ;;  %v442_v18 = vld [vmem:[%s6963_s29 + $0x8] sm:$0xff]   ;;  %v444_v19 = vld [vmem:[%s6963_s29 + $0x10] sm:$0xff]   ;;  %s8924_s23 = scalar_lea.vmem [#allocation14], %s4935_s30  ;;  %s5069_s22 = sshll.u32 %s6741_s28, 11 }
  0xbb   : > { %v446_v20 = vld [vmem:[%s6963_s29 + $0x18] sm:$0xff]   ;;  %v448_v21 = vld [vmem:[%s6963_s29 + $0x20] sm:$0xff]   ;;  %v5837_v22 = vld [vmem:[%s6970_s19 + $0x8] sm:$0xff]   ;;  %s4754_s12 = sshll.u32 %s8924_s23, 4  ;;  %s8945_s16 = scalar_lea.hbm %s8999_s7, %s5069_s22  ;;  %s8947_s12 = int_to_ptr.vmem [resolvable:$true] %s4754_s12 }
  0xbc   : > { %v5840_v23 = vld [vmem:[%s6970_s19 + $0x10] sm:$0xff]   ;;  %v450_v24 = vld [vmem:[%s6963_s29 + $0x28] sm:$0xff]   ;;  %v5841_v26 = vld [vmem:[%s6970_s19 + $0x18] sm:$0xff]   ;;  %s4740_s20 = scalar_lea.sflag [#allocation4], %s6959_s13  ;;  %s6588_s14 = scalar_lea.vmem %s8947_s12, 2048 }
  0xbd   : > { %v452_v25 = vld [vmem:[%s6963_s29 + $0x30] sm:$0xff]   ;;  %v5844_v27 = vld [vmem:[%s6970_s19 + $0x20] sm:$0xff]   ;;  %v454_v28 = vld [vmem:[%s6963_s29 + $0x38] sm:$0xff]   ;;  %p6589_p12 = scmp.ne.s32.totalorder %s8947_s12, %s6588_s14  ;;  %p9518_p5 = scmp.ne.s32.totalorder %s9181_s11, 0 }
  0xbe   : > { %5281 = vmatpush3.bf16.xpose.msra.mxu0 %v5817_v1  ;;  %v5845_v29 = vld [vmem:[%s6970_s19 + $0x28] sm:$0xff]   ;;  %v5846_v30 = vld [vmem:[%s6970_s19 + $0x30] sm:$0xff]   ;;  %v5847_v31 = vld [vmem:[%s6970_s19 + $0x38] sm:$0xff]   ;;  %s6677_s28 = smov [#allocation14]  }
  0xbf   : > { %5282 = vmatprep.subr.bf16.mxu0 %v5818_v2  ;;  %5313 = vmatpush3.bf16.xpose.msra.mxu1 %v5827_v5  ;;  %v5848_v32 = vld [vmem:[#allocation11 + $0x38] sm:$0xff]   ;;  %v5849_v35 = vld [vmem:[#allocation11 + $0x30] sm:$0xff]   ;;  %v5850_v43 = vld [vmem:[#allocation11 + $0x28] sm:$0xff]   ;;  %p6590_p4 = pnand %p6589_p12, %p9518_p5  ;;  %s6592_s18 = sshll.u32 %s6677_s28, 4  ;;  %s6593_s18 = int_to_ptr.vmem [resolvable:$false] %s6592_s18 }
  0xc0   : > { %5314 = vmatprep.subr.bf16.mxu1 %v5828_v7  ;;  %v5851_v53 = vld [vmem:[#allocation11 + $0x20] sm:$0xff]   ;;  %v5852_v56 = vld [vmem:[#allocation11 + $0x18] sm:$0xff]   ;;  %v5853_v57 = vld [vmem:[#allocation11 + $0x10] sm:$0xff]   ;;  %s6594_s1 = scalar_lea.vmem %s6593_s18, 4096  ;;  %p6595_p11 = scmp.lt.s32.totalorder %s8947_s12, %s6593_s18 }
  0xc1   : > { %v5854_v59 = vld [vmem:[#allocation11 + $0x8] sm:$0xff]   ;;  %v5855_v0 = vld [vmem:[#allocation11] sm:$0xff]   ;;  %p6591_p8 = pneg %p6590_p4  ;;  %p6596_p10 = scmp.lt.s32.totalorder %s6594_s1, %s6588_s14 }
  0xc3   : > { %p6597_p3 = por %p6596_p10, %p6595_p11 }
  0xc5   : > { %p6598_p6 = pnand %p6597_p3, %p6591_p8 }
  0xc6   : > { %5283 = vmatpush3.bf16.xpose.msra.mxu0 %v5818_v2 }
  0xc7   : > { %5284 = vmatprep.subr.bf16.mxu0 %v5819_v6  ;;  %5315 = vmatpush3.bf16.xpose.msra.mxu1 %v5828_v7  ;;  %v5856_v7 = vld [vmem:[%s6976_s5] sm:$0xff]  }
  0xc8   : > { %5316 = vmatprep.subr.bf16.mxu1 %v5829_v10 }
  0xce   : > { %5285 = vmatpush3.bf16.xpose.msra.mxu0 %v5819_v6 }
  0xcf   : > { %5286 = vmatprep.subr.bf16.mxu0 %v5820_v9  ;;  %5317 = vmatpush3.bf16.xpose.msra.mxu1 %v5829_v10 }
  0xd0   : > { %5318 = vmatprep.subr.bf16.mxu1 %v5832_v12 }
  0xd6   : > { %5287 = vmatpush3.bf16.xpose.msra.mxu0 %v5820_v9  ;;  %v5857_v9 = vld [vmem:[%s6976_s5 + $0x8] sm:$0xff]  }
  0xd7   : > { %5288 = vmatprep.subr.bf16.mxu0 %v5821_v11  ;;  %5319 = vmatpush3.bf16.xpose.msra.mxu1 %v5832_v12  ;;  %v5858_v12 = vld [vmem:[%s6976_s5 + $0x10] sm:$0xff]  }
  0xd8   : > { %5320 = vmatprep.subr.bf16.mxu1 %v5833_v14 }
  0xde   : > { %5289 = vmatpush3.bf16.xpose.msra.mxu0 %v5821_v11 }
  0xdf   : > { %5290 = vmatprep.subr.bf16.mxu0 %v5822_v13  ;;  %5321 = vmatpush3.bf16.xpose.msra.mxu1 %v5833_v14 }
  0xe0   : > { %5322 = vmatprep.subr.bf16.mxu1 %v5834_v16 }
  0xe6   : > { %5291 = vmatpush3.bf16.xpose.msra.mxu0 %v5822_v13  ;;  %v5859_v13 = vld [vmem:[%s6976_s5 + $0x18] sm:$0xff]  }
  0xe7   : > { %5292 = vmatprep.subr.bf16.mxu0 %v5823_v15  ;;  %5323 = vmatpush3.bf16.xpose.msra.mxu1 %v5834_v16  ;;  %v5861_v16 = vld [vmem:[%s6976_s5 + $0x28] sm:$0xff]  }
  0xe8   : > { %5324 = vmatprep.subr.bf16.mxu1 %v5835_v17 }
  0xee   : > { %5293 = vmatpush3.bf16.xpose.msra.mxu0 %v5823_v15  ;;  %v5860_v15 = vld [vmem:[%s6976_s5 + $0x20] sm:$0xff]  }
  0xef   : > { %5325 = vmatpush3.bf16.xpose.msra.mxu1 %v5835_v17  ;;  %5342 = vmatprep.subr.bf16.mxu0 %v5848_v32 }
  0xf5   : > { %5295 = vmatmul.mubr.bf16.vlgmr.msra.gmra.mxu0 %v442_v18 }
  0xf6   : > { %5298 = vmatprep.mubr.bf16.mxu0 %v444_v19  ;;  %5327 = vmatmul.mubr.bf16.vlgmr.msra.gmra.mxu1 %v5837_v22  ;;  %v5862_v19 = vld [vmem:[%s6976_s5 + $0x30] sm:$0xff]  }
  0xf7   : > { %5330 = vmatprep.mubr.bf16.mxu1 %v5840_v23  ;;  %5343 = vmatpush3.bf16.xpose.msra.mxu0 %v5848_v32 }
  0xf8   : > { %5344 = vmatprep.subr.bf16.mxu0 %v5849_v35 }
  0xfd   : > { %5299 = vmatmul.mubr.bf16.gmra.mxu0 %v446_v20  ;;  %v5863_v20 = vld [vmem:[%s6976_s5 + $0x38] sm:$0xff]  }
  0xfe   : > { %5302 = vmatprep.mubr.bf16.mxu0 %v448_v21  ;;  %5331 = vmatmul.mubr.bf16.gmra.mxu1 %v5841_v26 }
  0xff   : > { %5334 = vmatprep.mubr.bf16.mxu1 %v5844_v27  ;;  %5345 = vmatpush3.bf16.xpose.msra.mxu0 %v5849_v35 }
 0x100   : > { %5346 = vmatprep.subr.bf16.mxu0 %v5850_v43 }
 0x105   : > { %5303 = vmatmul.mubr.bf16.gmra.mxu0 %v450_v24 }
 0x106   : > { %5306 = vmatprep.mubr.bf16.mxu0 %v452_v25  ;;  %5335 = vmatmul.mubr.bf16.gmra.mxu1 %v5845_v29 }
 0x107   : > { %5338 = vmatprep.mubr.bf16.mxu1 %v5846_v30  ;;  %5347 = vmatpush3.bf16.xpose.msra.mxu0 %v5850_v43 }
 0x108   : > { %5348 = vmatprep.subr.bf16.mxu0 %v5851_v53 }
 0x10d   : > { %5307 = vmatmul.mubr.bf16.gmra.mxu0 %v454_v28 }
 0x10e   : > { %5339 = vmatmul.mubr.bf16.gmra.mxu1 %v5847_v31  ;;  %5358 = vmatprep.mubr.bf16.mxu0 %v5856_v7 }
 0x10f   : > { %5349 = vmatpush3.bf16.xpose.msra.mxu0 %v5851_v53 }
 0x110   : > { %5350 = vmatprep.subr.bf16.mxu0 %v5852_v56 }
 0x117   : > { %5351 = vmatpush3.bf16.xpose.msra.mxu0 %v5852_v56 }
 0x118   : > { %5352 = vmatprep.subr.bf16.mxu0 %v5853_v57 }
 0x11f   : > { %5353 = vmatpush3.bf16.xpose.msra.mxu0 %v5853_v57 }
 0x120   : > { %5354 = vmatprep.subr.bf16.mxu0 %v5854_v59 }
 0x127   : > { %5355 = vmatpush3.bf16.xpose.msra.mxu0 %v5854_v59 }
 0x128   : > { %5356 = vmatprep.subr.bf16.mxu0 %v5855_v0 }
 0x12f   : > { %5357 = vmatpush3.bf16.xpose.msra.mxu0 %v5855_v0 }
 0x136   : > { %5359 = vmatmul.mubr.bf16.vlgmr.msra.gmra.mxu0 %v5857_v9 }
 0x137   : > { %5362 = vmatprep.mubr.bf16.mxu0 %v5858_v12 }
 0x13e   : > { %5363 = vmatmul.mubr.bf16.gmra.mxu0 %v5859_v13 }
 0x13f   : > { %5366 = vmatprep.mubr.bf16.mxu0 %v5860_v15 }
 0x146   : > { %5367 = vmatmul.mubr.bf16.gmra.mxu0 %v5861_v16 }
 0x147   : > { %5370 = vmatprep.mubr.bf16.mxu0 %v5862_v19 }
 0x14e   : > { %5371 = vmatmul.mubr.bf16.gmra.mxu0 %v5863_v20 }
 0x1b5   : > { %v5296_v33 = vpop.f32.mrf.mxu0 }
 0x1b6   : > { %v5328_v40 = vpop.f32.mrf.mxu1 }
 0x1b7   : > { %v682_v34 = vpop.f32.mrf.mxu0 }
 0x1b8   : > { %v875_v42 = vpop.f32.mrf.mxu1 }
 0x1b9   : > { %v5297_v36 = vpop.f32.mrf.mxu0 }
 0x1ba   : > { %v5329_v45 = vpop.f32.mrf.mxu1  ;;  %v1132_v58 = vpack.c.bf16 %v5297_v36, %v5296_v33 }
 0x1bb   : > { %v685_v37 = vpop.f32.mrf.mxu0  ;;  %v7002_v49 = vpack.c.bf16 %v5329_v45, %v5328_v40 }
 0x1bc   : > { %v1131_v38 = vpack.c.bf16 %v685_v37, %v682_v34  ;;  %v878_v47 = vpop.f32.mrf.mxu1 }
 0x1bd   : > { %v5300_v39 = vpop.f32.mrf.mxu0  ;;  %v1139_v50 = vpack.c.bf16 %v878_v47, %v875_v42 }
 0x1be   : > { %1155 = vxpose.xlu0.c.b16.start.end [1/1] (short) %v1131_v38, 128  ;;  %v5332_v51 = vpop.f32.mrf.mxu1 }
 0x1bf   : > { %v698_v41 = vpop.f32.mrf.mxu0  ;;  %5374 = vmatprep.subr.bf16.mxu1 %v1139_v50 }
 0x1c0   : > { %5375 = vmatpush3.bf16.msra.mxu1 %v1139_v50  ;;  %v7004_v52 = vpop.f32.mrf.mxu1 }
 0x1c1   : > { %v5301_v44 = vpop.f32.mrf.mxu0  ;;  %5392 = vmatprep.subr.bf16.mxu1 %v7002_v49 }
 0x1c2   : > { %v5333_v54 = vpop.f32.mrf.mxu1  ;;  %v1134_v60 = vpack.c.bf16 %v5301_v44, %v5300_v39 }
 0x1c3   : > { %v701_v46 = vpop.f32.mrf.mxu0  ;;  %v7007_v55 = vpack.c.bf16 %v5333_v54, %v5332_v51 }
 0x1c4   : > { %v1133_v48 = vpack.c.bf16 %v701_v46, %v698_v41  ;;  %v894_v61 = vpop.f32.mrf.mxu1 }
 0x1c5   : > { %v5304_v62 = vpop.f32.mrf.mxu0  ;;  %v1141_v26 = vpack.c.bf16 %v894_v61, %v7004_v52 }
 0x1c6   : > { %1430 = vxpose.xlu1.c.b16.start.end [1/1] (short) %v1133_v48, 128  ;;  %v5336_v63 = vpop.f32.mrf.mxu1 }
 0x1c7   : > { %v714_v2 = vpop.f32.mrf.mxu0 }
 0x1c8   : > { %v907_v1 = vpop.f32.mrf.mxu1 }
 0x1c9   : > { %v5305_v5 = vpop.f32.mrf.mxu0 }
 0x1ca   : > { %v5337_v3 = vpop.f32.mrf.mxu1  ;;  %v1136_v14 = vpack.c.bf16 %v5305_v5, %v5304_v62 }
 0x1cb   : > { %v7009_v4 = vpack.c.bf16 %v5337_v3, %v5336_v63  ;;  %v717_v10 = vpop.f32.mrf.mxu0 }
 0x1cc   : > { %v910_v6 = vpop.f32.mrf.mxu1  ;;  %v1135_v11 = vpack.c.bf16 %v717_v10, %v714_v2 }
 0x1cd   : > { %v7012_v8 = vpack.c.bf16 %v910_v6, %v907_v1  ;;  %v5308_v17 = vpop.f32.mrf.mxu0 }
 0x1ce   : > { %v5340_v28 = vpop.f32.mrf.mxu1 }
 0x1cf   : > { %5446 = vmatprep.subr.bf16.mxu0 %v7012_v8  ;;  %v730_v18 = vpop.f32.mrf.mxu0 }
 0x1d0   : > { %5447 = vmatpush3.bf16.msra.mxu0 %v7012_v8  ;;  %v923_v30 = vpop.f32.mrf.mxu1 }
 0x1d1   : > { %v5309_v21 = vpop.f32.mrf.mxu0 }
 0x1d2   : > { %v1138_v24 = vpack.c.bf16 %v5309_v21, %v5308_v17  ;;  %v5341_v31 = vpop.f32.mrf.mxu1 }
 0x1d3   : > { %v733_v22 = vpop.f32.mrf.mxu0  ;;  %v7028_v34 = vpack.c.bf16 %v5341_v31, %v5340_v28 }
 0x1d4   : > { %v1137_v23 = vpack.c.bf16 %v733_v22, %v730_v18  ;;  %v926_v35 = vpop.f32.mrf.mxu1 }
 0x1d5   : > { %v1145_v36 = vpack.c.bf16 %v926_v35, %v923_v30 }
 0x1d7   : > { %5482 = vmatprep.subr.bf16.mxu0 %v1145_v36 }
 0x1db   : > { %1293 = vxpose.xlu0.c.b16.start.end [1/1] (short) %v1132_v58, 128 }
 0x1e3   : > { %1567 = vxpose.xlu1.c.b16.start.end [1/1] (short) %v1134_v60, 128 }
 0x1f8   : > { %1704 = vxpose.xlu0.c.b16.start.end [1/1] (short) %v1135_v11, 128 }
 0x200   : > { %1841 = vxpose.xlu1.c.b16.start.end [1/1] (short) %v1136_v14, 128 }
 0x215   : > { %1978 = vxpose.xlu0.c.b16.start.end [1/1] (short) %v1137_v23, 128 }
 0x21d   : > { %2115 = vxpose.xlu1.c.b16.start.end [1/1] (short) %v1138_v24, 128  ;;  %v7086_v24 = vpop.f32.mrf.mxu0 }
 0x21e   : > { %9198 = vst [vmem:[#allocation23_spill] sm:$0xff] %v7086_v24 }
 0x220   : > { %v1163_v25 = vpop.trf.xlu0 }
 0x221   : > { %5376 = vmatprep.mubr.msk.bf16.mxu1 %vm1171_vm0, %v1163_v25 }
 0x224   : > { %v1164_v27 = vpop.trf.xlu0 }
 0x225   : > { %5377 = vmatmul.mubr.msk.bf16.vlgmr.msra.gmra.mxu1 %vm1171_vm0, %v1164_v27 }
 0x226   : > { %5393 = vmatpush3.bf16.msra.mxu1 %v7002_v49 }
 0x227   : > { %5410 = vmatprep.subr.bf16.mxu1 %v1141_v26 }
 0x228   : > { %v1165_v29 = vpop.trf.xlu0  ;;  %v1438_v33 = vpop.trf.xlu1 }
 0x229   : > { %5380 = vmatprep.mubr.msk.bf16.mxu1 %vm1171_vm0, %v1165_v29 }
 0x22c   : > { %v1166_v32 = vpop.trf.xlu0  ;;  %v1439_v38 = vpop.trf.xlu1 }
 0x22d   : > { %5381 = vmatmul.mubr.msk.bf16.gmra.mxu1 %vm1171_vm0, %v1166_v32 }
 0x230   : > { %v1167_v37 = vpop.trf.xlu0  ;;  %v1440_v41 = vpop.trf.xlu1 }
 0x231   : > { %5384 = vmatprep.mubr.msk.bf16.mxu1 %vm1171_vm0, %v1167_v37 }
 0x234   : > { %v1168_v39 = vpop.trf.xlu0  ;;  %v1441_v43 = vpop.trf.xlu1 }
 0x235   : > { %5385 = vmatmul.mubr.msk.bf16.gmra.mxu1 %vm1171_vm0, %v1168_v39 }
 0x238   : > { %v1169_v40 = vpop.trf.xlu0  ;;  %v1442_v46 = vpop.trf.xlu1 }
 0x239   : > { %5388 = vmatprep.mubr.msk.bf16.mxu1 %vm1171_vm0, %v1169_v40 }
 0x23c   : > { %v1170_v42 = vpop.trf.xlu0  ;;  %v1443_v48 = vpop.trf.xlu1 }
 0x23d   : > { %5389 = vmatmul.mubr.msk.bf16.gmra.mxu1 %vm1171_vm0, %v1170_v42 }
 0x240   : > { %v1301_v44 = vpop.trf.xlu0  ;;  %v1444_v51 = vpop.trf.xlu1 }
 0x241   : > { %5394 = vmatprep.mubr.msk.bf16.mxu1 %vm1171_vm0, %v1301_v44 }
 0x244   : > { %v1302_v45 = vpop.trf.xlu0  ;;  %v1445_v53 = vpop.trf.xlu1 }
 0x245   : > { %5395 = vmatmul.mubr.msk.bf16.vlgmr.msra.gmra.mxu1 %vm1171_vm0, %v1302_v45 }
 0x246   : > { %5411 = vmatpush3.bf16.msra.mxu1 %v1141_v26  ;;  %v7088_v26 = vpop.f32.mrf.mxu0 }
 0x247   : > { %5428 = vmatprep.subr.bf16.mxu1 %v7007_v55  ;;  %9199 = vst [vmem:[#allocation24_spill] sm:$0xff] %v7088_v26 }
 0x248   : > { %v1303_v47 = vpop.trf.xlu0  ;;  %v1575_v57 = vpop.trf.xlu1 }
 0x249   : > { %5398 = vmatprep.mubr.msk.bf16.mxu1 %vm1171_vm0, %v1303_v47 }
 0x24c   : > { %v1304_v49 = vpop.trf.xlu0  ;;  %v1576_v59 = vpop.trf.xlu1 }
 0x24d   : > { %5399 = vmatmul.mubr.msk.bf16.gmra.mxu1 %vm1171_vm0, %v1304_v49 }
 0x250   : > { %v1305_v50 = vpop.trf.xlu0  ;;  %v1577_v61 = vpop.trf.xlu1 }
 0x251   : > { %5402 = vmatprep.mubr.msk.bf16.mxu1 %vm1171_vm0, %v1305_v50 }
 0x254   : > { %v1306_v52 = vpop.trf.xlu0  ;;  %v1578_v0 = vpop.trf.xlu1 }
 0x255   : > { %5403 = vmatmul.mubr.msk.bf16.gmra.mxu1 %vm1171_vm0, %v1306_v52 }
 0x258   : > { %v1307_v54 = vpop.trf.xlu0 }
 0x259   : > { %5406 = vmatprep.mubr.msk.bf16.mxu1 %vm1171_vm0, %v1307_v54 }
 0x25c   : > { %v1308_v56 = vpop.trf.xlu0 }
 0x25d   : > { %5407 = vmatmul.mubr.msk.bf16.gmra.mxu1 %vm1171_vm0, %v1308_v56 }
 0x25e   : > { %5412 = vmatprep.mubr.msk.bf16.mxu1 %vm1171_vm0, %v1438_v33 }
 0x260   : > { %v1712_v58 = vpop.trf.xlu0 }
 0x261   : > { %5448 = vmatprep.mubr.msk.bf16.mxu0 %vm1171_vm0, %v1712_v58 }
 0x264   : > { %v1713_v60 = vpop.trf.xlu0 }
 0x265   : > { %5413 = vmatmul.mubr.msk.bf16.vlgmr.msra.gmra.mxu1 %vm1171_vm0, %v1439_v38  ;;  %5449 = vmatmul.mubr.msk.bf16.vlgmr.msra.gmra.mxu0 %vm1171_vm0, %v1713_v60 }
 0x266   : > { %5429 = vmatpush3.bf16.msra.mxu1 %v7007_v55  ;;  %5416 = vmatprep.mubr.msk.bf16.mxu1 %vm1171_vm0, %v1440_v41  ;;  %v1579_v55 = vpop.trf.xlu1 }
 0x267   : > { %5710 = vmatprep.subr.bf16.mxu1 %v7012_v8  ;;  %5483 = vmatpush3.bf16.msra.mxu0 %v1145_v36 }
 0x268   : > { %v1714_v62 = vpop.trf.xlu0 }
 0x269   : > { %5452 = vmatprep.mubr.msk.bf16.mxu0 %vm1171_vm0, %v1714_v62 }
 0x26a   : > { %v1580_v5 = vpop.trf.xlu1 }
 0x26c   : > { %v1715_v63 = vpop.trf.xlu0 }
 0x26d   : > { %5417 = vmatmul.mubr.msk.bf16.gmra.mxu1 %vm1171_vm0, %v1441_v43  ;;  %5453 = vmatmul.mubr.msk.bf16.gmra.mxu0 %vm1171_vm0, %v1715_v63 }
 0x26e   : > { %5420 = vmatprep.mubr.msk.bf16.mxu1 %vm1171_vm0, %v1442_v46  ;;  %v1581_v7 = vpop.trf.xlu1 }
 0x270   : > { %v1716_v1 = vpop.trf.xlu0 }
 0x271   : > { %5456 = vmatprep.mubr.msk.bf16.mxu0 %vm1171_vm0, %v1716_v1 }
 0x272   : > { %v1582_v11 = vpop.trf.xlu1 }
 0x274   : > { %v1717_v2 = vpop.trf.xlu0 }
 0x275   : > { %5421 = vmatmul.mubr.msk.bf16.gmra.mxu1 %vm1171_vm0, %v1443_v48  ;;  %5457 = vmatmul.mubr.msk.bf16.gmra.mxu0 %vm1171_vm0, %v1717_v2 }
 0x276   : > { %5424 = vmatprep.mubr.msk.bf16.mxu1 %vm1171_vm0, %v1444_v51  ;;  %v1849_v13 = vpop.trf.xlu1 }
 0x278   : > { %v1718_v3 = vpop.trf.xlu0 }
 0x27a   : > { %v1850_v15 = vpop.trf.xlu1 }
 0x27c   : > { %v1719_v6 = vpop.trf.xlu0 }
 0x27d   : > { %5425 = vmatmul.mubr.msk.bf16.gmra.mxu1 %vm1171_vm0, %v1445_v53 }
 0x27e   : > { %5430 = vmatprep.mubr.msk.bf16.mxu1 %vm1171_vm0, %v1575_v57  ;;  %v1851_v17 = vpop.trf.xlu1 }
 0x280   : > { %v1986_v9 = vpop.trf.xlu0 }
 0x281   : > { %5484 = vmatprep.mubr.msk.bf16.mxu0 %vm1171_vm0, %v1986_v9 }
 0x282   : > { %v1852_v19 = vpop.trf.xlu1 }
 0x284   : > { %v1987_v10 = vpop.trf.xlu0 }
 0x285   : > { %5431 = vmatmul.mubr.msk.bf16.vlgmr.msra.gmra.mxu1 %vm1171_vm0, %v1576_v59  ;;  %5485 = vmatmul.mubr.msk.bf16.vlgmr.msra.gmra.mxu0 %vm1171_vm0, %v1987_v10 }
 0x286   : > { %5711 = vmatpush3.bf16.msra.mxu1 %v7012_v8  ;;  %5434 = vmatprep.mubr.msk.bf16.mxu1 %vm1171_vm0, %v1577_v61  ;;  %v1853_v21 = vpop.trf.xlu1 }
 0x287   : > { %5464 = vmatprep.subr.bf16.mxu1 %v7009_v4 }
 0x288   : > { %v1988_v12 = vpop.trf.xlu0 }
 0x289   : > { %5488 = vmatprep.mubr.msk.bf16.mxu0 %vm1171_vm0, %v1988_v12 }
 0x28a   : > { %v1854_v22 = vpop.trf.xlu1 }
 0x28c   : > { %v1989_v14 = vpop.trf.xlu0 }
 0x28d   : > { %5435 = vmatmul.mubr.msk.bf16.gmra.mxu1 %vm1171_vm0, %v1578_v0  ;;  %5489 = vmatmul.mubr.msk.bf16.gmra.mxu0 %vm1171_vm0, %v1989_v14 }
 0x28e   : > { %5438 = vmatprep.mubr.msk.bf16.mxu1 %vm1171_vm0, %v1579_v55  ;;  %v1855_v23 = vpop.trf.xlu1 }
 0x290   : > { %v1990_v16 = vpop.trf.xlu0 }
 0x291   : > { %5492 = vmatprep.mubr.msk.bf16.mxu0 %vm1171_vm0, %v1990_v16 }
 0x292   : > { %v1856_v25 = vpop.trf.xlu1 }
 0x294   : > { %v1991_v8 = vpop.trf.xlu0 }
 0x295   : > { %5439 = vmatmul.mubr.msk.bf16.gmra.mxu1 %vm1171_vm0, %v1580_v5  ;;  %5493 = vmatmul.mubr.msk.bf16.gmra.mxu0 %vm1171_vm0, %v1991_v8 }
 0x296   : > { %5442 = vmatprep.mubr.msk.bf16.mxu1 %vm1171_vm0, %v1581_v7  ;;  %v2123_v28 = vpop.trf.xlu1 }
 0x298   : > { %v1992_v18 = vpop.trf.xlu0 }
 0x299   : > { %5496 = vmatprep.mubr.msk.bf16.mxu0 %vm1171_vm0, %v1992_v18 }
 0x29a   : > { %v2124_v33 = vpop.trf.xlu1 }
 0x29c   : > { %v1993_v20 = vpop.trf.xlu0 }
 0x29d   : > { %5443 = vmatmul.mubr.msk.bf16.gmra.mxu1 %vm1171_vm0, %v1582_v11  ;;  %5497 = vmatmul.mubr.msk.bf16.gmra.mxu0 %vm1171_vm0, %v1993_v20 }
 0x29e   : > { %5460 = vmatprep.mubr.msk.bf16.mxu1 %vm1171_vm0, %v1718_v3  ;;  %v2125_v39 = vpop.trf.xlu1 }
 0x2a2   : > { %v2126_v45 = vpop.trf.xlu1 }
 0x2a5   : > { %5461 = vmatmul.mubr.msk.bf16.vlgmr.msra.gmra.mxu1 %vm1171_vm0, %v1719_v6 }
 0x2a6   : > { %5465 = vmatpush3.bf16.msra.mxu1 %v7009_v4  ;;  %5466 = vmatprep.mubr.msk.bf16.mxu1 %vm1171_vm0, %v1849_v13  ;;  %v7092_v4 = vpop.f32.mrf.mxu0  ;;  %v2127_v50 = vpop.trf.xlu1 }
 0x2a7   : > { %5500 = vmatprep.subr.bf16.mxu1 %v7028_v34  ;;  %9200 = vst [vmem:[#allocation25_spill] sm:$0xff] %v7092_v4  ;;  %v9251_v4 = vmov 0.0  }
 0x2a8   : > { %v7096_v29 = vpop.f32.mrf.mxu0  ;;  %5534 = vmatprep.mubr.msk.bf16.mxu0 %vm6676_vm1, %v9251_v4 }
 0x2a9   : > { %9201 = vst [vmem:[#allocation26_spill] sm:$0xff] %v7096_v29 }
 0x2aa   : > { %v7100_v31 = vpop.f32.mrf.mxu0  ;;  %v2128_v51 = vpop.trf.xlu1 }
 0x2ab   : > { %9202 = vst [vmem:[#allocation27_spill] sm:$0xff] %v7100_v31 }
 0x2ac   : > { %v7102_v32 = vpop.f32.mrf.mxu0 }
 0x2ad   : > { %5467 = vmatmul.mubr.msk.bf16.vlgmr.msra.gmra.mxu1 %vm1171_vm0, %v1850_v15  ;;  %9203 = vst [vmem:[#allocation28_spill] sm:$0xff] %v7102_v32 }
 0x2ae   : > { %5501 = vmatpush3.bf16.msra.mxu1 %v7028_v34  ;;  %5470 = vmatprep.mubr.msk.bf16.mxu1 %vm1171_vm0, %v1851_v17  ;;  %v7106_v34 = vpop.f32.mrf.mxu0  ;;  %v2129_v52 = vpop.trf.xlu1 }
 0x2af   : > { %9204 = vst [vmem:[#allocation29_spill] sm:$0xff] %v7106_v34 }
 0x2b0   : > { %v7110_v36 = vpop.f32.mrf.mxu0 }
 0x2b1   : > { %9205 = vst [vmem:[#allocation30_spill] sm:$0xff] %v7110_v36 }
 0x2b2   : > { %v7114_v38 = vpop.f32.mrf.mxu0  ;;  %v2130_v53 = vpop.trf.xlu1 }
 0x2b3   : > { %9206 = vst [vmem:[#allocation31_spill] sm:$0xff] %v7114_v38 }
 0x2b4   : > { %v7116_v40 = vpop.f32.mrf.mxu0 }
 0x2b5   : > { %5471 = vmatmul.mubr.msk.bf16.gmra.mxu1 %vm1171_vm0, %v1852_v19  ;;  %9207 = vst [vmem:[#allocation32_spill] sm:$0xff] %v7116_v40 }
 0x2b6   : > { %5474 = vmatprep.mubr.msk.bf16.mxu1 %vm1171_vm0, %v1853_v21  ;;  %v7120_v41 = vpop.f32.mrf.mxu0  ;;  %v9015_v21 = vmov 0.0  }
 0x2b7   : > { %9208 = vst [vmem:[#allocation33_spill] sm:$0xff] %v7120_v41  ;;  %5518 = vmatprep.subr.bf16.mxu0 %v9015_v21  ;;  %5538 = vmatprep.subr.bf16.mxu1 %v9015_v21 }
 0x2b8   : > { %v7124_v43 = vpop.f32.mrf.mxu0 }
 0x2b9   : > { %9209 = vst [vmem:[#allocation34_spill] sm:$0xff] %v7124_v43 }
 0x2ba   : > { %v7128_v46 = vpop.f32.mrf.mxu0 }
 0x2bb   : > { %9210 = vst [vmem:[#allocation35_spill] sm:$0xff] %v7128_v46 }
 0x2bc   : > { %v7130_v47 = vpop.f32.mrf.mxu0 }
 0x2bd   : > { %5475 = vmatmul.mubr.msk.bf16.gmra.mxu1 %vm1171_vm0, %v1854_v22  ;;  %9211 = vst [vmem:[#allocation36_spill] sm:$0xff] %v7130_v47 }
 0x2be   : > { %5478 = vmatprep.mubr.msk.bf16.mxu1 %vm1171_vm0, %v1855_v23  ;;  %v7134_v48 = vpop.f32.mrf.mxu0 }
 0x2bf   : > { %9212 = vst [vmem:[#allocation37_spill] sm:$0xff] %v7134_v48 }
 0x2c0   : > { %v7282_v30 = vpop.f32.mrf.mxu0 }
 0x2c1   : > { %9228 = vst [vmem:[#allocation53_spill] sm:$0xff] %v7282_v30 }
 0x2c5   : > { %5479 = vmatmul.mubr.msk.bf16.gmra.mxu1 %vm1171_vm0, %v1856_v25 }
 0x2c6   : > { %5502 = vmatprep.mubr.msk.bf16.mxu1 %vm1171_vm0, %v2123_v28 }
 0x2cd   : > { %5503 = vmatmul.mubr.msk.bf16.vlgmr.msra.gmra.mxu1 %vm1171_vm0, %v2124_v33 }
 0x2ce   : > { %5506 = vmatprep.mubr.msk.bf16.mxu1 %vm1171_vm0, %v2125_v39 }
 0x2d5   : > { %5507 = vmatmul.mubr.msk.bf16.gmra.mxu1 %vm1171_vm0, %v2126_v45 }
 0x2d6   : > { %5510 = vmatprep.mubr.msk.bf16.mxu1 %vm1171_vm0, %v2127_v50 }
 0x2dd   : > { %5511 = vmatmul.mubr.msk.bf16.gmra.mxu1 %vm1171_vm0, %v2128_v51 }
 0x2de   : > { %5514 = vmatprep.mubr.msk.bf16.mxu1 %vm1171_vm0, %v2129_v52 }
 0x2e5   : > { %v7142_v54 = vpop.f32.mrf.mxu1  ;;  %5515 = vmatmul.mubr.msk.bf16.gmra.mxu1 %vm1171_vm0, %v2130_v53  ;;  %vm3905_vm0 = vcmask 1048512  }
 0x2e6   : > { %2256 = vmax.xlane.f32.xlu0 %v7142_v54  ;;  %5554 = vmatprep.mubr.msk.bf16.mxu1 %vm6676_vm1, %v9251_v4 }
 0x2e7   : > { %v7146_v56 = vpop.f32.mrf.mxu1 }
 0x2e9   : > { %v7148_v57 = vpop.f32.mrf.mxu1 }
 0x2ea   : > { %2258 = vmax.xlane.f32.xlu1 %v7148_v57  ;;  %2252 = vmax.xlane.f32.xlu0 %v7146_v56 }
 0x2eb   : > { %v7152_v58 = vpop.f32.mrf.mxu1 }
 0x2ed   : > { %v7154_v59 = vpop.f32.mrf.mxu1 }
 0x2ee   : > { %2254 = vmax.xlane.f32.xlu1 %v7152_v58  ;;  %2264 = vmax.xlane.f32.xlu0 %v7154_v59 }
 0x2ef   : > { %v7158_v60 = vpop.f32.mrf.mxu1 }
 0x2f1   : > { %v7160_v61 = vpop.f32.mrf.mxu1 }
 0x2f2   : > { %2266 = vmax.xlane.f32.xlu1 %v7160_v61  ;;  %2260 = vmax.xlane.f32.xlu0 %v7158_v60 }
 0x2f3   : > { %v7164_v62 = vpop.f32.mrf.mxu1 }
 0x2f5   : > { %v7166_v63 = vpop.f32.mrf.mxu1 }
 0x2f6   : > { %2262 = vmax.xlane.f32.xlu1 %v7164_v62  ;;  %2272 = vmax.xlane.f32.xlu0 %v7166_v63 }
 0x2f7   : > { %v7170_v0 = vpop.f32.mrf.mxu1 }
 0x2f9   : > { %v7172_v1 = vpop.f32.mrf.mxu1 }
 0x2fa   : > { %2274 = vmax.xlane.f32.xlu1 %v7172_v1  ;;  %2268 = vmax.xlane.f32.xlu0 %v7170_v0 }
 0x2fb   : > { %v7176_v55 = vpop.f32.mrf.mxu1 }
 0x2fd   : > { %v7178_v2 = vpop.f32.mrf.mxu1 }
 0x2fe   : > { %2270 = vmax.xlane.f32.xlu1 %v7176_v55  ;;  %2280 = vmax.xlane.f32.xlu0 %v7178_v2 }
 0x2ff   : > { %v7182_v3 = vpop.f32.mrf.mxu1 }
 0x301   : > { %v7184_v5 = vpop.f32.mrf.mxu1 }
 0x302   : > { %2282 = vmax.xlane.f32.xlu1 %v7184_v5  ;;  %2276 = vmax.xlane.f32.xlu0 %v7182_v3 }
 0x303   : > { %v7188_v6 = vpop.f32.mrf.mxu1 }
 0x305   : > { %v7190_v7 = vpop.f32.mrf.mxu1 }
 0x306   : > { %2278 = vmax.xlane.f32.xlu1 %v7188_v6  ;;  %2288 = vmax.xlane.f32.xlu0 %v7190_v7 }
 0x307   : > { %v7194_v9 = vpop.f32.mrf.mxu1 }
 0x308   : > { %9213 = vst [vmem:[#allocation38_spill] sm:$0xff] %v7194_v9 }
 0x309   : > { %v7196_v10 = vpop.f32.mrf.mxu1 }
 0x30a   : > { %2290 = vmax.xlane.f32.xlu1 %v7196_v10 }
 0x30b   : > { %v7199_v11 = vpop.f32.mrf.mxu1 }
 0x30c   : > { %9214 = vst [vmem:[#allocation39_spill] sm:$0xff] %v7199_v11 }
 0x30d   : > { %v7201_v12 = vpop.f32.mrf.mxu1 }
 0x30e   : > { %2296 = vmax.xlane.f32.xlu0 %v7201_v12 }
 0x30f   : > { %v7204_v13 = vpop.f32.mrf.mxu1 }
 0x311   : > { %v7206_v14 = vpop.f32.mrf.mxu1 }
 0x312   : > { %2298 = vmax.xlane.f32.xlu1 %v7206_v14  ;;  %2292 = vmax.xlane.f32.xlu0 %v7204_v13 }
 0x313   : > { %v7210_v15 = vpop.f32.mrf.mxu1 }
 0x315   : > { %v7212_v16 = vpop.f32.mrf.mxu1 }
 0x316   : > { %2294 = vmax.xlane.f32.xlu1 %v7210_v15  ;;  %2304 = vmax.xlane.f32.xlu0 %v7212_v16 }
 0x317   : > { %v7216_v8 = vpop.f32.mrf.mxu1 }
 0x319   : > { %v7218_v17 = vpop.f32.mrf.mxu1 }
 0x31a   : > { %2306 = vmax.xlane.f32.xlu1 %v7218_v17  ;;  %2300 = vmax.xlane.f32.xlu0 %v7216_v8 }
 0x31b   : > { %v7222_v18 = vpop.f32.mrf.mxu1 }
 0x31d   : > { %v7224_v19 = vpop.f32.mrf.mxu1 }
 0x31e   : > { %2302 = vmax.xlane.f32.xlu1 %v7222_v18  ;;  %2312 = vmax.xlane.f32.xlu0 %v7224_v19 }
 0x31f   : > { %v7228_v20 = vpop.f32.mrf.mxu1 }
 0x321   : > { %v7232_v22 = vpop.f32.mrf.mxu1 }
 0x322   : > { %2314 = vmax.xlane.f32.xlu1 %v7232_v22  ;;  %2284 = vmax.xlane.f32.xlu0 %v7194_v9 }
 0x323   : > { %v7236_v23 = vpop.f32.mrf.mxu1 }
 0x325   : > { %v7238_v25 = vpop.f32.mrf.mxu1  ;;  %v7290_v48 = vpop.f32.mrf.mxu0 }
 0x326   : > { %9215 = vst [vmem:[#allocation40_spill] sm:$0xff] %v7238_v25  ;;  %2286 = vmax.xlane.f32.xlu1 %v7199_v11  ;;  %2308 = vmax.xlane.f32.xlu0 %v7228_v20  ;;  %9231 = vst [vmem:[#allocation56_spill] sm:$0xff] %v7290_v48 }
 0x327   : > { %v7242_v28 = vpop.f32.mrf.mxu1  ;;  %v7298_v41 = vpop.f32.mrf.mxu0 }
 0x328   : > { %9216 = vst [vmem:[#allocation41_spill] sm:$0xff] %v7242_v28  ;;  %9234 = vst [vmem:[#allocation59_spill] sm:$0xff] %v7298_v41 }
 0x329   : > { %v7244_v33 = vpop.f32.mrf.mxu1  ;;  %v7306_v43 = vpop.f32.mrf.mxu0 }
 0x32a   : > { %9217 = vst [vmem:[#allocation42_spill] sm:$0xff] %v7244_v33  ;;  %2310 = vmax.xlane.f32.xlu1 %v7236_v23  ;;  %2320 = vmax.xlane.f32.xlu0 %v7238_v25  ;;  %9237 = vst [vmem:[#allocation62_spill] sm:$0xff] %v7306_v43 }
 0x32b   : > { %v7248_v39 = vpop.f32.mrf.mxu1  ;;  %v7314_v32 = vpop.f32.mrf.mxu0 }
 0x32c   : > { %9218 = vst [vmem:[#allocation43_spill] sm:$0xff] %v7248_v39  ;;  %9240 = vst [vmem:[#allocation65_spill] sm:$0xff] %v7314_v32 }
 0x32d   : > { %v7250_v45 = vpop.f32.mrf.mxu1 }
 0x32e   : > { %9219 = vst [vmem:[#allocation44_spill] sm:$0xff] %v7250_v45  ;;  %2322 = vmax.xlane.f32.xlu1 %v7244_v33  ;;  %2316 = vmax.xlane.f32.xlu0 %v7242_v28  ;;  %v7322_v28 = vpop.f32.mrf.mxu0 }
 0x32f   : > { %v7254_v50 = vpop.f32.mrf.mxu1  ;;  %9243 = vst [vmem:[#allocation68_spill] sm:$0xff] %v7322_v28 }
 0x330   : > { %9220 = vst [vmem:[#allocation45_spill] sm:$0xff] %v7254_v50 }
 0x331   : > { %v7256_v51 = vpop.f32.mrf.mxu1 }
 0x332   : > { %9221 = vst [vmem:[#allocation46_spill] sm:$0xff] %v7256_v51  ;;  %2318 = vmax.xlane.f32.xlu1 %v7248_v39  ;;  %2328 = vmax.xlane.f32.xlu0 %v7250_v45  ;;  %v7330_v39 = vpop.f32.mrf.mxu0 }
 0x333   : > { %v7260_v52 = vpop.f32.mrf.mxu1  ;;  %9246 = vst [vmem:[#allocation71_spill] sm:$0xff] %v7330_v39 }
 0x334   : > { %9222 = vst [vmem:[#allocation47_spill] sm:$0xff] %v7260_v52  ;;  %v7338_v24 = vpop.f32.mrf.mxu0 }
 0x335   : > { %v7262_v53 = vpop.f32.mrf.mxu1  ;;  %9249 = vst [vmem:[#allocation74_spill] sm:$0xff] %v7338_v24 }
 0x336   : > { %9223 = vst [vmem:[#allocation48_spill] sm:$0xff] %v7262_v53  ;;  %2330 = vmax.xlane.f32.xlu1 %v7256_v51  ;;  %2324 = vmax.xlane.f32.xlu0 %v7254_v50  ;;  %v7350_v25 = vpop.f32.mrf.mxu0 }
 0x337   : > { %v7266_v49 = vpop.f32.mrf.mxu1  ;;  %9253 = vst [vmem:[#allocation77_spill] sm:$0xff] %v7350_v25 }
 0x338   : > { %9224 = vst [vmem:[#allocation49_spill] sm:$0xff] %v7266_v49  ;;  %v7356_v33 = vpop.f32.mrf.mxu0 }
 0x339   : > { %v7268_v42 = vpop.f32.mrf.mxu1  ;;  %9255 = vst [vmem:[#allocation79_spill] sm:$0xff] %v7356_v33 }
 0x33a   : > { %9225 = vst [vmem:[#allocation50_spill] sm:$0xff] %v7268_v42  ;;  %2326 = vmax.xlane.f32.xlu1 %v7260_v52  ;;  %2336 = vmax.xlane.f32.xlu0 %v7262_v53  ;;  %v7364_v50 = vpop.f32.mrf.mxu0 }
 0x33b   : > { %v7272_v44 = vpop.f32.mrf.mxu1  ;;  %9258 = vst [vmem:[#allocation82_spill] sm:$0xff] %v7364_v50 }
 0x33c   : > { %9226 = vst [vmem:[#allocation51_spill] sm:$0xff] %v7272_v44 }
 0x33d   : > { %v7274_v35 = vpop.f32.mrf.mxu1 }
 0x33e   : > { %2338 = vmax.xlane.f32.xlu1 %v7268_v42  ;;  %2332 = vmax.xlane.f32.xlu0 %v7266_v49 }
 0x33f   : > { %v7278_v37 = vpop.f32.mrf.mxu1 }
 0x340   : > { %9227 = vst [vmem:[#allocation52_spill] sm:$0xff] %v7278_v37 }
 0x341   : > { %v7280_v27 = vpop.f32.mrf.mxu1 }
 0x342   : > { %2334 = vmax.xlane.f32.xlu1 %v7272_v44  ;;  %2344 = vmax.xlane.f32.xlu0 %v7274_v35 }
 0x343   : > { %v7286_v21 = vpop.f32.mrf.mxu1 }
 0x344   : > { %9229 = vst [vmem:[#allocation54_spill] sm:$0xff] %v7286_v21 }
 0x345   : > { %v7288_v46 = vpop.f32.mrf.mxu1 }
 0x346   : > { %9230 = vst [vmem:[#allocation55_spill] sm:$0xff] %v7288_v46  ;;  %2346 = vmax.xlane.f32.xlu1 %v7280_v27  ;;  %2340 = vmax.xlane.f32.xlu0 %v7278_v37 }
 0x347   : > { %v7294_v47 = vpop.f32.mrf.mxu1 }
 0x348   : > { %9232 = vst [vmem:[#allocation57_spill] sm:$0xff] %v7294_v47 }
 0x349   : > { %v7296_v38 = vpop.f32.mrf.mxu1 }
 0x34a   : > { %9233 = vst [vmem:[#allocation58_spill] sm:$0xff] %v7296_v38  ;;  %2342 = vmax.xlane.f32.xlu1 %v7286_v21  ;;  %2352 = vmax.xlane.f32.xlu0 %v7288_v46 }
 0x34b   : > { %v7302_v30 = vpop.f32.mrf.mxu1 }
 0x34c   : > { %9235 = vst [vmem:[#allocation60_spill] sm:$0xff] %v7302_v30 }
 0x34d   : > { %v7304_v40 = vpop.f32.mrf.mxu1 }
 0x34e   : > { %9236 = vst [vmem:[#allocation61_spill] sm:$0xff] %v7304_v40  ;;  %2354 = vmax.xlane.f32.xlu1 %v7296_v38  ;;  %2360 = vmax.xlane.f32.xlu0 %v7304_v40 }
 0x34f   : > { %v7310_v31 = vpop.f32.mrf.mxu1 }
 0x350   : > { %9238 = vst [vmem:[#allocation63_spill] sm:$0xff] %v7310_v31 }
 0x351   : > { %v7312_v34 = vpop.f32.mrf.mxu1 }
 0x352   : > { %9239 = vst [vmem:[#allocation64_spill] sm:$0xff] %v7312_v34  ;;  %2362 = vmax.xlane.f32.xlu1 %v7312_v34  ;;  %2356 = vmax.xlane.f32.xlu0 %v7310_v31 }
 0x353   : > { %v7318_v36 = vpop.f32.mrf.mxu1 }
 0x354   : > { %9241 = vst [vmem:[#allocation66_spill] sm:$0xff] %v7318_v36 }
 0x355   : > { %v7320_v46 = vpop.f32.mrf.mxu1 }
 0x356   : > { %9242 = vst [vmem:[#allocation67_spill] sm:$0xff] %v7320_v46  ;;  %2358 = vmax.xlane.f32.xlu1 %v7318_v36  ;;  %2368 = vmax.xlane.f32.xlu0 %v7320_v46 }
 0x357   : > { %v7326_v38 = vpop.f32.mrf.mxu1 }
 0x358   : > { %9244 = vst [vmem:[#allocation69_spill] sm:$0xff] %v7326_v38 }
 0x359   : > { %v7328_v40 = vpop.f32.mrf.mxu1 }
 0x35a   : > { %9245 = vst [vmem:[#allocation70_spill] sm:$0xff] %v7328_v40  ;;  %2370 = vmax.xlane.f32.xlu1 %v7328_v40  ;;  %2364 = vmax.xlane.f32.xlu0 %v7326_v38 }
 0x35b   : > { %v7334_v31 = vpop.f32.mrf.mxu1 }
 0x35c   : > { %9247 = vst [vmem:[#allocation72_spill] sm:$0xff] %v7334_v31 }
 0x35d   : > { %v7336_v34 = vpop.f32.mrf.mxu1 }
 0x35e   : > { %9248 = vst [vmem:[#allocation73_spill] sm:$0xff] %v7336_v34  ;;  %2366 = vmax.xlane.f32.xlu1 %v7334_v31  ;;  %2376 = vmax.xlane.f32.xlu0 %v7336_v34 }
 0x35f   : > { %v7342_v36 = vpop.f32.mrf.mxu1 }
 0x360   : > { %9250 = vst [vmem:[#allocation75_spill] sm:$0xff] %v7342_v36 }
 0x361   : > { %v7348_v38 = vpop.f32.mrf.mxu1 }
 0x362   : > { %9252 = vst [vmem:[#allocation76_spill] sm:$0xff] %v7348_v38  ;;  %2378 = vmax.xlane.f32.xlu1 %v7348_v38  ;;  %2348 = vmax.xlane.f32.xlu0 %v7294_v47  ;;  %v7372_v38 = vpop.f32.mrf.mxu0 }
 0x363   : > { %v7354_v31 = vpop.f32.mrf.mxu1  ;;  %9261 = vst [vmem:[#allocation85_spill] sm:$0xff] %v7372_v38 }
 0x364   : > { %9254 = vst [vmem:[#allocation78_spill] sm:$0xff] %v7354_v31  ;;  %v7381_v34 = vpop.f32.mrf.mxu0 }
 0x365   : > { %v7358_v46 = vpop.f32.mrf.mxu1  ;;  %9264 = vst [vmem:[#allocation88_spill] sm:$0xff] %v7381_v34 }
 0x366   : > { %9256 = vst [vmem:[#allocation80_spill] sm:$0xff] %v7358_v46  ;;  %2350 = vmax.xlane.f32.xlu1 %v7302_v30  ;;  %2372 = vmax.xlane.f32.xlu0 %v7342_v36  ;;  %v7391_v29 = vpop.f32.mrf.mxu0 }
 0x367   : > { %v7362_v40 = vpop.f32.mrf.mxu1 }
 0x368   : > { %9257 = vst [vmem:[#allocation81_spill] sm:$0xff] %v7362_v40 }
 0x369   : > { %v7366_v52 = vpop.f32.mrf.mxu1 }
 0x36a   : > { %9259 = vst [vmem:[#allocation83_spill] sm:$0xff] %v7366_v52  ;;  %2374 = vmax.xlane.f32.xlu1 %v7354_v31  ;;  %2400 = vmax.xlane.f32.xlu0 %v7356_v33 }
 0x36b   : > { %v7370_v47 = vpop.f32.mrf.mxu1 }
 0x36c   : > { %9260 = vst [vmem:[#allocation84_spill] sm:$0xff] %v7370_v47 }
 0x36d   : > { %v7374_v45 = vpop.f32.mrf.mxu1 }
 0x36e   : > { %9262 = vst [vmem:[#allocation86_spill] sm:$0xff] %v7374_v45  ;;  %2396 = vmax.xlane.f32.xlu0 %v7364_v50  ;;  %2402 = vmax.xlane.f32.xlu1 %v7372_v38 }
 0x36f   : > { %v2257_v30 = vpop.xlane.xlu0 %2256  ;;  %v7378_v36 = vpop.f32.mrf.mxu1 }
 0x370   : > { %9263 = vst [vmem:[#allocation87_spill] sm:$0xff] %v7378_v36  ;;  %v2510_v51 = vsub.f32 %v7142_v54, %v2257_v30 }
 0x371   : > { %v7383_v31 = vpop.f32.mrf.mxu1 }
 0x372   : > { %9265 = vst [vmem:[#allocation89_spill] sm:$0xff] %v7383_v31  ;;  %2392 = vmax.xlane.f32.xlu0 %v7322_v28  ;;  %2398 = vmax.xlane.f32.xlu1 %v7381_v34  ;;  %v2640_v33 = vmul.f32 1.442695, %v2510_v51 }
 0x373   : > { %v2259_v49 = vpop.xlane.xlu1 %2258  ;;  %v2253_v44 = vpop.xlane.xlu0 %2252 }
 0x374   : > { %v2511_v50 = vsub.f32 %v7148_v57, %v2259_v49  ;;  %v2508_v38 = vsub.f32 %v7146_v56, %v2253_v44  ;;  %v7389_v26 = vpop.f32.mrf.mxu1  ;;  %5880 = vpow2.f32 %v2640_v33  ;;  %v7400_v44 = vpop.f32.mrf.mxu0 }
 0x375   : > { %9266 = vst [vmem:[#allocation90_spill] sm:$0xff] %v7389_v26 }
 0x376   : > { %v2642_v30 = vmul.f32 1.442695, %v2511_v50  ;;  %2388 = vmax.xlane.f32.xlu0 %v7330_v39  ;;  %2394 = vmax.xlane.f32.xlu1 %v7338_v24  ;;  %v2636_v54 = vmul.f32 1.442695, %v2508_v38  ;;  %v7398_v49 = vpop.f32.mrf.mxu1  ;;  %v7410_v50 = vpop.f32.mrf.mxu0 }
 0x377   : > { %v2255_v28 = vpop.xlane.xlu1 %2254  ;;  %v7395_v34 = vpop.xlane.xlu0 %2264  ;;  %9267 = vst [vmem:[#allocation91_spill] sm:$0xff] %v7398_v49 }
 0x378   : > { %5882 = vpow2.f32 %v2642_v30  ;;  %v2509_v51 = vsub.f32 %v7152_v58, %v2255_v28  ;;  %v7408_v38 = vpop.f32.mrf.mxu1 }
 0x379   : > { %5884 = vpow2.f32 %v2636_v54  ;;  %9268 = vst [vmem:[#allocation92_spill] sm:$0xff] %v7408_v38  ;;  %v7420_v54 = vpop.f32.mrf.mxu0 }
 0x37a   : > { %v2638_v56 = vmul.f32 1.442695, %v2509_v51  ;;  %2384 = vmax.xlane.f32.xlu0 %v7290_v48  ;;  %2390 = vmax.xlane.f32.xlu1 %v7350_v25  ;;  %v7418_v30 = vpop.f32.mrf.mxu1  ;;  %9270 = vst [vmem:[#allocation94_spill] sm:$0xff] %v7420_v54 }
 0x37b   : > { %v7404_v57 = vpop.xlane.xlu1 %2266  ;;  %v7406_v33 = vpop.xlane.xlu0 %2260  ;;  %9269 = vst [vmem:[#allocation93_spill] sm:$0xff] %v7418_v30 }
 0x37c   : > { %5886 = vpow2.f32 %v2638_v56  ;;  %v7428_v25 = vpop.f32.mrf.mxu1 }
 0x37d   : > { %9272 = vst [vmem:[#allocation96_spill] sm:$0xff] %v7428_v25 }
 0x37e   : > { %2380 = vmax.xlane.f32.xlu0 %v7298_v41  ;;  %2386 = vmax.xlane.f32.xlu1 %v7306_v43  ;;  %v7432_v43 = vpop.f32.mrf.mxu0  ;;  %v7443_v11 = vpop.f32.mrf.mxu1 }
 0x37f   : > { %v7414_v58 = vpop.xlane.xlu1 %2262  ;;  %v7416_v28 = vpop.xlane.xlu0 %2272  ;;  %9274 = vst [vmem:[#allocation98_spill] sm:$0xff] %v7432_v43  ;;  %9276 = vst [vmem:[#allocation100_spill] sm:$0xff] %v7443_v11 }
 0x380   : > { %v7447_v9 = vpop.f32.mrf.mxu0 }
 0x381   : > { %v7426_v24 = vpop.eup %5880  ;;  %9277 = vst [vmem:[#allocation101_spill] sm:$0xff] %v7447_v9 }
 0x382   : > { %2408 = vmax.xlane.f32.xlu0 %v7358_v46  ;;  %2382 = vmax.xlane.f32.xlu1 %v7314_v32  ;;  %9271 = vst [vmem:[#allocation95_spill] sm:$0xff] %v7426_v24  ;;  %v7454_v24 = vpop.f32.mrf.mxu1 }
 0x383   : > { %v2275_v51 = vpop.xlane.xlu1 %2274  ;;  %v7424_v56 = vpop.xlane.xlu0 %2268  ;;  %9278 = vst [vmem:[#allocation102_spill] sm:$0xff] %v7454_v24 }
 0x385   : > { %v7430_v39 = vpop.eup %5882 }
 0x386   : > { %9273 = vst [vmem:[#allocation97_spill] sm:$0xff] %v7430_v39  ;;  %2404 = vmax.xlane.f32.xlu0 %v7362_v40  ;;  %2410 = vmax.xlane.f32.xlu1 %v7366_v52  ;;  %v7440_v48 = vpop.eup %5884 }
 0x387   : > { %v7438_v41 = vpop.xlane.xlu1 %2270  ;;  %v2281_v32 = vpop.xlane.xlu0 %2280  ;;  %9275 = vst [vmem:[#allocation99_spill] sm:$0xff] %v7440_v48 }
 0x388   : > { %v2522_v53 = vsub.f32 %v7178_v2, %v2281_v32  ;;  %v7457_v2 = vpop.f32.mrf.mxu0 }
 0x389   : > { %v7445_v42 = vpop.eup %5886  ;;  %9279 = vst [vmem:[#allocation103_spill] sm:$0xff] %v7457_v2 }
 0x38a   : > { %2416 = vmax.xlane.f32.xlu0 %v7374_v45  ;;  %2406 = vmax.xlane.f32.xlu1 %v7370_v47  ;;  %v2664_v40 = vmul.f32 1.442695, %v2522_v53  ;;  %v7465_v48 = vpop.f32.mrf.mxu0 }
 0x38b   : > { %v2283_v52 = vpop.xlane.xlu1 %2282  ;;  %v2277_v21 = vpop.xlane.xlu0 %2276  ;;  %9281 = vst [vmem:[#allocation105_spill] sm:$0xff] %v7465_v48 }
 0x38c   : > { %v2523_v37 = vsub.f32 %v7184_v5, %v2283_v52  ;;  %v2520_v32 = vsub.f32 %v7182_v3, %v2277_v21  ;;  %5888 = vpow2.f32 %v2664_v40  ;;  %v7463_v5 = vpop.f32.mrf.mxu1 }
 0x38d   : > { %9280 = vst [vmem:[#allocation104_spill] sm:$0xff] %v7463_v5 }
 0x38e   : > { %v2666_v39 = vmul.f32 1.442695, %v2523_v37  ;;  %2424 = vmax.xlane.f32.xlu0 %v7398_v49  ;;  %2418 = vmax.xlane.f32.xlu1 %v7383_v31  ;;  %v2660_v52 = vmul.f32 1.442695, %v2520_v32  ;;  %v7470_v31 = vpop.f32.mrf.mxu1 }
 0x38f   : > { %v2279_v45 = vpop.xlane.xlu1 %2278  ;;  %v2289_v47 = vpop.xlane.xlu0 %2288  ;;  %9282 = vst [vmem:[#allocation106_spill] sm:$0xff] %v7470_v31 }
 0x390   : > { %5890 = vpow2.f32 %v2666_v39  ;;  %v2521_v53 = vsub.f32 %v7188_v6, %v2279_v45  ;;  %v2526_v46 = vsub.f32 %v7190_v7, %v2289_v47  ;;  %v7472_v6 = vpop.f32.mrf.mxu0  ;;  %v2519_v47 = vsub.f32 %v7172_v1, %v2275_v51 }
 0x391   : > { %5892 = vpow2.f32 %v2660_v52  ;;  %9283 = vst [vmem:[#allocation107_spill] sm:$0xff] %v7472_v6 }
 0x392   : > { %v2662_v3 = vmul.f32 1.442695, %v2521_v53  ;;  %2420 = vmax.xlane.f32.xlu0 %v7408_v38  ;;  %2426 = vmax.xlane.f32.xlu1 %v7418_v30  ;;  %v2672_v37 = vmul.f32 1.442695, %v2526_v46  ;;  %v2518_v46 = vsub.f32 %v7166_v63, %v7416_v28  ;;  %v7483_v45 = vpop.f32.mrf.mxu0  ;;  %v2658_v32 = vmul.f32 1.442695, %v2519_v47 }
 0x393   : > { %v2291_v21 = vpop.xlane.xlu1 %2290  ;;  %9284 = vst [vmem:[#allocation108_spill] sm:$0xff] %v7483_v45 }
 0x394   : > { %v2527_v40 = vsub.f32 %v7196_v10, %v2291_v21  ;;  %5894 = vpow2.f32 %v2662_v3  ;;  %v7481_v10 = vpop.f32.mrf.mxu1  ;;  %v2656_v52 = vmul.f32 1.442695, %v2518_v46  ;;  %v7497_v28 = vpop.f32.mrf.mxu0 }
 0x395   : > { %5896 = vpow2.f32 %v2672_v37  ;;  %9286 = vst [vmem:[#allocation110_spill] sm:$0xff] %v7497_v28  ;;  %v2517_v37 = vsub.f32 %v7176_v55, %v7438_v41 }
 0x396   : > { %v2674_v7 = vmul.f32 1.442695, %v2527_v40  ;;  %2432 = vmax.xlane.f32.xlu0 %v7443_v11  ;;  %2422 = vmax.xlane.f32.xlu1 %v7428_v25  ;;  %v7493_v3 = vpop.f32.mrf.mxu1 }
 0x397   : > { %v7477_v39 = vpop.xlane.xlu0 %2296  ;;  %9285 = vst [vmem:[#allocation109_spill] sm:$0xff] %v7493_v3  ;;  %v2654_v55 = vmul.f32 1.442695, %v2517_v37  ;;  %v2514_v37 = vsub.f32 %v7154_v59, %v7395_v34 }
 0x398   : > { %5898 = vpow2.f32 %v2674_v7  ;;  %v2516_v7 = vsub.f32 %v7170_v0, %v7424_v56  ;;  %v7511_v46 = vpop.f32.mrf.mxu1 }
 0x399   : > { %v7491_v53 = vpop.eup %5888  ;;  %5900 = vpow2.f32 %v2658_v32  ;;  %v7513_v32 = vpop.f32.mrf.mxu0 }
 0x39a   : > { %2428 = vmax.xlane.f32.xlu0 %v7454_v24  ;;  %2434 = vmax.xlane.f32.xlu1 %v7463_v5  ;;  %5902 = vpow2.f32 %v2656_v52  ;;  %9287 = vst [vmem:[#allocation111_spill] sm:$0xff] %v7513_v32  ;;  %v2652_v56 = vmul.f32 1.442695, %v2516_v7 }
 0x39b   : > { %v7487_v1 = vpop.xlane.xlu1 %2298  ;;  %v7489_v51 = vpop.xlane.xlu0 %2292  ;;  %5904 = vpow2.f32 %v2654_v55 }
 0x39c   : > { %v7534_v30 = vpop.f32.mrf.mxu0  ;;  %5906 = vpow2.f32 %v2652_v56 }
 0x39d   : > { %v7495_v63 = vpop.eup %5890  ;;  %9288 = vst [vmem:[#allocation112_spill] sm:$0xff] %v7534_v30 }
 0x39e   : > { %2440 = vmax.xlane.f32.xlu0 %v7481_v10  ;;  %2430 = vmax.xlane.f32.xlu1 %v7470_v31  ;;  %v3155_v21 = vpack.c.bf16 %v7495_v63, %v7491_v53  ;;  %v7516_v41 = vpop.eup %5892 }
 0x39f   : > { %v7505_v40 = vpop.xlane.xlu1 %2294  ;;  %v7507_v47 = vpop.xlane.xlu0 %2304 }
 0x3a0   : > { %5519 = vmatpush3.bf16.xpose.msra.mxu0 %v3155_v21  ;;  %v7528_v21 = vpop.f32.mrf.mxu1 }
 0x3a1   : > { %5520 = vmatprep.subr.bf16.mxu0 %v9251_v4  ;;  %v7520_v38 = vpop.eup %5894 }
 0x3a2   : > { %2412 = vmax.xlane.f32.xlu0 %v7378_v36  ;;  %2442 = vmax.xlane.f32.xlu1 %v7511_v46  ;;  %v7526_v0 = vpop.eup %5896  ;;  %v2515_v36 = vsub.f32 %v7160_v61, %v7404_v57  ;;  %v3154_v7 = vpack.c.bf16 %v7520_v38, %v7516_v41  ;;  %v7542_v24 = vpop.f32.mrf.mxu1  ;;  %v2648_v61 = vmul.f32 1.442695, %v2514_v37 }
 0x3a3   : > { %v7522_v52 = vpop.xlane.xlu1 %2306  ;;  %v7524_v25 = vpop.xlane.xlu0 %2300  ;;  %9289 = vst [vmem:[#allocation113_spill] sm:$0xff] %v7542_v24 }
 0x3a4   : > { %v7549_v57 = vpop.f32.mrf.mxu0  ;;  %v2650_v55 = vmul.f32 1.442695, %v2515_v36  ;;  %5908 = vpow2.f32 %v2648_v61  ;;  %v2512_v36 = vsub.f32 %v7158_v60, %v7406_v33 }
 0x3a5   : > { %v7530_v49 = vpop.eup %5898  ;;  %9290 = vst [vmem:[#allocation114_spill] sm:$0xff] %v7549_v57 }
 0x3a6   : > { %2436 = vmax.xlane.f32.xlu0 %v7493_v3  ;;  %2414 = vmax.xlane.f32.xlu1 %v7389_v26  ;;  %v7554_v26 = vpop.f32.mrf.mxu1  ;;  %v7556_v31 = vpop.eup %5900  ;;  %5910 = vpow2.f32 %v2650_v55  ;;  %v2644_v61 = vmul.f32 1.442695, %v2512_v36 }
 0x3a7   : > { %v7546_v11 = vpop.xlane.xlu1 %2302  ;;  %v2313_v34 = vpop.xlane.xlu0 %2312  ;;  %9291 = vst [vmem:[#allocation115_spill] sm:$0xff] %v7554_v26 }
 0x3a8   : > { %v2538_v59 = vsub.f32 %v7224_v19, %v2313_v34  ;;  %5521 = vmatpush3.bf16.xpose.msra.mxu0 %v3154_v7  ;;  %v7561_v37 = vpop.eup %5902  ;;  %v7565_v7 = vpop.f32.mrf.mxu0  ;;  %v2513_v34 = vsub.f32 %v7164_v62, %v7414_v58 }
 0x3a9   : > { %5522 = vmatprep.subr.bf16.mxu0 %v9251_v4 }
 0x3aa   : > { %2438 = vmax.xlane.f32.xlu1 %v7528_v21  ;;  %2472 = vmax.xlane.f32.xlu0 %v7534_v30  ;;  %v2696_v5 = vmul.f32 1.442695, %v2538_v59  ;;  %v7578_v62 = vpop.f32.mrf.mxu0  ;;  %v2646_v58 = vmul.f32 1.442695, %v2513_v34  ;;  %v2535_v34 = vsub.f32 %v7218_v17, %v7522_v52 }
 0x3ab   : > { %v2315_v3 = vpop.xlane.xlu1 %2314  ;;  %v7558_v56 = vpop.xlane.xlu0 %2284  ;;  %9293 = vst [vmem:[#allocation117_spill] sm:$0xff] %v7578_v62 }
 0x3ac   : > { %v2539_v19 = vsub.f32 %v7232_v22, %v2315_v3  ;;  %v3153_v22 = vpack.c.bf16 %v7556_v31, %v7561_v37  ;;  %v7573_v3 = vpop.f32.mrf.mxu1  ;;  %5912 = vpow2.f32 %v2696_v5  ;;  %v7585_v5 = vpop.eup %5904  ;;  %v2690_v52 = vmul.f32 1.442695, %v2535_v34 }
 0x3ad   : > { %9292 = vst [vmem:[#allocation116_spill] sm:$0xff] %v7573_v3  ;;  %v7590_v36 = vpop.eup %5906  ;;  %v2533_v34 = vsub.f32 %v7222_v18, %v7546_v11  ;;  %v2532_v11 = vsub.f32 %v7216_v8, %v7524_v25 }
 0x3ae   : > { %v2698_v30 = vmul.f32 1.442695, %v2539_v19  ;;  %2468 = vmax.xlane.f32.xlu0 %v7549_v57  ;;  %2474 = vmax.xlane.f32.xlu1 %v7565_v7  ;;  %v7583_v55 = vpop.f32.mrf.mxu1 }
 0x3af   : > { %v7575_v59 = vpop.xlane.xlu1 %2286  ;;  %v2309_v60 = vpop.xlane.xlu0 %2308  ;;  %9294 = vst [vmem:[#allocation118_spill] sm:$0xff] %v7583_v55 }
 0x3b0   : > { %5914 = vpow2.f32 %v2698_v30  ;;  %v2536_v33 = vsub.f32 %v7228_v20, %v2309_v60  ;;  %5523 = vmatpush3.bf16.xpose.msra.mxu0 %v3153_v22  ;;  %v3152_v60 = vpack.c.bf16 %v7585_v5, %v7590_v36 }
 0x3b1   : > { %5524 = vmatprep.subr.bf16.mxu0 %v9251_v4  ;;  %5916 = vpow2.f32 %v2644_v61  ;;  %v7607_v17 = vpop.eup %5908 }
 0x3b2   : > { %2464 = vmax.xlane.f32.xlu0 %v7472_v6  ;;  %2470 = vmax.xlane.f32.xlu1 %v7578_v62  ;;  %v2692_v19 = vmul.f32 1.442695, %v2536_v33  ;;  %5918 = vpow2.f32 %v2646_v58  ;;  %v7598_v33 = vpop.f32.mrf.mxu1 }
 0x3b3   : > { %v2311_v57 = vpop.xlane.xlu1 %2310  ;;  %v7587_v30 = vpop.xlane.xlu0 %2320  ;;  %9295 = vst [vmem:[#allocation119_spill] sm:$0xff] %v7598_v33 }
 0x3b4   : > { %v2537_v20 = vsub.f32 %v7236_v23, %v2311_v57  ;;  %5920 = vpow2.f32 %v2692_v19  ;;  %v2534_v57 = vsub.f32 %v7212_v16, %v7507_v47  ;;  %v7611_v61 = vpop.f32.mrf.mxu1  ;;  %v7613_v58 = vpop.eup %5910 }
 0x3b5   : > { %9296 = vst [vmem:[#allocation120_spill] sm:$0xff] %v7611_v61 }
 0x3b6   : > { %v2694_v22 = vmul.f32 1.442695, %v2537_v20  ;;  %2460 = vmax.xlane.f32.xlu0 %v7483_v45  ;;  %2466 = vmax.xlane.f32.xlu1 %v7497_v28  ;;  %v2688_v47 = vmul.f32 1.442695, %v2534_v57 }
 0x3b7   : > { %v7600_v6 = vpop.xlane.xlu1 %2322  ;;  %v7602_v23 = vpop.xlane.xlu0 %2316 }
 0x3b8   : > { %5922 = vpow2.f32 %v2694_v22  ;;  %5525 = vmatpush3.bf16.xpose.msra.mxu0 %v3152_v60  ;;  %v3151_v60 = vpack.c.bf16 %v7613_v58, %v7607_v17 }
 0x3b9   : > { %5526 = vmatprep.subr.bf16.mxu0 %v9251_v4  ;;  %v7619_v16 = vpop.eup %5912  ;;  %5924 = vpow2.f32 %v2690_v52  ;;  %v2686_v52 = vmul.f32 1.442695, %v2533_v34  ;;  %v2531_v34 = vsub.f32 %v7206_v14, %v7487_v1  ;;  %v2530_v14 = vsub.f32 %v7201_v12, %v7477_v39 }
 0x3ba   : > { %2456 = vmax.xlane.f32.xlu0 %v7432_v43  ;;  %2462 = vmax.xlane.f32.xlu1 %v7513_v32  ;;  %9297 = vst [vmem:[#allocation121_spill] sm:$0xff] %v7619_v16  ;;  %v7631_v32 = vpop.f32.mrf.mxu1  ;;  %5926 = vpow2.f32 %v2688_v47  ;;  %v2529_v39 = vsub.f32 %v7210_v15, %v7505_v40  ;;  %v9308_v15 = vld [vmem:[#allocation95_spill] sm:$0xff] }
 0x3bb   : > { %v7615_v19 = vpop.xlane.xlu1 %2318  ;;  %v7617_v20 = vpop.xlane.xlu0 %2328  ;;  %9299 = vst [vmem:[#allocation123_spill] sm:$0xff] %v7631_v32  ;;  %5928 = vpow2.f32 %v2686_v52  ;;  %v2682_v1 = vmul.f32 1.442695, %v2531_v34  ;;  %v2680_v12 = vmul.f32 1.442695, %v2530_v14 }
 0x3bd   : > { %v7621_v22 = vpop.eup %5914 }
 0x3be   : > { %9298 = vst [vmem:[#allocation122_spill] sm:$0xff] %v7621_v22  ;;  %2452 = vmax.xlane.f32.xlu0 %v7447_v9  ;;  %2458 = vmax.xlane.f32.xlu1 %v7457_v2  ;;  %v3163_v45 = vpack.c.bf16 %v7621_v22, %v7619_v16  ;;  %v7641_v18 = vpop.eup %5916  ;;  %v7645_v22 = vpop.f32.mrf.mxu1 }
 0x3bf   : > { %v7633_v28 = vpop.xlane.xlu1 %2330  ;;  %v7635_v57 = vpop.xlane.xlu0 %2324  ;;  %9300 = vst [vmem:[#allocation124_spill] sm:$0xff] %v7645_v22 }
 0x3c0   : > { %5527 = vmatpush3.bf16.xpose.msra.mxu0 %v3151_v60  ;;  %5539 = vmatpush3.bf16.xpose.msra.mxu1 %v3163_v45  ;;  %v7647_v16 = vpop.eup %5918  ;;  %v2684_v45 = vmul.f32 1.442695, %v2532_v11  ;;  %v7665_v9 = vpop.f32.mrf.mxu1 }
 0x3c1   : > { %5528 = vmatprep.subr.bf16.mxu0 %v9251_v4  ;;  %5540 = vmatprep.subr.bf16.mxu1 %v9251_v4  ;;  %v7653_v25 = vpop.eup %5920  ;;  %9303 = vst [vmem:[#allocation127_spill] sm:$0xff] %v7665_v9 }
 0x3c2   : > { %2448 = vmax.xlane.f32.xlu0 %v7391_v29  ;;  %2454 = vmax.xlane.f32.xlu1 %v7465_v48  ;;  %9301 = vst [vmem:[#allocation125_spill] sm:$0xff] %v7653_v25  ;;  %v3150_v48 = vpack.c.bf16 %v7647_v16, %v7641_v18  ;;  %5930 = vpow2.f32 %v2684_v45  ;;  %v7677_v52 = vpop.f32.mrf.mxu1 }
 0x3c3   : > { %v7649_v47 = vpop.xlane.xlu1 %2326  ;;  %v7651_v8 = vpop.xlane.xlu0 %2336  ;;  %9304 = vst [vmem:[#allocation128_spill] sm:$0xff] %v7677_v52  ;;  %5932 = vpow2.f32 %v2682_v1  ;;  %v9307_v1 = vld [vmem:[#allocation97_spill] sm:$0xff] }
 0x3c4   : > { %v7692_v34 = vpop.f32.mrf.mxu1  ;;  %5934 = vpow2.f32 %v2680_v12  ;;  %v9309_v40 = vpack.c.bf16 %v9307_v1, %v9308_v15 }
 0x3c5   : > { %v7655_v60 = vpop.eup %5922  ;;  %9306 = vst [vmem:[#allocation130_spill] sm:$0xff] %v7692_v34 }
 0x3c6   : > { %9302 = vst [vmem:[#allocation126_spill] sm:$0xff] %v7655_v60  ;;  %2444 = vmax.xlane.f32.xlu0 %v7400_v44  ;;  %2450 = vmax.xlane.f32.xlu1 %v7410_v50  ;;  %v3162_v2 = vpack.c.bf16 %v7655_v60, %v7653_v25  ;;  %v7679_v60 = vpop.eup %5924  ;;  %v7704_v12 = vpop.f32.mrf.mxu1 }
 0x3c7   : > { %v7667_v43 = vpop.xlane.xlu1 %2338  ;;  %v7669_v11 = vpop.xlane.xlu0 %2332  ;;  %9305 = vst [vmem:[#allocation129_spill] sm:$0xff] %v7679_v60  ;;  %9310 = vst [vmem:[#allocation97_spill] sm:$0xff] %v7704_v12 }
 0x3c8   : > { %5529 = vmatpush3.bf16.xpose.msra.mxu0 %v3150_v48  ;;  %5541 = vmatpush3.bf16.xpose.msra.mxu1 %v3162_v2  ;;  %v7684_v2 = vpop.eup %5926 }
 0x3c9   : > { %5530 = vmatprep.subr.bf16.mxu0 %v9251_v4  ;;  %5542 = vmatprep.subr.bf16.mxu1 %v9251_v4  ;;  %v3161_v45 = vpack.c.bf16 %v7679_v60, %v7684_v2 }
 0x3ca   : > { %2480 = vmax.xlane.f32.xlu0 %v7542_v24  ;;  %2446 = vmax.xlane.f32.xlu1 %v7420_v54 }
 0x3cb   : > { %v7681_v25 = vpop.xlane.xlu1 %2334  ;;  %v2345_v62 = vpop.xlane.xlu0 %2344 }
 0x3cc   : > { %v2554_v48 = vsub.f32 %v7274_v35, %v2345_v62  ;;  %v2528_v35 = vsub.f32 %v7204_v13, %v7489_v51  ;;  %v7706_v13 = vpop.eup %5928 }
 0x3cd   : > { %9311 = vst [vmem:[#allocation95_spill] sm:$0xff] %v7706_v13 }
 0x3ce   : > { %2488 = vmax.xlane.f32.xlu0 %v7598_v33  ;;  %2482 = vmax.xlane.f32.xlu1 %v7573_v3  ;;  %v2728_v24 = vmul.f32 1.442695, %v2554_v48  ;;  %v2678_v3 = vmul.f32 1.442695, %v2529_v39  ;;  %v2676_v51 = vmul.f32 1.442695, %v2528_v35 }
 0x3cf   : > { %v2347_v54 = vpop.xlane.xlu1 %2346  ;;  %v2341_v14 = vpop.xlane.xlu0 %2340  ;;  %v9312_v48 = vld [vmem:[#allocation52_spill] sm:$0xff]  ;;  %v9316_v35 = vld [vmem:[#allocation99_spill] sm:$0xff] }
 0x3d0   : > { %v2555_v62 = vsub.f32 %v7280_v27, %v2347_v54  ;;  %5531 = vmatpush3.bf16.xpose.msra.mxu0 %v9309_v40  ;;  %5543 = vmatpush3.bf16.xpose.msra.mxu1 %v3161_v45  ;;  %5936 = vpow2.f32 %v2728_v24  ;;  %v2552_v45 = vsub.f32 %v9312_v48, %v2341_v14  ;;  %v9313_v40 = vld [vmem:[#allocation54_spill] sm:$0xff]  ;;  %v7712_v39 = vpop.eup %5930 }
 0x3d1   : > { %5532 = vmatprep.subr.bf16.mxu0 %v9251_v4  ;;  %5544 = vmatprep.subr.bf16.mxu1 %v9251_v4  ;;  %9314 = vst [vmem:[#allocation52_spill] sm:$0xff] %v7712_v39  ;;  %v3160_v24 = vpack.c.bf16 %v7706_v13, %v7712_v39  ;;  %v9319_v48 = vld [vmem:[#allocation50_spill] sm:$0xff] }
 0x3d2   : > { %v2730_v33 = vmul.f32 1.442695, %v2555_v62  ;;  %2484 = vmax.xlane.f32.xlu0 %v7611_v61  ;;  %2490 = vmax.xlane.f32.xlu1 %v7631_v32  ;;  %v7718_v61 = vpop.f32.mrf.mxu1  ;;  %v2724_v14 = vmul.f32 1.442695, %v2552_v45  ;;  %v7737_v45 = vpop.eup %5932 }
 0x3d3   : > { %v2343_v27 = vpop.xlane.xlu1 %2342  ;;  %v7708_v54 = vpop.xlane.xlu0 %2352  ;;  %9315 = vst [vmem:[#allocation54_spill] sm:$0xff] %v7718_v61 }
 0x3d4   : > { %5938 = vpow2.f32 %v2730_v33  ;;  %v2553_v60 = vsub.f32 %v9313_v40, %v2343_v27  ;;  %v9317_v27 = vpack.c.bf16 %v7445_v42, %v9316_v35  ;;  %v2551_v40 = vsub.f32 %v9319_v48, %v7667_v43  ;;  %v7747_v43 = vpop.eup %5934 }
 0x3d5   : > { %5940 = vpow2.f32 %v2678_v3  ;;  %v9318_v3 = vld [vmem:[#allocation38_spill] sm:$0xff] }
 0x3d6   : > { %v2726_v62 = vmul.f32 1.442695, %v2553_v60  ;;  %2496 = vmax.xlane.f32.xlu0 %v7665_v9  ;;  %2486 = vmax.xlane.f32.xlu1 %v7645_v22  ;;  %5942 = vpow2.f32 %v2676_v51  ;;  %v2524_v60 = vsub.f32 %v9318_v3, %v7558_v56  ;;  %v7735_v51 = vpop.f32.mrf.mxu1  ;;  %v9322_v22 = vld [vmem:[#allocation48_spill] sm:$0xff]  ;;  %v2722_v48 = vmul.f32 1.442695, %v2551_v40 }
 0x3d7   : > { %v7720_v32 = vpop.xlane.xlu1 %2354  ;;  %v7722_v33 = vpop.xlane.xlu0 %2360  ;;  %9320 = vst [vmem:[#allocation99_spill] sm:$0xff] %v7735_v51  ;;  %v2550_v13 = vsub.f32 %v9322_v22, %v7651_v8  ;;  %v9324_v22 = vld [vmem:[#allocation26_spill] sm:$0xff]  ;;  %v9325_v8 = vld [vmem:[#allocation24_spill] sm:$0xff] }
 0x3d8   : > { %5533 = vmatpush3.bf16.xpose.msra.mxu0 %v9317_v27  ;;  %5545 = vmatpush3.bf16.xpose.msra.mxu1 %v3160_v24  ;;  %5944 = vpow2.f32 %v2726_v62  ;;  %v9321_v24 = vld [vmem:[#allocation39_spill] sm:$0xff]  ;;  %v2668_v62 = vmul.f32 1.442695, %v2524_v60 }
 0x3d9   : > { %5546 = vmatprep.subr.bf16.mxu1 %v9251_v4  ;;  %5558 = vmatprep.subr.bf16.mxu0 %v9251_v4  ;;  %v2525_v27 = vsub.f32 %v9321_v24, %v7575_v59  ;;  %5946 = vpow2.f32 %v2724_v14  ;;  %v7753_v59 = vpop.f32.mrf.mxu1  ;;  %v9326_v14 = vpack.c.bf16 %v9324_v22, %v9325_v8  ;;  %v2720_v40 = vmul.f32 1.442695, %v2550_v13 }
 0x3da   : > { %2492 = vmax.xlane.f32.xlu0 %v7677_v52  ;;  %2498 = vmax.xlane.f32.xlu1 %v7692_v34  ;;  %v3159_v52 = vpack.c.bf16 %v7737_v45, %v7747_v43  ;;  %9323 = vst [vmem:[#allocation38_spill] sm:$0xff] %v7753_v59  ;;  %5948 = vpow2.f32 %v2668_v62  ;;  %v9331_v62 = vld [vmem:[#allocation49_spill] sm:$0xff] }
 0x3db   : > { %v7741_v56 = vpop.xlane.xlu1 %2362  ;;  %v7743_v3 = vpop.xlane.xlu0 %2356  ;;  %v2670_v24 = vmul.f32 1.442695, %v2525_v27  ;;  %5950 = vpow2.f32 %v2722_v48  ;;  %v9329_v27 = vld [vmem:[#allocation51_spill] sm:$0xff]  ;;  %v2548_v48 = vsub.f32 %v9331_v62, %v7669_v11  ;;  %v9333_v62 = vld [vmem:[#allocation73_spill] sm:$0xff] }
 0x3dc   : > { %v2549_v39 = vsub.f32 %v9329_v27, %v7681_v25  ;;  %v7790_v27 = vpop.f32.mrf.mxu1 }
 0x3dd   : > { %v7762_v60 = vpop.eup %5936  ;;  %5952 = vpow2.f32 %v2670_v24 }
 0x3de   : > { %2504 = vmax.xlane.f32.xlu0 %v7718_v61  ;;  %2494 = vmax.xlane.f32.xlu1 %v7704_v12  ;;  %9327 = vst [vmem:[#allocation50_spill] sm:$0xff] %v7762_v60  ;;  %5954 = vpow2.f32 %v2720_v40 }
 0x3df   : > { %v7755_v9 = vpop.xlane.xlu1 %2358  ;;  %v7757_v34 = vpop.xlane.xlu0 %2368  ;;  %5535 = vmatmul.mubr.bf16.vlgmr.msra.gmra.mxu0 %v9326_v14  ;;  %v2718_v14 = vmul.f32 1.442695, %v2549_v39  ;;  %v9335_v39 = vld [vmem:[#allocation46_spill] sm:$0xff] }
 0x3e0   : > { %5547 = vmatpush3.bf16.xpose.msra.mxu1 %v3159_v52  ;;  %5574 = vmatprep.mubr.msk.bf16.mxu0 %vm6676_vm1, %v9251_v4 }
 0x3e1   : > { %v7766_v12 = vpop.eup %5938  ;;  %5548 = vmatprep.subr.bf16.mxu1 %v9251_v4  ;;  %5956 = vpow2.f32 %v2718_v14 }
 0x3e2   : > { %9328 = vst [vmem:[#allocation39_spill] sm:$0xff] %v7766_v12  ;;  %2476 = vmax.xlane.f32.xlu0 %v7554_v26  ;;  %2506 = vmax.xlane.f32.xlu1 %v7753_v59  ;;  %v3171_v13 = vpack.c.bf16 %v7766_v12, %v7762_v60  ;;  %v7775_v52 = vpop.eup %5940 }
 0x3e3   : > { %9330 = vst [vmem:[#allocation48_spill] sm:$0xff] %v7775_v52  ;;  %v7777_v22 = vpop.xlane.xlu1 %2370  ;;  %v7779_v8 = vpop.xlane.xlu0 %2364 }
 0x3e4   : > { %5559 = vmatpush3.bf16.xpose.msra.mxu0 %v3171_v13  ;;  %v7783_v25 = vpop.eup %5942  ;;  %v2716_v13 = vmul.f32 1.442695, %v2548_v48 }
 0x3e5   : > { %5560 = vmatprep.subr.bf16.mxu0 %v9251_v4  ;;  %v3158_v24 = vpack.c.bf16 %v7775_v52, %v7783_v25  ;;  %v7792_v12 = vpop.eup %5944 }
 0x3e6   : > { %2500 = vmax.xlane.f32.xlu0 %v7735_v51  ;;  %2478 = vmax.xlane.f32.xlu1 %v7583_v55  ;;  %9332 = vst [vmem:[#allocation26_spill] sm:$0xff] %v7792_v12  ;;  %v7797_v26 = vpop.eup %5946  ;;  %v2547_v55 = vsub.f32 %v9335_v39, %v7633_v28  ;;  %5958 = vpow2.f32 %v2716_v13 }
 0x3e7   : > { %v7794_v40 = vpop.xlane.xlu1 %2366  ;;  %v2377_v11 = vpop.xlane.xlu0 %2376  ;;  %9334 = vst [vmem:[#allocation24_spill] sm:$0xff] %v7797_v26  ;;  %v3170_v51 = vpack.c.bf16 %v7792_v12, %v7797_v26 }
 0x3e8   : > { %v2570_v60 = vsub.f32 %v9333_v62, %v2377_v11  ;;  %5549 = vmatpush3.bf16.xpose.msra.mxu1 %v3158_v24  ;;  %v9336_v24 = vld [vmem:[#allocation44_spill] sm:$0xff]  ;;  %v5949_v28 = vpop.eup %5948 }
 0x3e9   : > { %5550 = vmatprep.subr.bf16.mxu1 %v9251_v4  ;;  %v2546_v11 = vsub.f32 %v9336_v24, %v7617_v20  ;;  %v9337_v62 = vld [vmem:[#allocation76_spill] sm:$0xff]  ;;  %v9340_v24 = vpack.c.bf16 %v7530_v49, %v7526_v0 }
 0x3ea   : > { %2892 = vadd.xlane.f32.xlu0 %v9316_v35  ;;  %2502 = vmax.xlane.f32.xlu1 %v7790_v27  ;;  %v2760_v59 = vmul.f32 1.442695, %v2570_v60  ;;  %v2714_v35 = vmul.f32 1.442695, %v2547_v55  ;;  %v7814_v60 = vpop.eup %5950 }
 0x3eb   : > { %v2379_v48 = vpop.xlane.xlu1 %2378  ;;  %v7806_v61 = vpop.xlane.xlu0 %2348  ;;  %9338 = vst [vmem:[#allocation51_spill] sm:$0xff] %v7814_v60  ;;  %v2712_v13 = vmul.f32 1.442695, %v2546_v11 }
 0x3ec   : > { %v2571_v52 = vsub.f32 %v9337_v62, %v2379_v48  ;;  %5561 = vmatpush3.bf16.xpose.msra.mxu0 %v3170_v51  ;;  %5960 = vpow2.f32 %v2760_v59  ;;  %v5953_v20 = vpop.eup %5952  ;;  %v9339_v48 = vld [vmem:[#allocation75_spill] sm:$0xff]  ;;  %v9342_v62 = vld [vmem:[#allocation45_spill] sm:$0xff] }
 0x3ed   : > { %5562 = vmatprep.subr.bf16.mxu0 %v9251_v4  ;;  %v7822_v55 = vpop.eup %5954 }
 0x3ee   : > { %v2762_v14 = vmul.f32 1.442695, %v2571_v52  ;;  %2896 = vadd.xlane.f32.xlu0 %v9308_v15  ;;  %2894 = vadd.xlane.f32.xlu1 %v7445_v42  ;;  %v9341_v42 = vld [vmem:[#allocation47_spill] sm:$0xff]  ;;  %v3169_v59 = vpack.c.bf16 %v7814_v60, %v7822_v55  ;;  %v7839_v60 = vpop.eup %5956 }
 0x3ef   : > { %v7816_v39 = vpop.xlane.xlu1 %2350  ;;  %v2373_v12 = vpop.xlane.xlu0 %2372  ;;  %v2545_v15 = vsub.f32 %v9341_v42, %v7649_v47  ;;  %v9344_v47 = vld [vmem:[#allocation70_spill] sm:$0xff] }
 0x3f0   : > { %5962 = vpow2.f32 %v2762_v14  ;;  %v2568_v51 = vsub.f32 %v9339_v48, %v2373_v12  ;;  %5551 = vmatpush3.bf16.xpose.msra.mxu1 %v9340_v24  ;;  %v2544_v14 = vsub.f32 %v9342_v62, %v7635_v57  ;;  %v9343_v48 = vld [vmem:[#allocation78_spill] sm:$0xff]  ;;  %v2567_v42 = vsub.f32 %v9344_v47, %v7777_v22 }
 0x3f1   : > { %5552 = vmatprep.subr.bf16.mxu1 %v9251_v4  ;;  %5964 = vpow2.f32 %v2714_v35  ;;  %v2710_v35 = vmul.f32 1.442695, %v2545_v15 }
 0x3f2   : > { %2926 = vadd.xlane.f32.xlu0 %v5953_v20  ;;  %2924 = vadd.xlane.f32.xlu1 %v5949_v28  ;;  %v2756_v52 = vmul.f32 1.442695, %v2568_v51  ;;  %5966 = vpow2.f32 %v2712_v13  ;;  %v3156_v51 = vpack.c.bf16 %v5953_v20, %v5949_v28 }
 0x3f3   : > { %v2375_v11 = vpop.xlane.xlu1 %2374  ;;  %v7829_v12 = vpop.xlane.xlu0 %2400 }
 0x3f4   : > { %v2569_v24 = vsub.f32 %v9343_v48, %v2375_v11  ;;  %5563 = vmatpush3.bf16.xpose.msra.mxu0 %v3169_v59  ;;  %5968 = vpow2.f32 %v2756_v52  ;;  %v2708_v59 = vmul.f32 1.442695, %v2544_v14  ;;  %v9345_v11 = vld [vmem:[#allocation67_spill] sm:$0xff]  ;;  %v7847_v22 = vpop.eup %5958 }
 0x3f5   : > { %5564 = vmatprep.subr.bf16.mxu0 %v9251_v4  ;;  %v2566_v15 = vsub.f32 %v9345_v11, %v7757_v34  ;;  %v3168_v28 = vpack.c.bf16 %v7839_v60, %v7847_v22  ;;  %v9347_v34 = vld [vmem:[#allocation40_spill] sm:$0xff] }
 0x3f6   : > { %v2758_v26 = vmul.f32 1.442695, %v2569_v24  ;;  %2928 = vadd.xlane.f32.xlu0 %v7526_v0  ;;  %2898 = vadd.xlane.f32.xlu1 %v9307_v1  ;;  %v9346_v0 = vld [vmem:[#allocation42_spill] sm:$0xff]  ;;  %v2754_v1 = vmul.f32 1.442695, %v2567_v42  ;;  %v9351_v42 = vld [vmem:[#allocation25_spill] sm:$0xff] }
 0x3f7   : > { %v7841_v13 = vpop.xlane.xlu0 %2396  ;;  %v7843_v57 = vpop.xlane.xlu1 %2402  ;;  %v2543_v62 = vsub.f32 %v9346_v0, %v7600_v6  ;;  %v2752_v6 = vmul.f32 1.442695, %v2566_v15  ;;  %v9355_v0 = vld [vmem:[#allocation43_spill] sm:$0xff] }
 0x3f8   : > { %5970 = vpow2.f32 %v2758_v26  ;;  %5553 = vmatpush3.bf16.xpose.msra.mxu1 %v3156_v51  ;;  %v2542_v26 = vsub.f32 %v9347_v34, %v7587_v30  ;;  %v9352_v51 = vld [vmem:[#allocation23_spill] sm:$0xff] }
 0x3f9   : > { %5578 = vmatprep.subr.bf16.mxu1 %v9251_v4  ;;  %5972 = vpow2.f32 %v2710_v35  ;;  %v7862_v14 = vpop.eup %5960 }
 0x3fa   : > { %2930 = vadd.xlane.f32.xlu0 %v7530_v49  ;;  %2900 = vadd.xlane.f32.xlu1 %v7641_v18  ;;  %9348 = vst [vmem:[#allocation49_spill] sm:$0xff] %v7862_v14  ;;  %5974 = vpow2.f32 %v2708_v59  ;;  %v2706_v49 = vmul.f32 1.442695, %v2543_v62  ;;  %v9350_v18 = vld [vmem:[#allocation72_spill] sm:$0xff]  ;;  %v2704_v47 = vmul.f32 1.442695, %v2542_v26  ;;  %v9353_v59 = vpack.c.bf16 %v9351_v42, %v9352_v51 }
 0x3fb   : > { %v7858_v20 = vpop.xlane.xlu0 %2392  ;;  %v7860_v52 = vpop.xlane.xlu1 %2398  ;;  %5976 = vpow2.f32 %v2754_v1  ;;  %v2565_v24 = vsub.f32 %v9350_v18, %v7794_v40  ;;  %v9354_v40 = vld [vmem:[#allocation69_spill] sm:$0xff]  ;;  %v2541_v62 = vsub.f32 %v9355_v0, %v7615_v19  ;;  %v9362_v0 = vld [vmem:[#allocation59_spill] sm:$0xff] }
 0x3fc   : > { %5565 = vmatpush3.bf16.xpose.msra.mxu0 %v3168_v28  ;;  %5978 = vpow2.f32 %v2752_v6  ;;  %v9356_v28 = vld [vmem:[#allocation41_spill] sm:$0xff] }
 0x3fd   : > { %v7864_v48 = vpop.eup %5962  ;;  %5566 = vmatprep.subr.bf16.mxu0 %v9251_v4  ;;  %5980 = vpow2.f32 %v2706_v49  ;;  %v2750_v1 = vmul.f32 1.442695, %v2565_v24  ;;  %v2540_v34 = vsub.f32 %v9356_v28, %v7602_v23  ;;  %v9360_v42 = vld [vmem:[#allocation61_spill] sm:$0xff] }
 0x3fe   : > { %9349 = vst [vmem:[#allocation73_spill] sm:$0xff] %v7864_v48  ;;  %2936 = vadd.xlane.f32.xlu0 %v7747_v43  ;;  %2902 = vadd.xlane.f32.xlu1 %v7647_v16  ;;  %v3179_v30 = vpack.c.bf16 %v7864_v48, %v7862_v14  ;;  %v7873_v35 = vpop.eup %5964  ;;  %v2564_v43 = vsub.f32 %v9354_v40, %v7779_v8  ;;  %5982 = vpow2.f32 %v2704_v47 }
 0x3ff   : > { %5555 = vmatmul.mubr.bf16.vlgmr.msra.gmra.mxu1 %v9353_v59  ;;  %v7878_v11 = vpop.xlane.xlu0 %2388  ;;  %v7880_v15 = vpop.xlane.xlu1 %2394  ;;  %5984 = vpow2.f32 %v2750_v1  ;;  %v2700_v47 = vmul.f32 1.442695, %v2540_v34  ;;  %v2562_v51 = vsub.f32 %v9360_v42, %v7722_v33  ;;  %v9363_v1 = vld [vmem:[#allocation82_spill] sm:$0xff]  ;;  %v9366_v42 = vld [vmem:[#allocation80_spill] sm:$0xff] }
 0x400   : > { %5579 = vmatpush3.bf16.xpose.msra.mxu1 %v3179_v30  ;;  %5594 = vmatprep.mubr.msk.bf16.mxu1 %vm6676_vm1, %v9251_v4  ;;  %v7886_v16 = vpop.eup %5966  ;;  %v2748_v18 = vmul.f32 1.442695, %v2564_v43 }
 0x401   : > { %5580 = vmatprep.subr.bf16.mxu1 %v9251_v4  ;;  %v3167_v8 = vpack.c.bf16 %v7873_v35, %v7886_v16  ;;  %v7899_v49 = vpop.eup %5968 }
 0x402   : > { %2914 = vadd.xlane.f32.xlu0 %v7556_v31  ;;  %2904 = vadd.xlane.f32.xlu1 %v7607_v17  ;;  %9357 = vst [vmem:[#allocation46_spill] sm:$0xff] %v7899_v49  ;;  %v9359_v31 = vld [vmem:[#allocation64_spill] sm:$0xff]  ;;  %v2702_v17 = vmul.f32 1.442695, %v2541_v62  ;;  %5986 = vpow2.f32 %v2748_v18  ;;  %v9365_v18 = vld [vmem:[#allocation62_spill] sm:$0xff] }
 0x403   : > { %v2385_v26 = vpop.xlane.xlu0 %2384  ;;  %v7897_v6 = vpop.xlane.xlu1 %2390  ;;  %v2563_v24 = vsub.f32 %v9359_v31, %v7741_v56  ;;  %v9361_v56 = vld [vmem:[#allocation56_spill] sm:$0xff] }
 0x404   : > { %5567 = vmatpush3.bf16.xpose.msra.mxu0 %v3167_v8  ;;  %v2574_v43 = vsub.f32 %v9361_v56, %v2385_v26  ;;  %5988 = vpow2.f32 %v2702_v17  ;;  %v2580_v8 = vsub.f32 %v9363_v1, %v7841_v13  ;;  %v2744_v26 = vmul.f32 1.442695, %v2562_v51 }
 0x405   : > { %v7901_v19 = vpop.eup %5970  ;;  %5568 = vmatprep.subr.bf16.mxu0 %v9251_v4  ;;  %5990 = vpow2.f32 %v2700_v47  ;;  %v9369_v47 = vld [vmem:[#allocation66_spill] sm:$0xff] }
 0x406   : > { %9358 = vst [vmem:[#allocation44_spill] sm:$0xff] %v7901_v19  ;;  %2916 = vadd.xlane.f32.xlu0 %v7516_v41  ;;  %2906 = vadd.xlane.f32.xlu1 %v7613_v58  ;;  %v3178_v23 = vpack.c.bf16 %v7901_v19, %v7899_v49  ;;  %v7910_v30 = vpop.eup %5972  ;;  %v2746_v58 = vmul.f32 1.442695, %v2563_v24  ;;  %v2768_v17 = vmul.f32 1.442695, %v2574_v43  ;;  %v2561_v51 = vsub.f32 %v9369_v47, %v7755_v9  ;;  %v9371_v9 = vld [vmem:[#allocation88_spill] sm:$0xff] }
 0x407   : > { %v2381_v59 = vpop.xlane.xlu0 %2380  ;;  %v2387_v40 = vpop.xlane.xlu1 %2386 }
 0x408   : > { %v2572_v62 = vsub.f32 %v9362_v0, %v2381_v59  ;;  %5581 = vmatpush3.bf16.xpose.msra.mxu1 %v3178_v23  ;;  %v7916_v41 = vpop.eup %5974  ;;  %v2575_v31 = vsub.f32 %v9365_v18, %v2387_v40  ;;  %v9367_v59 = vld [vmem:[#allocation65_spill] sm:$0xff]  ;;  %v2780_v40 = vmul.f32 1.442695, %v2580_v8  ;;  %v2581_v8 = vsub.f32 %v9371_v9, %v7860_v52 }
 0x409   : > { %5582 = vmatprep.subr.bf16.mxu1 %v9251_v4  ;;  %v3166_v33 = vpack.c.bf16 %v7910_v30, %v7916_v41  ;;  %v7925_v34 = vpop.eup %5976 }
 0x40a   : > { %v2764_v28 = vmul.f32 1.442695, %v2572_v62  ;;  %2918 = vadd.xlane.f32.xlu0 %v7520_v38  ;;  %2908 = vadd.xlane.f32.xlu1 %v7590_v36  ;;  %9364 = vst [vmem:[#allocation76_spill] sm:$0xff] %v7925_v34  ;;  %v7930_v38 = vpop.eup %5978  ;;  %v9370_v62 = vld [vmem:[#allocation63_spill] sm:$0xff]  ;;  %v2770_v1 = vmul.f32 1.442695, %v2575_v31 }
 0x40b   : > { %v2409_v24 = vpop.xlane.xlu0 %2408  ;;  %v2383_v23 = vpop.xlane.xlu1 %2382  ;;  %9368 = vst [vmem:[#allocation75_spill] sm:$0xff] %v7930_v38  ;;  %v3177_v43 = vpack.c.bf16 %v7925_v34, %v7930_v38  ;;  %v9374_v31 = vld [vmem:[#allocation79_spill] sm:$0xff]  ;;  %v2782_v47 = vmul.f32 1.442695, %v2581_v8 }
 0x40c   : > { %5992 = vpow2.f32 %v2764_v28  ;;  %v2586_v13 = vsub.f32 %v9366_v42, %v2409_v24  ;;  %v2573_v56 = vsub.f32 %v9367_v59, %v2383_v23  ;;  %5569 = vmatpush3.bf16.xpose.msra.mxu0 %v3166_v33  ;;  %v7933_v36 = vpop.eup %5980  ;;  %v2582_v59 = vsub.f32 %v9374_v31, %v7829_v12 }
 0x40d   : > { %5994 = vpow2.f32 %v2746_v58  ;;  %5570 = vmatprep.subr.bf16.mxu0 %v9251_v4  ;;  %v2560_v58 = vsub.f32 %v9370_v62, %v7743_v3  ;;  %v7943_v18 = vpop.eup %5982  ;;  %v9379_v62 = vld [vmem:[#allocation81_spill] sm:$0xff] }
 0x40e   : > { %v2766_v0 = vmul.f32 1.442695, %v2573_v56  ;;  %2920 = vadd.xlane.f32.xlu0 %v7491_v53  ;;  %2910 = vadd.xlane.f32.xlu1 %v7585_v5  ;;  %5996 = vpow2.f32 %v2744_v26  ;;  %v2792_v24 = vmul.f32 1.442695, %v2586_v13  ;;  %v9372_v53 = vld [vmem:[#allocation83_spill] sm:$0xff]  ;;  %v3165_v3 = vpack.c.bf16 %v7933_v36, %v7943_v18 }
 0x40f   : > { %v2405_v28 = vpop.xlane.xlu0 %2404  ;;  %v2411_v33 = vpop.xlane.xlu1 %2410  ;;  %5998 = vpow2.f32 %v2768_v17  ;;  %v9373_v5 = vld [vmem:[#allocation71_spill] sm:$0xff]  ;;  %v2742_v26 = vmul.f32 1.442695, %v2561_v51  ;;  %v2740_v13 = vmul.f32 1.442695, %v2560_v58  ;;  %v9380_v58 = vld [vmem:[#allocation58_spill] sm:$0xff] }
 0x410   : > { %v2587_v23 = vsub.f32 %v9372_v53, %v2411_v33  ;;  %5583 = vmatpush3.bf16.xpose.msra.mxu1 %v3177_v43  ;;  %v2576_v42 = vsub.f32 %v9373_v5, %v7878_v11  ;;  %6000 = vpow2.f32 %v2766_v0  ;;  %v7957_v17 = vpop.eup %5984  ;;  %v9376_v0 = vld [vmem:[#allocation77_spill] sm:$0xff]  ;;  %v9377_v43 = vld [vmem:[#allocation84_spill] sm:$0xff]  ;;  %v2784_v33 = vmul.f32 1.442695, %v2582_v59 }
 0x411   : > { %5584 = vmatprep.subr.bf16.mxu1 %v9251_v4  ;;  %6002 = vpow2.f32 %v2780_v40  ;;  %9375 = vst [vmem:[#allocation47_spill] sm:$0xff] %v7957_v17  ;;  %v2577_v51 = vsub.f32 %v9376_v0, %v7897_v6  ;;  %v7964_v40 = vpop.eup %5986 }
 0x412   : > { %v2794_v52 = vmul.f32 1.442695, %v2587_v23  ;;  %2922 = vadd.xlane.f32.xlu0 %v7495_v63  ;;  %2912 = vadd.xlane.f32.xlu1 %v7561_v37  ;;  %6004 = vpow2.f32 %v2770_v1  ;;  %9378 = vst [vmem:[#allocation45_spill] sm:$0xff] %v7964_v40  ;;  %v2772_v63 = vmul.f32 1.442695, %v2576_v42  ;;  %v2584_v37 = vsub.f32 %v9379_v62, %v2405_v28  ;;  %v7972_v9 = vpop.eup %5988  ;;  %v9381_v23 = vld [vmem:[#allocation55_spill] sm:$0xff] }
 0x413   : > { %v7959_v11 = vpop.xlane.xlu0 %2416  ;;  %v2407_v56 = vpop.xlane.xlu1 %2406  ;;  %6006 = vpow2.f32 %v2792_v24  ;;  %v2559_v1 = vsub.f32 %v9380_v58, %v7720_v32  ;;  %v3176_v6 = vpack.c.bf16 %v7957_v17, %v7964_v40  ;;  %v2558_v5 = vsub.f32 %v9381_v23, %v7708_v54 }
 0x414   : > { %v2585_v12 = vsub.f32 %v9377_v43, %v2407_v56  ;;  %5571 = vmatpush3.bf16.xpose.msra.mxu0 %v3165_v3  ;;  %6008 = vpow2.f32 %v2794_v52  ;;  %v7978_v28 = vpop.eup %5990  ;;  %v2774_v32 = vmul.f32 1.442695, %v2577_v51  ;;  %v9382_v3 = vld [vmem:[#allocation68_spill] sm:$0xff]  ;;  %v2788_v31 = vmul.f32 1.442695, %v2584_v37 }
 0x415   : > { %5572 = vmatprep.subr.bf16.mxu0 %v9251_v4  ;;  %6010 = vpow2.f32 %v2742_v26  ;;  %v2578_v26 = vsub.f32 %v9382_v3, %v7858_v20  ;;  %v2738_v52 = vmul.f32 1.442695, %v2559_v1  ;;  %v3164_v54 = vpack.c.bf16 %v7972_v9, %v7978_v28  ;;  %v9385_v37 = vld [vmem:[#allocation60_spill] sm:$0xff] }
 0x416   : > { %6012 = vpow2.f32 %v2740_v13  ;;  %v2790_v8 = vmul.f32 1.442695, %v2585_v12  ;;  %v9383_v13 = vld [vmem:[#allocation85_spill] sm:$0xff]  ;;  %v2736_v51 = vmul.f32 1.442695, %v2558_v5  ;;  %v2557_v58 = vsub.f32 %v9385_v37, %v7816_v39 }
 0x417   : > { %v7974_v24 = vpop.xlane.xlu0 %2424  ;;  %v7976_v53 = vpop.xlane.xlu1 %2418  ;;  %6014 = vpow2.f32 %v2782_v47  ;;  %v2583_v56 = vsub.f32 %v9383_v13, %v7843_v57  ;;  %v2776_v12 = vmul.f32 1.442695, %v2578_v26  ;;  %v9386_v39 = vld [vmem:[#allocation57_spill] sm:$0xff]  ;;  %v9389_v13 = vld [vmem:[#allocation30_spill] sm:$0xff] }
 0x418   : > { %5585 = vmatpush3.bf16.xpose.msra.mxu1 %v3176_v6  ;;  %6016 = vpow2.f32 %v2772_v63  ;;  %v9384_v63 = vld [vmem:[#allocation74_spill] sm:$0xff] }
 0x419   : > { %v7982_v42 = vpop.eup %5992  ;;  %5586 = vmatprep.subr.bf16.mxu1 %v9251_v4  ;;  %6018 = vpow2.f32 %v2784_v33  ;;  %v2579_v62 = vsub.f32 %v9384_v63, %v7880_v15  ;;  %v2786_v6 = vmul.f32 1.442695, %v2583_v56  ;;  %v9390_v56 = vld [vmem:[#allocation28_spill] sm:$0xff] }
 0x41a   : > { %v7987_v59 = vpop.eup %5994  ;;  %3020 = vadd.xlane.f32.xlu1 %v7982_v42  ;;  %6020 = vpow2.f32 %v2790_v8 }
 0x41b   : > { %v7994_v47 = vpop.xlane.xlu0 %2420  ;;  %v7996_v20 = vpop.xlane.xlu1 %2426  ;;  %6022 = vpow2.f32 %v2774_v32  ;;  %v2556_v32 = vsub.f32 %v9386_v39, %v7806_v61  ;;  %v2778_v26 = vmul.f32 1.442695, %v2579_v62  ;;  %v9391_v61 = vpack.c.bf16 %v9389_v13, %v9390_v56 }
 0x41c   : > { %v7998_v0 = vpop.eup %5996  ;;  %5573 = vmatpush3.bf16.xpose.msra.mxu0 %v3164_v54  ;;  %6024 = vpow2.f32 %v2788_v31 }
 0x41d   : > { %v8000_v43 = vpop.eup %5998  ;;  %5598 = vmatprep.subr.bf16.mxu0 %v9251_v4  ;;  %6026 = vpow2.f32 %v2738_v52  ;;  %v3175_v1 = vpack.c.bf16 %v7987_v59, %v7998_v0  ;;  %v2734_v52 = vmul.f32 1.442695, %v2557_v58  ;;  %v2732_v37 = vmul.f32 1.442695, %v2556_v32 }
 0x41e   : > { %v8005_v57 = vpop.eup %6000  ;;  %3024 = vadd.xlane.f32.xlu1 %v8000_v43  ;;  %6028 = vpow2.f32 %v2736_v51 }
 0x41f   : > { %v8012_v33 = vpop.eup %6002  ;;  %3022 = vadd.xlane.f32.xlu0 %v8005_v57  ;;  %v8015_v15 = vpop.xlane.xlu0 %2432  ;;  %6030 = vpow2.f32 %v2776_v12 }
 0x420   : > { %v8017_v8 = vpop.xlane.xlu1 %2422  ;;  %v8021_v5 = vpop.eup %6004  ;;  %5587 = vmatpush3.bf16.xpose.msra.mxu1 %v3175_v1  ;;  %6032 = vpow2.f32 %v2786_v6 }
 0x421   : > { %v8025_v3 = vpop.eup %6006  ;;  %5588 = vmatprep.subr.bf16.mxu1 %v9251_v4  ;;  %6034 = vpow2.f32 %v2778_v26 }
 0x422   : > { %9387 = vst [vmem:[#allocation78_spill] sm:$0xff] %v8025_v3  ;;  %v8028_v31 = vpop.eup %6008  ;;  %3036 = vadd.xlane.f32.xlu1 %v8012_v33  ;;  %6036 = vpow2.f32 %v2734_v52 }
 0x423   : > { %9388 = vst [vmem:[#allocation70_spill] sm:$0xff] %v8028_v31  ;;  %v8031_v54 = vpop.eup %6010  ;;  %3026 = vadd.xlane.f32.xlu0 %v8021_v5  ;;  %5575 = vmatmul.mubr.bf16.vlgmr.msra.gmra.mxu0 %v9391_v61  ;;  %v8037_v51 = vpop.xlane.xlu0 %2428  ;;  %v3187_v63 = vpack.c.bf16 %v8028_v31, %v8025_v3  ;;  %6038 = vpow2.f32 %v2732_v37 }
 0x424   : > { %v8039_v12 = vpop.xlane.xlu1 %2434  ;;  %v8043_v62 = vpop.eup %6012  ;;  %5614 = vmatprep.mubr.msk.bf16.mxu0 %vm6676_vm1, %v9251_v4 }
 0x425   : > { %v8047_v58 = vpop.eup %6014  ;;  %5599 = vmatpush3.bf16.xpose.msra.mxu0 %v3187_v63  ;;  %v3174_v6 = vpack.c.bf16 %v8031_v54, %v8043_v62 }
 0x426   : > { %v8049_v1 = vpop.eup %6016  ;;  %3038 = vadd.xlane.f32.xlu1 %v8047_v58  ;;  %5600 = vmatprep.subr.bf16.mxu0 %v9251_v4 }
 0x427   : > { %v6019_v39 = vpop.eup %6018  ;;  %3028 = vadd.xlane.f32.xlu0 %v8049_v1  ;;  %v2441_v32 = vpop.xlane.xlu0 %2440 }
 0x428   : > { %v8056_v13 = vpop.xlane.xlu1 %2430  ;;  %v8058_v56 = vpop.eup %6020  ;;  %v2602_v26 = vsub.f32 %v7481_v10, %v2441_v32  ;;  %5589 = vmatpush3.bf16.xpose.msra.mxu1 %v3174_v6 }
 0x429   : > { %9392 = vst [vmem:[#allocation67_spill] sm:$0xff] %v8058_v56  ;;  %v8061_v52 = vpop.eup %6022  ;;  %5590 = vmatprep.subr.bf16.mxu1 %v9251_v4 }
 0x42a   : > { %v8064_v61 = vpop.eup %6024  ;;  %3040 = vadd.xlane.f32.xlu1 %v6019_v39  ;;  %v2824_v19 = vmul.f32 1.442695, %v2602_v26  ;;  %v9394_v26 = vld [vmem:[#allocation109_spill] sm:$0xff] }
 0x42b   : > { %9393 = vst [vmem:[#allocation42_spill] sm:$0xff] %v8064_v61  ;;  %v8066_v63 = vpop.eup %6026  ;;  %3030 = vadd.xlane.f32.xlu0 %v8061_v52  ;;  %v8069_v23 = vpop.xlane.xlu0 %2412  ;;  %v3186_v37 = vpack.c.bf16 %v8058_v56, %v8064_v61 }
 0x42c   : > { %v2443_v31 = vpop.xlane.xlu1 %2442  ;;  %v8074_v6 = vpop.eup %6028  ;;  %6040 = vpow2.f32 %v2824_v19 }
 0x42d   : > { %v2603_v10 = vsub.f32 %v7511_v46, %v2443_v31  ;;  %5601 = vmatpush3.bf16.xpose.msra.mxu0 %v3186_v37  ;;  %v8076_v32 = vpop.eup %6030  ;;  %v3173_v49 = vpack.c.bf16 %v8066_v63, %v8074_v6 }
 0x42e   : > { %5602 = vmatprep.subr.bf16.mxu0 %v9251_v4  ;;  %v6033_v56 = vpop.eup %6032 }
 0x42f   : > { %v2826_v3 = vmul.f32 1.442695, %v2603_v10  ;;  %3032 = vadd.xlane.f32.xlu0 %v8076_v32  ;;  %v2437_v48 = vpop.xlane.xlu0 %2436  ;;  %v6035_v31 = vpop.eup %6034  ;;  %v3185_v34 = vpack.c.bf16 %v6033_v56, %v6019_v39 }
 0x430   : > { %v8082_v14 = vpop.xlane.xlu1 %2414  ;;  %v2600_v46 = vsub.f32 %v9394_v26, %v2437_v48  ;;  %5591 = vmatpush3.bf16.xpose.msra.mxu1 %v3173_v49  ;;  %v8086_v37 = vpop.eup %6036  ;;  %v9395_v49 = vld [vmem:[#allocation104_spill] sm:$0xff] }
 0x431   : > { %6042 = vpow2.f32 %v2826_v3  ;;  %5592 = vmatprep.subr.bf16.mxu1 %v9251_v4  ;;  %v8091_v38 = vpop.eup %6038  ;;  %v2599_v3 = vsub.f32 %v9395_v49, %v8039_v12  ;;  %v3184_v12 = vpack.c.bf16 %v8047_v58, %v8012_v33  ;;  %v9401_v49 = vld [vmem:[#allocation27_spill] sm:$0xff] }
 0x432   : > { %v2820_v10 = vmul.f32 1.442695, %v2600_v46  ;;  %v3172_v48 = vpack.c.bf16 %v8086_v37, %v8091_v38 }
 0x433   : > { %3034 = vadd.xlane.f32.xlu0 %v6035_v31  ;;  %v8088_v17 = vpop.xlane.xlu0 %2472 }
 0x434   : > { %v2439_v61 = vpop.xlane.xlu1 %2438  ;;  %6044 = vpow2.f32 %v2820_v10 }
 0x435   : > { %v2601_v40 = vsub.f32 %v7528_v21, %v2439_v61  ;;  %5603 = vmatpush3.bf16.xpose.msra.mxu0 %v3185_v34  ;;  %v9396_v21 = vld [vmem:[#allocation100_spill] sm:$0xff]  ;;  %v2818_v34 = vmul.f32 1.442695, %v2599_v3 }
 0x436   : > { %5604 = vmatprep.subr.bf16.mxu0 %v9251_v4  ;;  %v2598_v39 = vsub.f32 %v9396_v21, %v8015_v15  ;;  %v9399_v15 = vld [vmem:[#allocation106_spill] sm:$0xff] }
 0x437   : > { %v2822_v19 = vmul.f32 1.442695, %v2601_v40  ;;  %3042 = vadd.xlane.f32.xlu0 %v6033_v56  ;;  %v8098_v26 = vpop.xlane.xlu0 %2468 }
 0x438   : > { %v2475_v46 = vpop.xlane.xlu1 %2474  ;;  %5593 = vmatpush3.bf16.xpose.msra.mxu1 %v3172_v48  ;;  %v2816_v10 = vmul.f32 1.442695, %v2598_v39  ;;  %v2597_v48 = vsub.f32 %v9399_v15, %v8056_v13  ;;  %v9403_v39 = vld [vmem:[#allocation102_spill] sm:$0xff]  ;;  %v3183_v15 = vpack.c.bf16 %v6035_v31, %v8076_v32  ;;  %v9407_v32 = vld [vmem:[#allocation91_spill] sm:$0xff] }
 0x439   : > { %6046 = vpow2.f32 %v2822_v19  ;;  %5618 = vmatprep.subr.bf16.mxu1 %v9251_v4  ;;  %v8110_v56 = vpop.eup %6040  ;;  %v2596_v13 = vsub.f32 %v9403_v39, %v8037_v51  ;;  %v9406_v51 = vld [vmem:[#allocation93_spill] sm:$0xff]  ;;  %v2594_v31 = vsub.f32 %v9407_v32, %v7974_v24 }
 0x43a   : > { %9397 = vst [vmem:[#allocation40_spill] sm:$0xff] %v8110_v56  ;;  %6048 = vpow2.f32 %v2818_v34 }
 0x43b   : > { %2932 = vadd.xlane.f32.xlu0 %v7783_v25  ;;  %v8104_v40 = vpop.xlane.xlu0 %2464  ;;  %v9400_v25 = vld [vmem:[#allocation29_spill] sm:$0xff]  ;;  %6050 = vpow2.f32 %v2816_v10 }
 0x43c   : > { %v8106_v61 = vpop.xlane.xlu1 %2470  ;;  %v9402_v3 = vpack.c.bf16 %v9400_v25, %v9401_v49 }
 0x43d   : > { %5605 = vmatpush3.bf16.xpose.msra.mxu0 %v3184_v12 }
 0x43e   : > { %v8112_v19 = vpop.eup %6042  ;;  %5606 = vmatprep.subr.bf16.mxu0 %v9251_v4 }
 0x43f   : > { %9398 = vst [vmem:[#allocation72_spill] sm:$0xff] %v8112_v19  ;;  %2938 = vadd.xlane.f32.xlu0 %v7737_v45  ;;  %5595 = vmatmul.mubr.bf16.vlgmr.msra.gmra.mxu1 %v9402_v3  ;;  %v8121_v21 = vpop.xlane.xlu0 %2460  ;;  %v3195_v58 = vpack.c.bf16 %v8112_v19, %v8110_v56  ;;  %v2814_v45 = vmul.f32 1.442695, %v2597_v48  ;;  %v2812_v3 = vmul.f32 1.442695, %v2596_v13  ;;  %v2595_v48 = vsub.f32 %v9406_v51, %v7996_v20  ;;  %v9408_v13 = vld [vmem:[#allocation112_spill] sm:$0xff] }
 0x440   : > { %v8123_v33 = vpop.xlane.xlu1 %2466  ;;  %5634 = vmatprep.mubr.msk.bf16.mxu1 %vm6676_vm1, %v9251_v4 }
 0x441   : > { %5619 = vmatpush3.bf16.xpose.msra.mxu1 %v3195_v58  ;;  %v8137_v25 = vpop.eup %6044  ;;  %6052 = vpow2.f32 %v2814_v45  ;;  %v3182_v45 = vpack.c.bf16 %v8061_v52, %v8049_v1 }
 0x442   : > { %5620 = vmatprep.subr.bf16.mxu1 %v9251_v4  ;;  %9404 = vst [vmem:[#allocation25_spill] sm:$0xff] %v8137_v25  ;;  %6054 = vpow2.f32 %v2812_v3  ;;  %v2808_v3 = vmul.f32 1.442695, %v2594_v31 }
 0x443   : > { %v8132_v34 = vpop.xlane.xlu0 %2456 }
 0x444   : > { %v8134_v12 = vpop.xlane.xlu1 %2462 }
 0x445   : > { %5607 = vmatpush3.bf16.xpose.msra.mxu0 %v3183_v15  ;;  %v2618_v15 = vsub.f32 %v9408_v13, %v8088_v17 }
 0x446   : > { %v8139_v49 = vpop.eup %6046  ;;  %5608 = vmatprep.subr.bf16.mxu0 %v9251_v4 }
 0x447   : > { %9405 = vst [vmem:[#allocation23_spill] sm:$0xff] %v8139_v49  ;;  %v3194_v10 = vpack.c.bf16 %v8139_v49, %v8137_v25  ;;  %v8146_v58 = vpop.xlane.xlu0 %2452  ;;  %v2810_v49 = vmul.f32 1.442695, %v2595_v48  ;;  %v2619_v25 = vsub.f32 %v7565_v7, %v2475_v46  ;;  %v8160_v51 = vpop.eup %6048  ;;  %v2856_v17 = vmul.f32 1.442695, %v2618_v15  ;;  %v9411_v7 = vld [vmem:[#allocation96_spill] sm:$0xff] }
 0x448   : > { %v8148_v39 = vpop.xlane.xlu1 %2458  ;;  %9409 = vst [vmem:[#allocation69_spill] sm:$0xff] %v8160_v51  ;;  %v2593_v46 = vsub.f32 %v9411_v7, %v8017_v8 }
 0x449   : > { %5621 = vmatpush3.bf16.xpose.msra.mxu1 %v3194_v10  ;;  %v8163_v10 = vpop.eup %6050  ;;  %6056 = vpow2.f32 %v2810_v49  ;;  %v2858_v48 = vmul.f32 1.442695, %v2619_v25  ;;  %v9413_v25 = vld [vmem:[#allocation117_spill] sm:$0xff] }
 0x44a   : > { %5622 = vmatprep.subr.bf16.mxu1 %v9251_v4  ;;  %9410 = vst [vmem:[#allocation43_spill] sm:$0xff] %v8163_v10  ;;  %v3193_v1 = vpack.c.bf16 %v8160_v51, %v8163_v10  ;;  %v2806_v8 = vmul.f32 1.442695, %v2593_v46 }
 0x44b   : > { %v2449_v56 = vpop.xlane.xlu0 %2448 }
 0x44c   : > { %v8156_v20 = vpop.xlane.xlu1 %2454  ;;  %v2606_v24 = vsub.f32 %v7391_v29, %v2449_v56  ;;  %v9412_v56 = vld [vmem:[#allocation92_spill] sm:$0xff] }
 0x44d   : > { %5609 = vmatpush3.bf16.xpose.msra.mxu0 %v3182_v45  ;;  %v2592_v31 = vsub.f32 %v9412_v56, %v7994_v47  ;;  %v2617_v45 = vsub.f32 %v9413_v25, %v8106_v61  ;;  %v9415_v47 = vld [vmem:[#allocation114_spill] sm:$0xff]  ;;  %v9418_v61 = vld [vmem:[#allocation89_spill] sm:$0xff] }
 0x44e   : > { %v2832_v32 = vmul.f32 1.442695, %v2606_v24  ;;  %5610 = vmatprep.subr.bf16.mxu0 %v9251_v4  ;;  %v9420_v56 = vld [vmem:[#allocation98_spill] sm:$0xff] }
 0x44f   : > { %v2445_v13 = vpop.xlane.xlu0 %2444 }
 0x450   : > { %v2451_v19 = vpop.xlane.xlu1 %2450  ;;  %6058 = vpow2.f32 %v2832_v32  ;;  %v2604_v29 = vsub.f32 %v7400_v44, %v2445_v13  ;;  %v9416_v32 = vld [vmem:[#allocation94_spill] sm:$0xff] }
 0x451   : > { %v2607_v52 = vsub.f32 %v7410_v50, %v2451_v19  ;;  %6060 = vpow2.f32 %v2808_v3  ;;  %5623 = vmatpush3.bf16.xpose.msra.mxu1 %v3193_v1  ;;  %v3181_v50 = vpack.c.bf16 %v8021_v5, %v8000_v43  ;;  %v8181_v19 = vpop.eup %6052  ;;  %v2616_v3 = vsub.f32 %v9415_v47, %v8098_v26  ;;  %v9419_v1 = vld [vmem:[#allocation86_spill] sm:$0xff] }
 0x452   : > { %6062 = vpow2.f32 %v2856_v17  ;;  %v2828_v49 = vmul.f32 1.442695, %v2604_v29  ;;  %5624 = vmatprep.subr.bf16.mxu1 %v9251_v4  ;;  %9414 = vst [vmem:[#allocation41_spill] sm:$0xff] %v8181_v19  ;;  %v2804_v17 = vmul.f32 1.442695, %v2592_v31  ;;  %v8186_v46 = vpop.eup %6054  ;;  %v2590_v29 = vsub.f32 %v9419_v1, %v7959_v11 }
 0x453   : > { %v2834_v15 = vmul.f32 1.442695, %v2607_v52  ;;  %6064 = vpow2.f32 %v2858_v48  ;;  %v8177_v24 = vpop.xlane.xlu0 %2480  ;;  %9417 = vst [vmem:[#allocation64_spill] sm:$0xff] %v8186_v46  ;;  %v2591_v48 = vsub.f32 %v9418_v61, %v7976_v53  ;;  %v2854_v43 = vmul.f32 1.442695, %v2617_v45 }
 0x454   : > { %v2447_v44 = vpop.xlane.xlu1 %2446  ;;  %6066 = vpow2.f32 %v2828_v49  ;;  %v3192_v26 = vpack.c.bf16 %v8181_v19, %v8186_v46  ;;  %v2852_v52 = vmul.f32 1.442695, %v2616_v3  ;;  %v2610_v31 = vsub.f32 %v9420_v56, %v8132_v34 }
 0x455   : > { %6068 = vpow2.f32 %v2834_v15  ;;  %v2605_v7 = vsub.f32 %v9416_v32, %v2447_v44  ;;  %5611 = vmatpush3.bf16.xpose.msra.mxu0 %v3181_v50  ;;  %v2802_v53 = vmul.f32 1.442695, %v2591_v48  ;;  %v9421_v15 = vld [vmem:[#allocation110_spill] sm:$0xff]  ;;  %v2800_v11 = vmul.f32 1.442695, %v2590_v29  ;;  %v9422_v50 = vld [vmem:[#allocation107_spill] sm:$0xff] }
 0x456   : > { %5612 = vmatprep.subr.bf16.mxu0 %v9251_v4  ;;  %6070 = vpow2.f32 %v2806_v8  ;;  %v2615_v8 = vsub.f32 %v9421_v15, %v8123_v33  ;;  %v8208_v44 = vpop.eup %6056  ;;  %v2614_v34 = vsub.f32 %v9422_v50, %v8104_v40  ;;  %v2840_v3 = vmul.f32 1.442695, %v2610_v31 }
 0x457   : > { %v8191_v5 = vpop.xlane.xlu0 %2488  ;;  %6072 = vpow2.f32 %v2804_v17  ;;  %v2830_v49 = vmul.f32 1.442695, %v2605_v7  ;;  %v9423_v17 = vpack.c.bf16 %v8005_v57, %v7982_v42  ;;  %v9425_v7 = vld [vmem:[#allocation90_spill] sm:$0xff] }
 0x458   : > { %v8193_v13 = vpop.xlane.xlu1 %2482  ;;  %6074 = vpow2.f32 %v2854_v43  ;;  %v2589_v40 = vsub.f32 %v9425_v7, %v8082_v14  ;;  %v2850_v61 = vmul.f32 1.442695, %v2615_v8  ;;  %v2848_v29 = vmul.f32 1.442695, %v2614_v34  ;;  %v9428_v14 = vld [vmem:[#allocation101_spill] sm:$0xff]  ;;  %v9431_v34 = vld [vmem:[#allocation108_spill] sm:$0xff] }
 0x459   : > { %5625 = vmatpush3.bf16.xpose.msra.mxu1 %v3192_v26  ;;  %6076 = vpow2.f32 %v2852_v52  ;;  %v9427_v26 = vld [vmem:[#allocation87_spill] sm:$0xff]  ;;  %v2608_v56 = vsub.f32 %v9428_v14, %v8146_v58  ;;  %v9433_v7 = vld [vmem:[#allocation32_spill] sm:$0xff] }
 0x45a   : > { %5626 = vmatprep.subr.bf16.mxu1 %v9251_v4  ;;  %6078 = vpow2.f32 %v2830_v49  ;;  %v2588_v1 = vsub.f32 %v9427_v26, %v8069_v23  ;;  %v2798_v49 = vmul.f32 1.442695, %v2589_v40 }
 0x45b   : > { %v8204_v25 = vpop.xlane.xlu0 %2484  ;;  %6080 = vpow2.f32 %v2802_v53  ;;  %v9429_v53 = vld [vmem:[#allocation111_spill] sm:$0xff] }
 0x45c   : > { %v8206_v45 = vpop.xlane.xlu1 %2490  ;;  %6082 = vpow2.f32 %v2800_v11  ;;  %v2613_v15 = vsub.f32 %v9429_v53, %v8134_v12  ;;  %v2796_v50 = vmul.f32 1.442695, %v2588_v1  ;;  %v2836_v12 = vmul.f32 1.442695, %v2608_v56  ;;  %v9437_v1 = vld [vmem:[#allocation48_spill] sm:$0xff] }
 0x45d   : > { %v8212_v47 = vpop.eup %6058  ;;  %5613 = vmatpush3.bf16.xpose.msra.mxu0 %v9423_v17  ;;  %6084 = vpow2.f32 %v2840_v3  ;;  %v2612_v3 = vsub.f32 %v9431_v34, %v8121_v21  ;;  %v9432_v17 = vld [vmem:[#allocation34_spill] sm:$0xff] }
 0x45e   : > { %v8217_v33 = vpop.eup %6060  ;;  %3088 = vadd.xlane.f32.xlu1 %v8212_v47  ;;  %5638 = vmatprep.subr.bf16.mxu0 %v9251_v4  ;;  %6086 = vpow2.f32 %v2850_v61  ;;  %v9434_v40 = vpack.c.bf16 %v9432_v17, %v9433_v7  ;;  %v9435_v61 = vld [vmem:[#allocation103_spill] sm:$0xff]  ;;  %v2846_v21 = vmul.f32 1.442695, %v2613_v15  ;;  %v9439_v15 = vld [vmem:[#allocation129_spill] sm:$0xff] }
 0x45f   : > { %v8221_v32 = vpop.eup %6062  ;;  %v8225_v48 = vpop.xlane.xlu0 %2496  ;;  %v3191_v42 = vpack.c.bf16 %v8208_v44, %v8217_v33  ;;  %6088 = vpow2.f32 %v2848_v29  ;;  %v2844_v53 = vmul.f32 1.442695, %v2612_v3 }
 0x460   : > { %9424 = vst [vmem:[#allocation61_spill] sm:$0xff] %v8221_v32  ;;  %v8227_v43 = vpop.xlane.xlu1 %2486  ;;  %v8231_v57 = vpop.eup %6064  ;;  %6090 = vpow2.f32 %v2798_v49 }
 0x461   : > { %9426 = vst [vmem:[#allocation56_spill] sm:$0xff] %v8231_v57  ;;  %v8235_v52 = vpop.eup %6066  ;;  %5627 = vmatpush3.bf16.xpose.msra.mxu1 %v3191_v42  ;;  %v3203_v58 = vpack.c.bf16 %v8231_v57, %v8221_v32  ;;  %v2611_v42 = vsub.f32 %v9435_v61, %v8148_v39  ;;  %6092 = vpow2.f32 %v2796_v50  ;;  %v9440_v61 = vld [vmem:[#allocation38_spill] sm:$0xff] }
 0x462   : > { %v8239_v31 = vpop.eup %6068  ;;  %3084 = vadd.xlane.f32.xlu1 %v8235_v52  ;;  %5628 = vmatprep.subr.bf16.mxu1 %v9251_v4  ;;  %6094 = vpow2.f32 %v2836_v12 }
 0x463   : > { %3090 = vadd.xlane.f32.xlu0 %v8239_v31  ;;  %v8246_v23 = vpop.xlane.xlu0 %2492  ;;  %v8252_v11 = vpop.eup %6070  ;;  %6096 = vpow2.f32 %v2846_v21 }
 0x464   : > { %v8248_v8 = vpop.xlane.xlu1 %2498  ;;  %9430 = vst [vmem:[#allocation59_spill] sm:$0xff] %v8252_v11  ;;  %5615 = vmatmul.mubr.bf16.vlgmr.msra.gmra.mxu0 %v9434_v40  ;;  %v8263_v26 = vpop.eup %6072  ;;  %6098 = vpow2.f32 %v2844_v53 }
 0x465   : > { %5639 = vmatpush3.bf16.xpose.msra.mxu0 %v3203_v58  ;;  %5654 = vmatprep.mubr.msk.bf16.mxu0 %vm6676_vm1, %v9251_v4  ;;  %9436 = vst [vmem:[#allocation82_spill] sm:$0xff] %v8263_v26  ;;  %v3190_v39 = vpack.c.bf16 %v8252_v11, %v8263_v26  ;;  %v8272_v56 = vpop.eup %6074  ;;  %v9438_v58 = vld [vmem:[#allocation54_spill] sm:$0xff] }
 0x466   : > { %2944 = vadd.xlane.f32.xlu1 %v7684_v2  ;;  %5640 = vmatprep.subr.bf16.mxu0 %v9251_v4  ;;  %v8275_v17 = vpop.eup %6076  ;;  %v2842_v2 = vmul.f32 1.442695, %v2611_v42 }
 0x467   : > { %2934 = vadd.xlane.f32.xlu0 %v9437_v1  ;;  %v2505_v29 = vpop.xlane.xlu0 %2504  ;;  %v8277_v49 = vpop.eup %6078  ;;  %v3202_v3 = vpack.c.bf16 %v8272_v56, %v8275_v17 }
 0x468   : > { %v8268_v14 = vpop.xlane.xlu1 %2494  ;;  %v2634_v34 = vsub.f32 %v9438_v58, %v2505_v29  ;;  %v8286_v40 = vpop.eup %6080  ;;  %6100 = vpow2.f32 %v2842_v2  ;;  %v9441_v29 = vld [vmem:[#allocation105_spill] sm:$0xff] }
 0x469   : > { %5629 = vmatpush3.bf16.xpose.msra.mxu1 %v3190_v39  ;;  %v8289_v1 = vpop.eup %6082  ;;  %v2609_v21 = vsub.f32 %v9441_v29, %v8156_v20 }
 0x46a   : > { %2946 = vadd.xlane.f32.xlu1 %v9439_v15  ;;  %5630 = vmatprep.subr.bf16.mxu1 %v9251_v4  ;;  %v2888_v12 = vmul.f32 1.442695, %v2634_v34  ;;  %v8293_v39 = vpop.eup %6084  ;;  %v9442_v15 = vld [vmem:[#allocation121_spill] sm:$0xff] }
 0x46b   : > { %3086 = vadd.xlane.f32.xlu0 %v8277_v49  ;;  %v8282_v7 = vpop.xlane.xlu0 %2476  ;;  %v6087_v2 = vpop.eup %6086  ;;  %v2838_v29 = vmul.f32 1.442695, %v2609_v21 }
 0x46c   : > { %v2507_v50 = vpop.xlane.xlu1 %2506  ;;  %6102 = vpow2.f32 %v2888_v12 }
 0x46d   : > { %v2635_v42 = vsub.f32 %v9440_v61, %v2507_v50  ;;  %5641 = vmatpush3.bf16.xpose.msra.mxu0 %v3202_v3  ;;  %v3189_v50 = vpack.c.bf16 %v8286_v40, %v8289_v1  ;;  %v9443_v61 = vld [vmem:[#allocation99_spill] sm:$0xff]  ;;  %v6089_v3 = vpop.eup %6088 }
 0x46e   : > { %2952 = vadd.xlane.f32.xlu1 %v9442_v15  ;;  %5642 = vmatprep.subr.bf16.mxu0 %v9251_v4  ;;  %v9444_v15 = vld [vmem:[#allocation52_spill] sm:$0xff]  ;;  %v3201_v51 = vpack.c.bf16 %v6087_v2, %v6089_v3  ;;  %v8307_v10 = vpop.eup %6090 }
 0x46f   : > { %v2890_v58 = vmul.f32 1.442695, %v2635_v42  ;;  %3096 = vadd.xlane.f32.xlu0 %v8293_v39  ;;  %v2501_v53 = vpop.xlane.xlu0 %2500  ;;  %v8310_v19 = vpop.eup %6092 }
 0x470   : > { %v8298_v34 = vpop.xlane.xlu1 %2478  ;;  %v2632_v20 = vsub.f32 %v9443_v61, %v2501_v53  ;;  %v8312_v21 = vpop.eup %6094  ;;  %v9445_v53 = vld [vmem:[#allocation125_spill] sm:$0xff] }
 0x471   : > { %6104 = vpow2.f32 %v2890_v58  ;;  %5631 = vmatpush3.bf16.xpose.msra.mxu1 %v3189_v50  ;;  %v9446_v50 = vld [vmem:[#allocation130_spill] sm:$0xff] }
 0x472   : > { %3104 = vadd.xlane.f32.xlu1 %v6089_v3  ;;  %5632 = vmatprep.subr.bf16.mxu1 %v9251_v4  ;;  %v2884_v42 = vmul.f32 1.442695, %v2632_v20  ;;  %6106 = vpow2.f32 %v2838_v29  ;;  %v2631_v61 = vsub.f32 %v9446_v50, %v8248_v8  ;;  %v9447_v29 = vld [vmem:[#allocation127_spill] sm:$0xff] }
 0x473   : > { %2940 = vadd.xlane.f32.xlu0 %v9444_v15  ;;  %v8305_v57 = vpop.xlane.xlu0 %2892  ;;  %v2630_v15 = vsub.f32 %v9447_v29, %v8225_v48  ;;  %v9452_v48 = vld [vmem:[#allocation97_spill] sm:$0xff] }
 0x474   : > { %v2503_v32 = vpop.xlane.xlu1 %2502  ;;  %6108 = vpow2.f32 %v2884_v42  ;;  %v2882_v8 = vmul.f32 1.442695, %v2631_v61  ;;  %v9453_v61 = vld [vmem:[#allocation95_spill] sm:$0xff] }
 0x475   : > { %v2633_v12 = vsub.f32 %v7790_v27, %v2503_v32  ;;  %5643 = vmatpush3.bf16.xpose.msra.mxu0 %v3201_v51  ;;  %v3188_v51 = vpack.c.bf16 %v8307_v10, %v8310_v19  ;;  %v6097_v32 = vpop.eup %6096  ;;  %v2880_v46 = vmul.f32 1.442695, %v2630_v15  ;;  %v9456_v15 = vld [vmem:[#allocation31_spill] sm:$0xff] }
 0x476   : > { %2948 = vadd.xlane.f32.xlu1 %v9445_v53  ;;  %5644 = vmatprep.subr.bf16.mxu0 %v9251_v4  ;;  %v6099_v3 = vpop.eup %6098 }
 0x477   : > { %v2886_v58 = vmul.f32 1.442695, %v2633_v12  ;;  %3092 = vadd.xlane.f32.xlu0 %v8312_v21  ;;  %v8319_v20 = vpop.xlane.xlu0 %2896  ;;  %v6101_v12 = vpop.eup %6100  ;;  %v3200_v50 = vpack.c.bf16 %v6097_v32, %v6099_v3 }
 0x478   : > { %v8321_v27 = vpop.xlane.xlu1 %2894 }
 0x479   : > { %6110 = vpow2.f32 %v2886_v58  ;;  %5633 = vmatpush3.bf16.xpose.msra.mxu1 %v3188_v51  ;;  %v8332_v11 = vpop.eup %6102  ;;  %v2629_v51 = vsub.f32 %v9452_v48, %v8268_v14 }
 0x47a   : > { %3100 = vadd.xlane.f32.xlu1 %v6099_v3  ;;  %5658 = vmatprep.subr.bf16.mxu1 %v9251_v4  ;;  %9450 = vst [vmem:[#allocation65_spill] sm:$0xff] %v8332_v11  ;;  %6112 = vpow2.f32 %v2882_v8  ;;  %v9459_v8 = vld [vmem:[#allocation126_spill] sm:$0xff] }
 0x47b   : > { %3098 = vadd.xlane.f32.xlu0 %v6101_v12  ;;  %v8328_v42 = vpop.xlane.xlu0 %2926  ;;  %6114 = vpow2.f32 %v2880_v46  ;;  %v2878_v48 = vmul.f32 1.442695, %v2629_v51 }
 0x47c   : > { %9448 = vst [vmem:[#allocation62_spill] sm:$0xff] %v8328_v42  ;;  %v8330_v53 = vpop.xlane.xlu1 %2924 }
 0x47d   : > { %9449 = vst [vmem:[#allocation80_spill] sm:$0xff] %v8330_v53  ;;  %5645 = vmatpush3.bf16.xpose.msra.mxu0 %v3200_v50  ;;  %v9455_v53 = vld [vmem:[#allocation33_spill] sm:$0xff]  ;;  %6116 = vpow2.f32 %v2878_v48 }
 0x47e   : > { %v8334_v58 = vpop.eup %6104  ;;  %3106 = vadd.xlane.f32.xlu1 %v6087_v2  ;;  %5646 = vmatprep.subr.bf16.mxu0 %v9251_v4  ;;  %v9457_v50 = vpack.c.bf16 %v9455_v53, %v9456_v15  ;;  %v9458_v2 = vld [vmem:[#allocation128_spill] sm:$0xff]  ;;  %v3199_v53 = vpack.c.bf16 %v6101_v12, %v8293_v39 }
 0x47f   : > { %9451 = vst [vmem:[#allocation66_spill] sm:$0xff] %v8334_v58  ;;  %2942 = vadd.xlane.f32.xlu0 %v9453_v61  ;;  %v8340_v29 = vpop.xlane.xlu0 %2928  ;;  %v3211_v3 = vpack.c.bf16 %v8334_v58, %v8332_v11  ;;  %v2628_v26 = vsub.f32 %v9458_v2, %v8246_v23  ;;  %v6107_v14 = vpop.eup %6106  ;;  %v9462_v23 = vld [vmem:[#allocation119_spill] sm:$0xff]  ;;  %v9465_v39 = vld [vmem:[#allocation124_spill] sm:$0xff]  ;;  %v9466_v11 = vld [vmem:[#allocation122_spill] sm:$0xff] }
 0x480   : > { %9454 = vst [vmem:[#allocation63_spill] sm:$0xff] %v8340_v29  ;;  %v2899_v42 = vpop.xlane.xlu1 %2898  ;;  %5635 = vmatmul.mubr.bf16.vlgmr.msra.gmra.mxu1 %v9457_v50  ;;  %v9464_v50 = vld [vmem:[#allocation123_spill] sm:$0xff]  ;;  %v2625_v12 = vsub.f32 %v9465_v39, %v8227_v43 }
 0x481   : > { %5659 = vmatpush3.bf16.xpose.msra.mxu1 %v3211_v3  ;;  %5674 = vmatprep.mubr.msk.bf16.mxu1 %vm6676_vm1, %v9251_v4  ;;  %v8356_v46 = vpop.eup %6108  ;;  %v2626_v3 = vsub.f32 %v9462_v23, %v8191_v5  ;;  %v2627_v2 = vsub.f32 %v9464_v50, %v8206_v45 }
 0x482   : > { %2950 = vadd.xlane.f32.xlu1 %v9459_v8  ;;  %5660 = vmatprep.subr.bf16.mxu1 %v9251_v4  ;;  %9461 = vst [vmem:[#allocation83_spill] sm:$0xff] %v8356_v46  ;;  %v2876_v8 = vmul.f32 1.442695, %v2628_v26  ;;  %v2870_v45 = vmul.f32 1.442695, %v2625_v12 }
 0x483   : > { %3094 = vadd.xlane.f32.xlu0 %v6107_v14  ;;  %v8353_v61 = vpop.xlane.xlu0 %2930  ;;  %v2874_v29 = vmul.f32 1.442695, %v2627_v2 }
 0x484   : > { %9460 = vst [vmem:[#allocation88_spill] sm:$0xff] %v8353_v61  ;;  %v2901_v58 = vpop.xlane.xlu1 %2900  ;;  %v2872_v61 = vmul.f32 1.442695, %v2626_v3  ;;  %6118 = vpow2.f32 %v2876_v8  ;;  %v9470_v8 = vld [vmem:[#allocation36_spill] sm:$0xff] }
 0x485   : > { %5647 = vmatpush3.bf16.xpose.msra.mxu0 %v3199_v53 }
 0x486   : > { %v8360_v15 = vpop.eup %6110  ;;  %3102 = vadd.xlane.f32.xlu1 %v6097_v32  ;;  %5648 = vmatprep.subr.bf16.mxu0 %v9251_v4  ;;  %v3198_v32 = vpack.c.bf16 %v6107_v14, %v8312_v21  ;;  %6120 = vpow2.f32 %v2872_v61 }
 0x487   : > { %9463 = vst [vmem:[#allocation71_spill] sm:$0xff] %v8360_v15  ;;  %v3210_v51 = vpack.c.bf16 %v8360_v15, %v8356_v46  ;;  %2954 = vadd.xlane.f32.xlu0 %v9466_v11  ;;  %v8370_v5 = vpop.xlane.xlu0 %2936  ;;  %v8378_v11 = vpop.eup %6112  ;;  %6122 = vpow2.f32 %v2874_v29  ;;  %v9467_v29 = vld [vmem:[#allocation120_spill] sm:$0xff] }
 0x488   : > { %v2903_v23 = vpop.xlane.xlu1 %2902  ;;  %v8380_v48 = vpop.eup %6114  ;;  %6124 = vrcp.f32 %v8321_v27  ;;  %v2624_v61 = vsub.f32 %v9467_v29, %v8204_v25 }
 0x489   : > { %5661 = vmatpush3.bf16.xpose.msra.mxu1 %v3210_v51  ;;  %6126 = vpow2.f32 %v2870_v45  ;;  %v3209_v14 = vpack.c.bf16 %v8378_v11, %v8380_v48  ;;  %v9471_v51 = vld [vmem:[#allocation53_spill] sm:$0xff] }
 0x48a   : > { %2960 = vadd.xlane.f32.xlu1 %v7943_v18  ;;  %5662 = vmatprep.subr.bf16.mxu1 %v9251_v4  ;;  %6128 = vrcp.f32 %v8305_v57  ;;  %v3197_v57 = vpack.c.bf16 %v8239_v31, %v8212_v47  ;;  %v2868_v3 = vmul.f32 1.442695, %v2624_v61  ;;  %v1153_v39 = vpack.c.bf16 %v9471_v51, %v9470_v8  ;;  %v9473_v45 = vld [vmem:[#allocation113_spill] sm:$0xff] }
 0x48b   : > { %2962 = vadd.xlane.f32.xlu0 %v7933_v36  ;;  %v8375_v26 = vpop.xlane.xlu0 %2914  ;;  %v3796_v36 = vlaneseq  ;;  %6130 = vrcp.f32 %v8319_v20  ;;  %v8403_v20 = vpop.eup %6116 }
 0x48c   : > { %v2905_v43 = vpop.xlane.xlu1 %2904  ;;  %6132 = vrcp.f32 %v2899_v42  ;;  %9469 = vst [vmem:[#allocation79_spill] sm:$0xff] %v8403_v20 }
 0x48d   : > { %5649 = vmatpush3.bf16.xpose.msra.mxu0 %v3198_v32  ;;  %6134 = vrcp.f32 %v2901_v58  ;;  %v8405_v50 = vshrl.u32 %v3796_v36, 7 }
 0x48e   : > { %2956 = vadd.xlane.f32.xlu1 %v7978_v28  ;;  %5650 = vmatprep.subr.bf16.mxu0 %v9251_v4  ;;  %v9468_v28 = vld [vmem:[#allocation116_spill] sm:$0xff]  ;;  %6136 = vrcp.f32 %v2903_v23 }
 0x48f   : > { %2958 = vadd.xlane.f32.xlu0 %v7972_v9  ;;  %v8386_v18 = vpop.xlane.xlu0 %2916  ;;  %v2623_v27 = vsub.f32 %v9468_v28, %v8193_v13  ;;  %v8398_v9 = vand.u32 127, %v3796_v36  ;;  %6138 = vrcp.f32 %v2905_v43  ;;  %v3196_v28 = vpack.c.bf16 %v8277_v49, %v8235_v52 }
 0x490   : > { %v2907_v21 = vpop.xlane.xlu1 %2906 }
 0x491   : > { %5663 = vmatpush3.bf16.xpose.msra.mxu1 %v3209_v14  ;;  %v3809_v13 = vadd.s32 4294967280, %v8398_v9  ;;  %v2866_v42 = vmul.f32 1.442695, %v2623_v27  ;;  %6140 = vrcp.f32 %v2907_v21  ;;  %v3816_v47 = vadd.s32 4294967272, %v8398_v9 }
 0x492   : > { %3108 = vadd.xlane.f32.xlu1 %v8275_v17  ;;  %5664 = vmatprep.subr.bf16.mxu1 %v9251_v4  ;;  %v8408_v17 = vpop.eup %6118  ;;  %v8421_v12 = vsub.s32 %v8398_v9, %v8405_v50  ;;  %v3837_v32 = vadd.s32 4294967248, %v8398_v9  ;;  %v3893_v8 = vadd.s32 4294967184, %v8398_v9 }
 0x493   : > { %2968 = vadd.xlane.f32.xlu0 %v7886_v16  ;;  %v2919_v53 = vpop.xlane.xlu0 %2918  ;;  %v3802_v16 = vadd.s32 4294967288, %v8398_v9  ;;  %v3208_v2 = vpack.c.bf16 %v8403_v20, %v8408_v17  ;;  %v8424_v23 = vpop.eup %6120  ;;  %v8429_v43 = vsub.s32 %v3809_v13, %v8405_v50  ;;  %v8442_v29 = vsub.s32 %v3816_v47, %v8405_v50 }
 0x494   : > { %v2909_v25 = vpop.xlane.xlu1 %2908  ;;  %9472 = vst [vmem:[#allocation77_spill] sm:$0xff] %v8424_v23  ;;  %v8432_v36 = vpop.eup %6122  ;;  %v3844_v13 = vadd.s32 4294967240, %v8398_v9 }
 0x495   : > { %5651 = vmatpush3.bf16.xpose.msra.mxu0 %v3197_v57  ;;  %6142 = vrcp.f32 %v2909_v25  ;;  %v8435_v21 = vsub.s32 %v3802_v16, %v8405_v50  ;;  %v6125_v14 = vpop.eup %6124  ;;  %v3830_v25 = vadd.s32 4294967256, %v8398_v9  ;;  %v9474_v16 = vld [vmem:[#allocation118_spill] sm:$0xff] }
 0x496   : > { %3110 = vadd.xlane.f32.xlu1 %v8272_v56  ;;  %5652 = vmatprep.subr.bf16.mxu0 %v9251_v4  ;;  %6144 = vpow2.f32 %v2868_v3  ;;  %v3823_v56 = vadd.s32 4294967264, %v8398_v9  ;;  %v8448_v27 = vpop.eup %6126  ;;  %v2621_v47 = vsub.f32 %v9474_v16, %v8298_v34 }
 0x497   : > { %2964 = vadd.xlane.f32.xlu0 %v7916_v41  ;;  %v2921_v31 = vpop.xlane.xlu0 %2920  ;;  %v2622_v41 = vsub.f32 %v9473_v45, %v8177_v24  ;;  %v8439_v24 = vld [vmem:[#allocation13 + $0x38] sm:$0xff]   ;;  %v6129_v57 = vpop.eup %6128  ;;  %v3806_v49 = vrot.slane %v6125_v14, %v8435_v21  ;;  %v8473_v45 = vsub.s32 %v3830_v25, %v8405_v50  ;;  %v8482_v25 = vsub.s32 %v3844_v13, %v8405_v50  ;;  %v9476_v13 = vld [vmem:[#allocation51_spill] sm:$0xff] }
 0x498   : > { %v2911_v58 = vpop.xlane.xlu1 %2910  ;;  %v6131_v52 = vpop.eup %6130 }
 0x499   : > { %6146 = vrcp.f32 %v2911_v58  ;;  %5665 = vmatpush3.bf16.xpose.msra.mxu1 %v3208_v2  ;;  %v2864_v3 = vmul.f32 1.442695, %v2622_v41  ;;  %v3851_v58 = vadd.s32 4294967232, %v8398_v9  ;;  %v3858_v41 = vadd.s32 4294967224, %v8398_v9 }
 0x49a   : > { %6148 = vpow2.f32 %v2866_v42  ;;  %2976 = vadd.xlane.f32.xlu1 %v7822_v55  ;;  %5666 = vmatprep.subr.bf16.mxu1 %v9251_v4  ;;  %v8451_v55 = vsub.s32 %v3823_v56, %v8405_v50  ;;  %v3872_v42 = vadd.s32 4294967208, %v8398_v9 }
 0x49b   : > { %6150 = vrcp.f32 %v8375_v26  ;;  %2970 = vadd.xlane.f32.xlu0 %v7873_v35  ;;  %v8456_v26 = vsub.s32 %v3837_v32, %v8405_v50  ;;  %v2923_v35 = vpop.xlane.xlu0 %2922 }
 0x49c   : > { %v2913_v61 = vpop.xlane.xlu1 %2912  ;;  %6152 = vrcp.f32 %v8386_v18  ;;  %v6133_v18 = vpop.eup %6132 }
 0x49d   : > { %6154 = vrcp.f32 %v2913_v61  ;;  %5653 = vmatpush3.bf16.xpose.msra.mxu0 %v3196_v28  ;;  %v6135_v56 = vpop.eup %6134 }
 0x49e   : > { %6156 = vrcp.f32 %v2919_v53  ;;  %2972 = vadd.xlane.f32.xlu1 %v7847_v22  ;;  %5678 = vmatprep.subr.bf16.mxu0 %v8439_v24  ;;  %v3207_v53 = vpack.c.bf16 %v8432_v36, %v8424_v23  ;;  %v3801_v22 = vrot.slane %v6129_v57, %v8421_v12  ;;  %v6137_v34 = vpop.eup %6136  ;;  %v3820_v57 = vrot.slane %v6133_v18, %v8442_v29 }
 0x49f   : > { %6158 = vrcp.f32 %v2921_v31  ;;  %2966 = vadd.xlane.f32.xlu0 %v7910_v30  ;;  %v8467_v2 = vpop.f32.mrf.mxu0  ;;  %v9475_v31 = vld [vmem:[#allocation115_spill] sm:$0xff]  ;;  %v3813_v30 = vrot.slane %v6131_v52, %v8429_v43  ;;  %v6139_v61 = vpop.eup %6138  ;;  %v2862_v52 = vmul.f32 1.442695, %v2621_v47  ;;  %v3827_v16 = vrot.slane %v6135_v56, %v8451_v55 }
 0x4a0   : > { %6160 = vrcp.f32 %v2923_v35  ;;  %v2620_v32 = vsub.f32 %v9475_v31, %v8282_v7  ;;  %v3808_v28 = vsel %vm3807_vm2, %v3806_v49, %v3801_v22  ;;  %v3865_v35 = vadd.s32 4294967216, %v8398_v9  ;;  %v8487_v7 = vld [vmem:[#allocation13 + $0x30] sm:$0xff]  }
 0x4a1   : > { %6162 = vpow2.f32 %v2864_v3  ;;  %5667 = vmatpush3.bf16.xpose.msra.mxu1 %v3207_v53  ;;  %v5536_v14 = vpop.f32.mrf.mxu0  ;;  %v6141_v3 = vpop.eup %6140  ;;  %v8491_v53 = vsub.s32 %v3851_v58, %v8405_v50  ;;  %v8494_v49 = vsub.s32 %v3872_v42, %v8405_v50  ;;  %v3834_v31 = vrot.slane %v6137_v34, %v8473_v45 }
 0x4a2   : > { %2974 = vadd.xlane.f32.xlu1 %v7839_v60  ;;  %5668 = vmatprep.subr.bf16.mxu1 %v9251_v4  ;;  %v6143_v60 = vpop.eup %6142  ;;  %v8503_v14 = vsub.s32 %v3858_v41, %v8405_v50  ;;  %v3879_v47 = vadd.s32 4294967200, %v8398_v9  ;;  %v3886_v58 = vadd.s32 4294967192, %v8398_v9  ;;  %v2860_v56 = vmul.f32 1.442695, %v2620_v32  ;;  %v9477_v32 = vld [vmem:[#allocation50_spill] sm:$0xff] }
 0x4a3   : > { %2978 = vadd.xlane.f32.xlu0 %v9476_v13  ;;  %v8497_v18 = vpop.xlane.xlu1 %3020  ;;  %v8499_v22 = vpop.f32.mrf.mxu0  ;;  %v3815_v13 = vsel %vm3814_vm3, %v3813_v30, %v3808_v28  ;;  %v3841_v15 = vrot.slane %v6139_v61, %v8456_v26  ;;  %v3848_v46 = vrot.slane %v6141_v3, %v8482_v25  ;;  %v8518_v20 = vsub.s32 %v3865_v35, %v8405_v50 }
 0x4a4   : > { %5655 = vmatmul.mubr.bf16.vlgmr.msra.gmra.mxu0 %v1153_v39  ;;  %v8510_v42 = vpop.eup %6144  ;;  %v3822_v23 = vsel %vm3821_vm4, %v3820_v57, %v3815_v13  ;;  %6164 = vpow2.f32 %v2862_v52  ;;  %v8535_v52 = vsub.s32 %v3879_v47, %v8405_v50 }
 0x4a5   : > { %v5537_v34 = vpop.f32.mrf.mxu0  ;;  %5679 = vmatpush3.bf16.xpose.msra.mxu0 %v8439_v24  ;;  %v3829_v39 = vsel %vm3828_vm5, %v3827_v16, %v3822_v23  ;;  %v3855_v24 = vrot.slane %v6143_v60, %v8491_v53  ;;  %v3206_v30 = vpack.c.bf16 %v8448_v27, %v8510_v42  ;;  %6166 = vpow2.f32 %v2860_v56 }
 0x4a6   : > { %v6147_v41 = vpop.eup %6146  ;;  %2992 = vadd.xlane.f32.xlu1 %v8074_v6  ;;  %5680 = vmatprep.subr.bf16.mxu0 %v8487_v7  ;;  %v3836_v28 = vsel %vm3835_vm6, %v3834_v31, %v3829_v39  ;;  %v3900_v6 = vadd.s32 4294967176, %v8398_v9  ;;  %v8539_v31 = vsub.s32 %v3886_v58, %v8405_v50  ;;  %v5866_v9 = vld [vmem:[#allocation13 + $0x28] sm:$0xff]   ;;  %v8546_v34 = vsub.s32 %v3893_v8, %v8405_v50 }
 0x4a7   : > { %v8523_v51 = vpop.eup %6148  ;;  %2984 = vadd.xlane.f32.xlu0 %v9477_v32  ;;  %v3862_v57 = vrot.slane %v6147_v41, %v8503_v14  ;;  %v3843_v23 = vsel %vm3842_vm7, %v3841_v15, %v3836_v28  ;;  %v3025_v16 = vpop.xlane.xlu1 %3024  ;;  %v9478_v41 = vld [vmem:[#allocation24_spill] sm:$0xff] }
 0x4a8   : > { %v6151_v61 = vpop.eup %6150  ;;  %v3023_v35 = vpop.xlane.xlu0 %3022  ;;  %v3850_v13 = vsel %vm3849_vm8, %v3848_v46, %v3843_v23  ;;  %v9479_v23 = vld [vmem:[#allocation39_spill] sm:$0xff] }
 0x4a9   : > { %v6153_v3 = vpop.eup %6152  ;;  %5669 = vmatpush3.bf16.xpose.msra.mxu1 %v3206_v30  ;;  %v3857_v47 = vsel %vm3856_vm9, %v3855_v24, %v3850_v13  ;;  %v3876_v39 = vrot.slane %v6151_v61, %v8494_v49  ;;  %6168 = vrcp.f32 %v3023_v35 }
 0x4aa   : > { %v6155_v60 = vpop.eup %6154  ;;  %2994 = vadd.xlane.f32.xlu1 %v8066_v63  ;;  %5670 = vmatprep.subr.bf16.mxu1 %v9251_v4  ;;  %v3864_v58 = vsel %vm3863_vm10, %v3862_v57, %v3857_v47  ;;  %v8552_v63 = vsub.s32 %v3900_v6, %v8405_v50  ;;  %v3883_v24 = vrot.slane %v6153_v3, %v8535_v52  ;;  %6170 = vrcp.f32 %v8497_v18 }
 0x4ab   : > { %v6157_v56 = vpop.eup %6156  ;;  %v3869_v15 = vrot.slane %v6155_v60, %v8518_v20  ;;  %2980 = vadd.xlane.f32.xlu0 %v9478_v41  ;;  %v3037_v3 = vpop.xlane.xlu1 %3036  ;;  %6172 = vrcp.f32 %v3025_v16 }
 0x4ac   : > { %v6159_v46 = vpop.eup %6158  ;;  %v3027_v32 = vpop.xlane.xlu0 %3026  ;;  %v3890_v61 = vrot.slane %v6157_v56, %v8539_v31 }
 0x4ad   : > { %v6161_v30 = vpop.eup %6160  ;;  %v3871_v28 = vsel %vm3870_vm11, %v3869_v15, %v3864_v58  ;;  %5681 = vmatpush3.bf16.xpose.msra.mxu0 %v8487_v7  ;;  %v3897_v6 = vrot.slane %v6159_v46, %v8546_v34  ;;  %v6392_v15 = vld [vmem:[%s6963_s29] sm:$0xff]   ;;  %6174 = vrcp.f32 %v3027_v32  ;;  %v9482_v32 = vld [vmem:[#allocation45_spill] sm:$0xff] }
 0x4ae   : > { %v8557_v8 = vpop.eup %6162  ;;  %v3878_v57 = vsel %vm3877_vm12, %v3876_v39, %v3871_v28  ;;  %2990 = vadd.xlane.f32.xlu1 %v8086_v37  ;;  %5682 = vmatprep.subr.bf16.mxu0 %v5866_v9  ;;  %v3904_v13 = vrot.slane %v6161_v30, %v8552_v63  ;;  %v4538_v47 = vunpack.c.l.bf16 %v6392_v15  ;;  %v4539_v37 = vunpack.c.h.bf16 %v6392_v15  ;;  %v5867_v58 = vld [vmem:[#allocation13 + $0x20] sm:$0xff]   ;;  %v9480_v28 = vld [vmem:[#allocation26_spill] sm:$0xff] }
 0x4af   : > { %v3885_v50 = vsel %vm3884_vm13, %v3883_v24, %v3878_v57  ;;  %2986 = vadd.xlane.f32.xlu0 %v9479_v23  ;;  %v3205_v7 = vpack.c.bf16 %v8523_v51, %v8557_v8 }
 0x4b0   : > { %v3892_v60 = vsel %vm3891_vm14, %v3890_v61, %v3885_v50  ;;  %v3029_v56 = vpop.xlane.xlu0 %3028  ;;  %v3039_v50 = vpop.xlane.xlu1 %3038 }
 0x4b1   : > { %v3899_v41 = vsel %vm3898_vm15, %v3897_v6, %v3892_v60  ;;  %5671 = vmatpush3.bf16.xpose.msra.mxu1 %v3205_v7  ;;  %v8578_v24 = vpop.eup %6164  ;;  %6176 = vrcp.f32 %v3029_v56  ;;  %v9483_v7 = vld [vmem:[#allocation37_spill] sm:$0xff] }
 0x4b2   : > { %v3906_v46 = vsel %vm3905_vm0, %v3904_v13, %v3899_v41  ;;  %3000 = vadd.xlane.f32.xlu1 %v7998_v0  ;;  %5672 = vmatprep.subr.bf16.mxu1 %v9251_v4  ;;  %v8580_v0 = vpop.eup %6166 }
 0x4b3   : > { %v4522_v39 = vmul.f32 %v3906_v46, %v8467_v2  ;;  %v4523_v30 = vmul.f32 %v3906_v46, %v8499_v22  ;;  %2982 = vadd.xlane.f32.xlu0 %v9480_v28  ;;  %v3204_v4 = vpack.c.bf16 %v8578_v24, %v8580_v0  ;;  %v5868_v22 = vld [vmem:[#allocation13 + $0x18] sm:$0xff]  }
 0x4b4   : > { %v3031_v35 = vpop.xlane.xlu0 %3030  ;;  %v3041_v16 = vpop.xlane.xlu1 %3040 }
 0x4b5   : > { %v4554_v57 = vsub.f32 %v4538_v47, %v4522_v39  ;;  %v4555_v61 = vsub.f32 %v4539_v37, %v4523_v30  ;;  %5683 = vmatpush3.bf16.xpose.msra.mxu0 %v5866_v9  ;;  %6178 = vrcp.f32 %v3031_v35  ;;  %v9481_v9 = vld [vmem:[#allocation75_spill] sm:$0xff]  ;;  %v9486_v47 = vld [vmem:[#allocation76_spill] sm:$0xff]  ;;  %v5869_v37 = vld [vmem:[#allocation13 + $0x10] sm:$0xff]  }
 0x4b6   : > { %2996 = vadd.xlane.f32.xlu1 %v8043_v62  ;;  %5684 = vmatprep.subr.bf16.mxu0 %v5867_v58 }
 0x4b7   : > { %2988 = vadd.xlane.f32.xlu0 %v8091_v38  ;;  %v4570_v2 = vpack.c.bf16 %v4555_v61, %v4554_v57  ;;  %v6169_v38 = vpop.eup %6168 }
 0x4b8   : > { %v3033_v18 = vpop.xlane.xlu0 %3032  ;;  %v6171_v23 = vpop.eup %6170  ;;  %v4151_v13 = vrot.slane %v6169_v38, %v8435_v21 }
 0x4b9   : > { %6180 = vrcp.f32 %v3033_v18  ;;  %5673 = vmatpush3.bf16.xpose.msra.mxu1 %v3204_v4  ;;  %5694 = vmatprep.mubr.bf16.mxu0 %v4570_v2  ;;  %v4147_v46 = vrot.slane %v6171_v23, %v8421_v12  ;;  %v9488_v2 = vld [vmem:[#allocation49_spill] sm:$0xff] }
 0x4ba   : > { %2998 = vadd.xlane.f32.xlu1 %v8031_v54  ;;  %6182 = vrcp.f32 %v3037_v3  ;;  %v9484_v3 = vld [vmem:[#allocation35_spill] sm:$0xff] }
 0x4bb   : > { %3002 = vadd.xlane.f32.xlu0 %v7987_v59  ;;  %6184 = vrcp.f32 %v3039_v50  ;;  %v9485_v60 = vpack.c.bf16 %v9483_v7, %v9484_v3  ;;  %v6173_v59 = vpop.eup %6172  ;;  %v4152_v35 = vsel %vm3807_vm2, %v4151_v13, %v4147_v46  ;;  %v9490_v7 = vld [vmem:[#allocation46_spill] sm:$0xff]  ;;  %v5870_v3 = vld [vmem:[#allocation13 + $0x8] sm:$0xff]  }
 0x4bc   : > { %v3035_v62 = vpop.xlane.xlu0 %3034  ;;  %v6175_v15 = vpop.eup %6174  ;;  %v4156_v28 = vrot.slane %v6173_v59, %v8429_v43 }
 0x4bd   : > { %6186 = vrcp.f32 %v3035_v62  ;;  %5685 = vmatpush3.bf16.xpose.msra.mxu0 %v5867_v58  ;;  %v9487_v58 = vld [vmem:[#allocation47_spill] sm:$0xff]  ;;  %v4161_v57 = vrot.slane %v6175_v15, %v8442_v29 }
 0x4be   : > { %6188 = vrcp.f32 %v3041_v16  ;;  %3008 = vadd.xlane.f32.xlu1 %v9481_v9  ;;  %5686 = vmatprep.subr.bf16.mxu0 %v5868_v22  ;;  %v6177_v41 = vpop.eup %6176  ;;  %v9489_v16 = vld [vmem:[#allocation73_spill] sm:$0xff]  ;;  %v4157_v38 = vsel %vm3814_vm3, %v4156_v28, %v4152_v35  ;;  %v9492_v35 = vld [vmem:[#allocation44_spill] sm:$0xff] }
 0x4bf   : > { %3004 = vadd.xlane.f32.xlu0 %v9482_v32  ;;  %v8590_v6 = vpop.f32.mrf.mxu1  ;;  %v4166_v4 = vrot.slane %v6177_v41, %v8451_v55  ;;  %v4162_v23 = vsel %vm3821_vm4, %v4161_v57, %v4157_v38  ;;  %v9497_v38 = vld [vmem:[#allocation64_spill] sm:$0xff] }
 0x4c0   : > { %v3043_v54 = vpop.xlane.xlu0 %3042  ;;  %5675 = vmatmul.mubr.bf16.vlgmr.msra.gmra.mxu1 %v9485_v60 }
 0x4c1   : > { %6190 = vrcp.f32 %v3043_v54  ;;  %v5556_v56 = vpop.f32.mrf.mxu1 }
 0x4c2   : > { %3010 = vadd.xlane.f32.xlu1 %v9486_v47  ;;  %v6179_v30 = vpop.eup %6178  ;;  %v9491_v56 = vld [vmem:[#allocation78_spill] sm:$0xff] }
 0x4c3   : > { %3006 = vadd.xlane.f32.xlu0 %v9487_v58  ;;  %v8599_v39 = vpop.f32.mrf.mxu1  ;;  %v4171_v18 = vrot.slane %v6179_v30, %v8473_v45 }
 0x4c5   : > { %v5557_v61 = vpop.f32.mrf.mxu1  ;;  %5687 = vmatpush3.bf16.xpose.msra.mxu0 %v5868_v22  ;;  %v4167_v22 = vsel %vm3828_vm5, %v4166_v4, %v4162_v23  ;;  %v9499_v23 = vld [vmem:[#allocation41_spill] sm:$0xff] }
 0x4c6   : > { %v6181_v50 = vpop.eup %6180  ;;  %3016 = vadd.xlane.f32.xlu1 %v9488_v2  ;;  %5688 = vmatprep.subr.bf16.mxu0 %v5869_v37  ;;  %v4172_v59 = vsel %vm3835_vm6, %v4171_v18, %v4167_v22  ;;  %v9493_v61 = vld [vmem:[#allocation42_spill] sm:$0xff] }
 0x4c7   : > { %3018 = vadd.xlane.f32.xlu0 %v9489_v16  ;;  %v6183_v62 = vpop.eup %6182  ;;  %v4176_v9 = vrot.slane %v6181_v50, %v8456_v26  ;;  %v9494_v18 = vld [vmem:[#allocation70_spill] sm:$0xff]  ;;  %v9495_v16 = vld [vmem:[#allocation67_spill] sm:$0xff] }
 0x4c8   : > { %v6185_v32 = vpop.eup %6184  ;;  %v4186_v15 = vrot.slane %v6183_v62, %v8491_v53  ;;  %v2933_v62 = vpop.xlane.xlu0 %2932 }
 0x4c9   : > { %v4177_v47 = vsel %vm3842_vm7, %v4176_v9, %v4172_v59  ;;  %v4191_v41 = vrot.slane %v6185_v32, %v8503_v14  ;;  %v9498_v32 = vld [vmem:[#allocation59_spill] sm:$0xff] }
 0x4ca   : > { %v6187_v54 = vpop.eup %6186  ;;  %3012 = vadd.xlane.f32.xlu1 %v9490_v7 }
 0x4cb   : > { %v6189_v60 = vpop.eup %6188  ;;  %v4181_v13 = vrot.slane %v6187_v54, %v8482_v25  ;;  %3048 = vadd.xlane.f32.xlu0 %v9491_v56  ;;  %v9503_v56 = vld [vmem:[#allocation40_spill] sm:$0xff] }
 0x4cc   : > { %v4196_v30 = vrot.slane %v6189_v60, %v8518_v20  ;;  %v9502_v60 = vld [vmem:[#allocation69_spill] sm:$0xff] }
 0x4cd   : > { %v4182_v46 = vsel %vm3849_vm8, %v4181_v13, %v4177_v47  ;;  %5689 = vmatpush3.bf16.xpose.msra.mxu0 %v5869_v37  ;;  %v5871_v37 = vld [vmem:[#allocation13] sm:$0xff]  }
 0x4ce   : > { %v6191_v58 = vpop.eup %6190  ;;  %v4187_v28 = vsel %vm3856_vm9, %v4186_v15, %v4182_v46  ;;  %3014 = vadd.xlane.f32.xlu1 %v9492_v35  ;;  %5690 = vmatprep.subr.bf16.mxu0 %v5870_v3  ;;  %v9508_v35 = vld [vmem:[#allocation23_spill] sm:$0xff] }
 0x4cf   : > { %v4201_v57 = vrot.slane %v6191_v58, %v8494_v49  ;;  %3044 = vadd.xlane.f32.xlu0 %v9493_v61  ;;  %v4192_v50 = vsel %vm3863_vm10, %v4191_v41, %v4187_v28  ;;  %v9504_v41 = vld [vmem:[#allocation25_spill] sm:$0xff]  ;;  %v9505_v58 = vld [vmem:[#allocation62_spill] sm:$0xff]  ;;  %v9507_v28 = vld [vmem:[#allocation63_spill] sm:$0xff] }
 0x4d0   : > { %v4197_v4 = vsel %vm3870_vm11, %v4196_v30, %v4192_v50  ;;  %v9506_v30 = vld [vmem:[#allocation80_spill] sm:$0xff] }
 0x4d1   : > { %v8628_v2 = vsel %vm3877_vm12, %v4201_v57, %v4197_v4  ;;  %v9509_v57 = vld [vmem:[#allocation88_spill] sm:$0xff] }
 0x4d2   : > { %3056 = vadd.xlane.f32.xlu1 %v8289_v1  ;;  %v9496_v1 = vld [vmem:[#allocation82_spill] sm:$0xff] }
 0x4d3   : > { %3050 = vadd.xlane.f32.xlu0 %v9494_v18 }
 0x4d5   : > { %5691 = vmatpush3.bf16.xpose.msra.mxu0 %v5870_v3 }
 0x4d6   : > { %3058 = vadd.xlane.f32.xlu1 %v8286_v40  ;;  %5692 = vmatprep.subr.bf16.mxu0 %v5871_v37 }
 0x4d7   : > { %3046 = vadd.xlane.f32.xlu0 %v9495_v16 }
 0x4da   : > { %3054 = vadd.xlane.f32.xlu1 %v8307_v10 }
 0x4db   : > { %3052 = vadd.xlane.f32.xlu0 %v8310_v19  ;;  %v2939_v19 = vpop.xlane.xlu0 %2938 }
 0x4dd   : > { %5693 = vmatpush3.bf16.xpose.msra.mxu0 %v5871_v37 }
 0x4de   : > { %3064 = vadd.xlane.f32.xlu1 %v8217_v33  ;;  %v9500_v33 = vld [vmem:[#allocation43_spill] sm:$0xff] }
 0x4df   : > { %3066 = vadd.xlane.f32.xlu0 %v8208_v44  ;;  %v9501_v44 = vld [vmem:[#allocation72_spill] sm:$0xff] }
 0x4e2   : > { %3060 = vadd.xlane.f32.xlu1 %v9496_v1 }
 0x4e3   : > { %3068 = vadd.xlane.f32.xlu0 %v9497_v38  ;;  %v8640_v9 = vpop.f32.mrf.mxu0 }
 0x4e5   : > { %v5576_v40 = vpop.f32.mrf.mxu0 }
 0x4e6   : > { %3062 = vadd.xlane.f32.xlu1 %v9498_v32 }
 0x4e7   : > { %3070 = vadd.xlane.f32.xlu0 %v9499_v23  ;;  %v3089_v10 = vpop.xlane.xlu1 %3088  ;;  %v8644_v54 = vpop.f32.mrf.mxu0 }
 0x4e8   : > { %6192 = vrcp.f32 %v3089_v10 }
 0x4e9   : > { %v5577_v22 = vpop.f32.mrf.mxu0 }
 0x4ea   : > { %3072 = vadd.xlane.f32.xlu1 %v9500_v33 }
 0x4eb   : > { %3082 = vadd.xlane.f32.xlu0 %v9501_v44  ;;  %v3085_v7 = vpop.xlane.xlu1 %3084 }
 0x4ec   : > { %v3091_v3 = vpop.xlane.xlu0 %3090  ;;  %6194 = vrcp.f32 %v3085_v7 }
 0x4ed   : > { %6196 = vrcp.f32 %v3091_v3  ;;  %v9511_v3 = vld [vmem:[#allocation83_spill] sm:$0xff] }
 0x4ee   : > { %3074 = vadd.xlane.f32.xlu1 %v9502_v60 }
 0x4ef   : > { %3116 = vadd.xlane.f32.xlu0 %v8580_v0  ;;  %v2945_v59 = vpop.xlane.xlu1 %2944 }
 0x4f0   : > { %v2935_v13 = vpop.xlane.xlu0 %2934 }
 0x4f2   : > { %3080 = vadd.xlane.f32.xlu1 %v9503_v56 }
 0x4f3   : > { %3130 = vadd.xlane.f32.xlu0 %v8432_v36  ;;  %v2947_v15 = vpop.xlane.xlu1 %2946 }
 0x4f4   : > { %v3087_v47 = vpop.xlane.xlu0 %3086 }
 0x4f5   : > { %6198 = vrcp.f32 %v3087_v47 }
 0x4f6   : > { %3076 = vadd.xlane.f32.xlu1 %v9504_v41  ;;  %6200 = vrcp.f32 %v9505_v58 }
 0x4f7   : > { %3136 = vadd.xlane.f32.xlu0 %v8380_v48  ;;  %v2953_v46 = vpop.xlane.xlu1 %2952  ;;  %6202 = vrcp.f32 %v9506_v30  ;;  %v6193_v48 = vpop.eup %6192 }
 0x4f8   : > { %v3097_v0 = vpop.xlane.xlu0 %3096  ;;  %6204 = vrcp.f32 %v9507_v28 }
 0x4f9   : > { %6206 = vrcp.f32 %v9509_v57  ;;  %v6195_v37 = vpop.eup %6194 }
 0x4fa   : > { %3078 = vadd.xlane.f32.xlu1 %v9508_v35  ;;  %6208 = vrcp.f32 %v2933_v62  ;;  %v6197_v16 = vpop.eup %6196  ;;  %v4305_v62 = vrot.slane %v6195_v37, %v8421_v12 }
 0x4fb   : > { %3132 = vadd.xlane.f32.xlu0 %v8408_v17  ;;  %v3105_v36 = vpop.xlane.xlu1 %3104  ;;  %6210 = vrcp.f32 %v2935_v13  ;;  %v4319_v10 = vrot.slane %v6197_v16, %v8442_v29 }
 0x4fc   : > { %v2941_v61 = vpop.xlane.xlu0 %2940  ;;  %6212 = vrcp.f32 %v8370_v5  ;;  %v4314_v5 = vrot.slane %v6193_v48, %v8429_v43 }
 0x4fe   : > { %3120 = vadd.xlane.f32.xlu1 %v8557_v8 }
 0x4ff   : > { %3138 = vadd.xlane.f32.xlu0 %v8378_v11  ;;  %v8662_v50 = vpop.f32.mrf.mxu1  ;;  %v2949_v4 = vpop.xlane.xlu1 %2948  ;;  %v9510_v11 = vld [vmem:[#allocation79_spill] sm:$0xff] }
 0x500   : > { %v3093_v18 = vpop.xlane.xlu0 %3092 }
 0x501   : > { %6214 = vrcp.f32 %v3093_v18  ;;  %v5596_v1 = vpop.f32.mrf.mxu1 }
 0x502   : > { %v6199_v17 = vpop.eup %6198  ;;  %6216 = vrcp.f32 %v2939_v19  ;;  %3122 = vadd.xlane.f32.xlu1 %v8523_v51  ;;  %v9514_v1 = vld [vmem:[#allocation65_spill] sm:$0xff] }
 0x503   : > { %6218 = vrcp.f32 %v2945_v59  ;;  %v4309_v8 = vrot.slane %v6199_v17, %v8435_v21  ;;  %3134 = vadd.xlane.f32.xlu0 %v9510_v11  ;;  %v8669_v38 = vpop.f32.mrf.mxu1  ;;  %v3101_v40 = vpop.xlane.xlu1 %3100 }
 0x504   : > { %6220 = vrcp.f32 %v2941_v61  ;;  %v3099_v32 = vpop.xlane.xlu0 %3098  ;;  %v6201_v23 = vpop.eup %6200 }
 0x505   : > { %v4310_v19 = vsel %vm3807_vm2, %v4309_v8, %v4305_v62  ;;  %6222 = vrcp.f32 %v2947_v15  ;;  %v5597_v51 = vpop.f32.mrf.mxu1  ;;  %v6203_v22 = vpop.eup %6202  ;;  %v3914_v15 = vrot.slane %v6201_v23, %v8435_v21 }
 0x506   : > { %v4315_v33 = vsel %vm3814_vm3, %v4314_v5, %v4310_v19  ;;  %6224 = vrcp.f32 %v2953_v46  ;;  %3118 = vadd.xlane.f32.xlu1 %v8578_v24  ;;  %v6205_v44 = vpop.eup %6204  ;;  %v3910_v47 = vrot.slane %v6203_v22, %v8421_v12  ;;  %v9512_v24 = vld [vmem:[#allocation77_spill] sm:$0xff] }
 0x507   : > { %6226 = vrcp.f32 %v3097_v0  ;;  %v4320_v7 = vsel %vm3821_vm4, %v4319_v10, %v4315_v33  ;;  %3140 = vadd.xlane.f32.xlu0 %v9511_v3  ;;  %v3107_v60 = vpop.xlane.xlu1 %3106  ;;  %v6207_v59 = vpop.eup %6206  ;;  %v3919_v46 = vrot.slane %v6205_v44, %v8429_v43  ;;  %v9513_v0 = vld [vmem:[#allocation71_spill] sm:$0xff] }
 0x508   : > { %6228 = vrcp.f32 %v3105_v36  ;;  %v2943_v13 = vpop.xlane.xlu0 %2942  ;;  %v6209_v56 = vpop.eup %6208  ;;  %v3924_v58 = vrot.slane %v6207_v59, %v8442_v29  ;;  %v3915_v36 = vsel %vm3807_vm2, %v3914_v15, %v3910_v47 }
 0x509   : > { %6230 = vrcp.f32 %v2943_v13  ;;  %v6211_v41 = vpop.eup %6210  ;;  %v3929_v28 = vrot.slane %v6209_v56, %v8451_v55 }
 0x50a   : > { %6232 = vrcp.f32 %v2949_v4  ;;  %3128 = vadd.xlane.f32.xlu1 %v9512_v24  ;;  %v6213_v57 = vpop.eup %6212  ;;  %v3934_v61 = vrot.slane %v6211_v41, %v8473_v45  ;;  %v3920_v4 = vsel %vm3814_vm3, %v3919_v46, %v3915_v36 }
 0x50b   : > { %6234 = vrcp.f32 %v3099_v32  ;;  %3142 = vadd.xlane.f32.xlu0 %v9513_v0  ;;  %v2951_v30 = vpop.xlane.xlu1 %2950  ;;  %v3925_v18 = vsel %vm3821_vm4, %v3924_v58, %v3920_v4  ;;  %v3939_v23 = vrot.slane %v6213_v57, %v8456_v26 }
 0x50c   : > { %v3095_v35 = vpop.xlane.xlu0 %3094  ;;  %6236 = vrcp.f32 %v2951_v30  ;;  %v3930_v8 = vsel %vm3828_vm5, %v3929_v28, %v3925_v18 }
 0x50d   : > { %6238 = vrcp.f32 %v3095_v35  ;;  %v3935_v32 = vsel %vm3835_vm6, %v3934_v61, %v3930_v8  ;;  %v9516_v61 = vld [vmem:[#allocation56_spill] sm:$0xff] }
 0x50e   : > { %v6215_v48 = vpop.eup %6214  ;;  %6240 = vrcp.f32 %v3101_v40  ;;  %3124 = vadd.xlane.f32.xlu1 %v8510_v42  ;;  %v3940_v22 = vsel %vm3842_vm7, %v3939_v23, %v3935_v32 }
 0x50f   : > { %v6217_v37 = vpop.eup %6216  ;;  %v4324_v16 = vrot.slane %v6215_v48, %v8451_v55  ;;  %6242 = vrcp.f32 %v3107_v60  ;;  %3144 = vadd.xlane.f32.xlu0 %v9514_v1  ;;  %v3103_v17 = vpop.xlane.xlu1 %3102 }
 0x510   : > { %v6219_v62 = vpop.eup %6218  ;;  %v2955_v11 = vpop.xlane.xlu0 %2954  ;;  %6244 = vrcp.f32 %v3103_v17  ;;  %v3944_v60 = vrot.slane %v6217_v37, %v8482_v25 }
 0x511   : > { %v6221_v5 = vpop.eup %6220  ;;  %v4325_v40 = vsel %vm3828_vm5, %v4324_v16, %v4320_v7  ;;  %6246 = vrcp.f32 %v2955_v11  ;;  %v9515_v7 = vld [vmem:[#allocation61_spill] sm:$0xff]  ;;  %v3959_v41 = vrot.slane %v6219_v62, %v8518_v20 }
 0x512   : > { %v6223_v42 = vpop.eup %6222  ;;  %3126 = vadd.xlane.f32.xlu1 %v8448_v27  ;;  %v3949_v33 = vrot.slane %v6221_v5, %v8491_v53  ;;  %v3945_v56 = vsel %vm3849_vm8, %v3944_v60, %v3940_v22  ;;  %v9517_v60 = vld [vmem:[#allocation66_spill] sm:$0xff] }
 0x513   : > { %v6225_v10 = vpop.eup %6224  ;;  %v2961_v19 = vpop.xlane.xlu1 %2960  ;;  %v3964_v0 = vrot.slane %v6223_v42, %v8494_v49 }
 0x514   : > { %v6227_v51 = vpop.eup %6226  ;;  %v8699_v44 = vpop.xlane.xlu0 %2962  ;;  %v3950_v46 = vsel %vm3856_vm9, %v3949_v33, %v3945_v56  ;;  %v3979_v23 = vrot.slane %v6225_v10, %v8546_v34 }
 0x515   : > { %v6229_v3 = vpop.eup %6228  ;;  %v4334_v1 = vrot.slane %v6227_v51, %v8456_v26 }
 0x516   : > { %v6231_v59 = vpop.eup %6230  ;;  %3112 = vadd.xlane.f32.xlu1 %v9515_v7 }
 0x517   : > { %v6233_v13 = vpop.eup %6232  ;;  %v3954_v27 = vrot.slane %v6231_v59, %v8503_v14  ;;  %v2957_v15 = vpop.xlane.xlu1 %2956  ;;  %v6393_v59 = vld [vmem:[%s6963_s29 + $0x8] sm:$0xff]  }
 0x518   : > { %v6235_v47 = vpop.eup %6234  ;;  %v2959_v24 = vpop.xlane.xlu0 %2958  ;;  %v3969_v35 = vrot.slane %v6233_v13, %v8535_v52  ;;  %6248 = vrcp.f32 %v2957_v15  ;;  %v4540_v7 = vunpack.c.l.bf16 %v6393_v59  ;;  %v4541_v13 = vunpack.c.h.bf16 %v6393_v59 }
 0x519   : > { %v6237_v58 = vpop.eup %6236  ;;  %v3955_v30 = vsel %vm3863_vm10, %v3954_v27, %v3950_v46  ;;  %v4339_v11 = vrot.slane %v6235_v47, %v8482_v25  ;;  %v4354_v15 = vrot.slane %v6229_v3, %v8518_v20 }
 0x51a   : > { %v6239_v28 = vpop.eup %6238  ;;  %v3960_v57 = vsel %vm3870_vm11, %v3959_v41, %v3955_v30  ;;  %v3974_v36 = vrot.slane %v6237_v58, %v8539_v31  ;;  %3114 = vadd.xlane.f32.xlu1 %v9516_v61 }
 0x51b   : > { %v6241_v48 = vpop.eup %6240  ;;  %v4329_v4 = vrot.slane %v6239_v28, %v8473_v45  ;;  %v3109_v37 = vpop.xlane.xlu1 %3108  ;;  %v3965_v18 = vsel %vm3877_vm12, %v3964_v0, %v3960_v57 }
 0x51c   : > { %v6243_v16 = vpop.eup %6242  ;;  %v2969_v17 = vpop.xlane.xlu0 %2968  ;;  %6250 = vrcp.f32 %v3109_v37  ;;  %v3970_v62 = vsel %vm3884_vm13, %v3969_v35, %v3965_v18  ;;  %v4344_v22 = vrot.slane %v6241_v48, %v8491_v53 }
 0x51d   : > { %v6245_v8 = vpop.eup %6244  ;;  %v4330_v5 = vsel %vm3835_vm6, %v4329_v4, %v4325_v40  ;;  %6252 = vrcp.f32 %v2959_v24  ;;  %v3975_v32 = vsel %vm3891_vm14, %v3974_v36, %v3970_v62  ;;  %v4359_v46 = vrot.slane %v6243_v16, %v8494_v49 }
 0x51e   : > { %v6247_v42 = vpop.eup %6246  ;;  %v4335_v33 = vsel %vm3842_vm7, %v4334_v1, %v4330_v5  ;;  %v4349_v51 = vrot.slane %v6245_v8, %v8503_v14  ;;  %3146 = vadd.xlane.f32.xlu1 %v9517_v60  ;;  %v3980_v41 = vsel %vm3898_vm15, %v3979_v23, %v3975_v32 }
 0x51f   : > { %v3984_v56 = vrot.slane %v6247_v42, %v8552_v63  ;;  %v4340_v40 = vsel %vm3849_vm8, %v4339_v11, %v4335_v33  ;;  %v3111_v27 = vpop.xlane.xlu1 %3110 }
 0x520   : > { %v4345_v10 = vsel %vm3856_vm9, %v4344_v22, %v4340_v40  ;;  %v2965_v47 = vpop.xlane.xlu0 %2964  ;;  %6254 = vrcp.f32 %v3111_v27 }
 0x521   : > { %v4350_v24 = vsel %vm3863_vm10, %v4349_v51, %v4345_v10  ;;  %v3985_v58 = vsel %vm3905_vm0, %v3984_v56, %v3980_v41  ;;  %6256 = vrcp.f32 %v2961_v19 }
 0x522   : > { %v4524_v0 = vmul.f32 %v3985_v58, %v8590_v6  ;;  %v4525_v30 = vmul.f32 %v3985_v58, %v8599_v39  ;;  %v4355_v28 = vsel %vm3870_vm11, %v4354_v15, %v4350_v24  ;;  %6258 = vrcp.f32 %v2965_v47 }
 0x523   : > { %v2977_v3 = vpop.xlane.xlu1 %2976  ;;  %v4360_v35 = vsel %vm3877_vm12, %v4359_v46, %v4355_v28  ;;  %6260 = vrcp.f32 %v8699_v44 }
 0x524   : > { %v2971_v57 = vpop.xlane.xlu0 %2970  ;;  %v8738_v36 = vpop.f32.mrf.mxu0  ;;  %v4556_v61 = vsub.f32 %v4540_v7, %v4524_v0  ;;  %v4557_v48 = vsub.f32 %v4541_v13, %v4525_v30 }
 0x525   : > { %v6249_v18 = vpop.eup %6248 }
 0x526   : > { %v5616_v4 = vpop.f32.mrf.mxu0  ;;  %v4571_v37 = vpack.c.bf16 %v4557_v48, %v4556_v61  ;;  %v3989_v23 = vrot.slane %v6249_v18, %v8421_v12 }
 0x527   : > { %v2973_v19 = vpop.xlane.xlu1 %2972 }
 0x528   : > { %v2967_v6 = vpop.xlane.xlu0 %2966  ;;  %v8741_v16 = vpop.f32.mrf.mxu0  ;;  %5695 = vmatmul.mubr.bf16.vlgmr.msra.gmra.mxu0 %v4571_v37 }
 0x529   : > { %v6251_v39 = vpop.eup %6250  ;;  %6262 = vrcp.f32 %v2967_v6 }
 0x52a   : > { %v6253_v1 = vpop.eup %6252  ;;  %6264 = vrcp.f32 %v2969_v17  ;;  %v4364_v62 = vrot.slane %v6251_v39, %v8535_v52  ;;  %v5617_v8 = vpop.f32.mrf.mxu0 }
 0x52b   : > { %v2975_v11 = vpop.xlane.xlu1 %2974  ;;  %v3993_v42 = vrot.slane %v6253_v1, %v8435_v21  ;;  %6266 = vrcp.f32 %v2971_v57 }
 0x52c   : > { %v2979_v5 = vpop.xlane.xlu0 %2978  ;;  %v4365_v32 = vsel %vm3884_vm13, %v4364_v62, %v4360_v35  ;;  %6268 = vrcp.f32 %v2973_v19 }
 0x52d   : > { %v6255_v44 = vpop.eup %6254  ;;  %v3994_v7 = vsel %vm3807_vm2, %v3993_v42, %v3989_v23  ;;  %6270 = vrcp.f32 %v2975_v11 }
 0x52e   : > { %v4369_v22 = vrot.slane %v6255_v44, %v8539_v31  ;;  %v6257_v33 = vpop.eup %6256  ;;  %6272 = vrcp.f32 %v2977_v3 }
 0x52f   : > { %v2993_v51 = vpop.xlane.xlu1 %2992  ;;  %v6259_v59 = vpop.eup %6258  ;;  %v3998_v56 = vrot.slane %v6257_v33, %v8429_v43 }
 0x530   : > { %v2985_v60 = vpop.xlane.xlu0 %2984  ;;  %v8749_v17 = vsel %vm3891_vm14, %v4369_v22, %v4365_v32  ;;  %v6261_v13 = vpop.eup %6260  ;;  %v4008_v15 = vrot.slane %v6259_v59, %v8451_v55 }
 0x531   : > { %v3999_v27 = vsel %vm3814_vm3, %v3998_v56, %v3994_v7  ;;  %v4003_v47 = vrot.slane %v6261_v13, %v8442_v29 }
 0x533   : > { %v2995_v40 = vpop.xlane.xlu1 %2994  ;;  %v4004_v24 = vsel %vm3821_vm4, %v4003_v47, %v3999_v27 }
 0x534   : > { %v2981_v10 = vpop.xlane.xlu0 %2980  ;;  %v4009_v30 = vsel %vm3828_vm5, %v4008_v15, %v4004_v24 }
 0x535   : > { %6274 = vrcp.f32 %v2981_v10 }
 0x536   : > { %v6263_v41 = vpop.eup %6262  ;;  %6276 = vrcp.f32 %v2979_v5 }
 0x537   : > { %v6265_v46 = vpop.eup %6264  ;;  %v4013_v58 = vrot.slane %v6263_v41, %v8473_v45  ;;  %v2991_v0 = vpop.xlane.xlu1 %2990  ;;  %6278 = vrcp.f32 %v2993_v51 }
 0x538   : > { %v2987_v28 = vpop.xlane.xlu0 %2986  ;;  %v6267_v57 = vpop.eup %6266  ;;  %v4018_v61 = vrot.slane %v6265_v46, %v8456_v26  ;;  %6280 = vrcp.f32 %v2985_v60 }
 0x539   : > { %v4014_v35 = vsel %vm3835_vm6, %v4013_v58, %v4009_v30  ;;  %6282 = vrcp.f32 %v2987_v28  ;;  %v6269_v37 = vpop.eup %6268  ;;  %v4023_v19 = vrot.slane %v6267_v57, %v8482_v25 }
 0x53a   : > { %v4019_v3 = vsel %vm3842_vm7, %v4018_v61, %v4014_v35  ;;  %v6271_v18 = vpop.eup %6270  ;;  %v4028_v1 = vrot.slane %v6269_v37, %v8491_v53 }
 0x53b   : > { %v3001_v48 = vpop.xlane.xlu1 %3000  ;;  %v4024_v6 = vsel %vm3849_vm8, %v4023_v19, %v4019_v3  ;;  %v4033_v11 = vrot.slane %v6271_v18, %v8503_v14  ;;  %v6273_v44 = vpop.eup %6272  ;;  %v6394_v19 = vld [vmem:[%s6963_s29 + $0x10] sm:$0xff]  }
 0x53c   : > { %v2983_v4 = vpop.xlane.xlu0 %2982  ;;  %v4029_v5 = vsel %vm3856_vm9, %v4028_v1, %v4024_v6  ;;  %v4038_v59 = vrot.slane %v6273_v44, %v8518_v20  ;;  %v4542_v18 = vunpack.c.l.bf16 %v6394_v19  ;;  %v4543_v6 = vunpack.c.h.bf16 %v6394_v19 }
 0x53d   : > { %6284 = vrcp.f32 %v2983_v4  ;;  %v4034_v51 = vsel %vm3863_vm10, %v4033_v11, %v4029_v5 }
 0x53e   : > { %6286 = vrcp.f32 %v2995_v40  ;;  %v4039_v10 = vsel %vm3870_vm11, %v4038_v59, %v4034_v51 }
 0x53f   : > { %6288 = vrcp.f32 %v2991_v0  ;;  %v2997_v39 = vpop.xlane.xlu1 %2996 }
 0x540   : > { %v8765_v62 = vpop.f32.mrf.mxu1  ;;  %v2989_v8 = vpop.xlane.xlu0 %2988  ;;  %6290 = vrcp.f32 %v2997_v39 }
 0x541   : > { %6292 = vrcp.f32 %v2989_v8 }
 0x542   : > { %v5636_v32 = vpop.f32.mrf.mxu1  ;;  %v6275_v33 = vpop.eup %6274 }
 0x543   : > { %v2999_v42 = vpop.xlane.xlu1 %2998  ;;  %v6277_v60 = vpop.eup %6276  ;;  %v4048_v27 = vrot.slane %v6275_v33, %v8535_v52 }
 0x544   : > { %v8769_v23 = vpop.f32.mrf.mxu1  ;;  %v3003_v22 = vpop.xlane.xlu0 %3002  ;;  %6294 = vrcp.f32 %v2999_v42  ;;  %v4043_v41 = vrot.slane %v6277_v60, %v8494_v49 }
 0x545   : > { %v6279_v13 = vpop.eup %6278  ;;  %6296 = vrcp.f32 %v3001_v48 }
 0x546   : > { %v5637_v7 = vpop.f32.mrf.mxu1  ;;  %v6281_v40 = vpop.eup %6280  ;;  %6298 = vrcp.f32 %v3003_v22  ;;  %v4044_v30 = vsel %vm3877_vm12, %v4043_v41, %v4039_v10  ;;  %v4077_v32 = vrot.slane %v6279_v13, %v8429_v43 }
 0x547   : > { %v3009_v56 = vpop.xlane.xlu1 %3008  ;;  %v6283_v47 = vpop.eup %6282  ;;  %v4058_v35 = vrot.slane %v6281_v40, %v8546_v34  ;;  %v4049_v61 = vsel %vm3884_vm13, %v4048_v27, %v4044_v30 }
 0x548   : > { %v3005_v15 = vpop.xlane.xlu0 %3004  ;;  %v4063_v4 = vrot.slane %v6283_v47, %v8552_v63 }
 0x549   : > { %6300 = vrcp.f32 %v3005_v15 }
 0x54a   : > { %v6285_v46 = vpop.eup %6284 }
 0x54b   : > { %v6287_v24 = vpop.eup %6286  ;;  %v4053_v58 = vrot.slane %v6285_v46, %v8539_v31  ;;  %v3011_v0 = vpop.xlane.xlu1 %3010 }
 0x54c   : > { %v6289_v28 = vpop.eup %6288  ;;  %v3007_v57 = vpop.xlane.xlu0 %3006  ;;  %v4082_v51 = vrot.slane %v6287_v24, %v8442_v29 }
 0x54d   : > { %v6291_v48 = vpop.eup %6290  ;;  %6302 = vrcp.f32 %v3007_v57  ;;  %v4054_v3 = vsel %vm3891_vm14, %v4053_v58, %v4049_v61  ;;  %v4072_v1 = vrot.slane %v6289_v28, %v8435_v21 }
 0x54e   : > { %v6293_v37 = vpop.eup %6292  ;;  %v4059_v39 = vsel %vm3898_vm15, %v4058_v35, %v4054_v3  ;;  %v4087_v59 = vrot.slane %v6291_v48, %v8451_v55  ;;  %6304 = vrcp.f32 %v3009_v56 }
 0x54f   : > { %v4068_v8 = vrot.slane %v6293_v37, %v8421_v12  ;;  %v3017_v11 = vpop.xlane.xlu1 %3016  ;;  %v4064_v5 = vsel %vm3905_vm0, %v4063_v4, %v4059_v39  ;;  %6306 = vrcp.f32 %v3011_v0 }
 0x550   : > { %v3019_v44 = vpop.xlane.xlu0 %3018  ;;  %v4526_v42 = vmul.f32 %v4064_v5, %v8640_v9  ;;  %v4527_v22 = vmul.f32 %v4064_v5, %v8644_v54 }
 0x551   : > { %v6295_v33 = vpop.eup %6294  ;;  %v4073_v60 = vsel %vm3807_vm2, %v4072_v1, %v4068_v8 }
 0x552   : > { %v4078_v7 = vsel %vm3814_vm3, %v4077_v32, %v4073_v60  ;;  %v4092_v40 = vrot.slane %v6295_v33, %v8473_v45  ;;  %v4558_v27 = vsub.f32 %v4542_v18, %v4526_v42  ;;  %v4559_v15 = vsub.f32 %v4543_v6, %v4527_v22  ;;  %v6297_v10 = vpop.eup %6296 }
 0x553   : > { %v4083_v13 = vsel %vm3821_vm4, %v4082_v51, %v4078_v7  ;;  %v3013_v9 = vpop.xlane.xlu1 %3012  ;;  %v6299_v56 = vpop.eup %6298  ;;  %v4097_v24 = vrot.slane %v6297_v10, %v8456_v26 }
 0x554   : > { %v4088_v54 = vsel %vm3828_vm5, %v4087_v59, %v4083_v13  ;;  %v3049_v47 = vpop.xlane.xlu0 %3048  ;;  %6308 = vrcp.f32 %v3013_v9  ;;  %v4572_v41 = vpack.c.bf16 %v4559_v15, %v4558_v27  ;;  %v4102_v57 = vrot.slane %v6299_v56, %v8482_v25 }
 0x555   : > { %v4093_v46 = vsel %vm3835_vm6, %v4092_v40, %v4088_v54  ;;  %6310 = vrcp.f32 %v3017_v11 }
 0x556   : > { %5698 = vmatprep.mubr.bf16.mxu0 %v4572_v41  ;;  %6312 = vrcp.f32 %v3019_v44  ;;  %v6301_v30 = vpop.eup %6300  ;;  %v4098_v0 = vsel %vm3842_vm7, %v4097_v24, %v4093_v46  ;;  %v6395_v24 = vld [vmem:[%s6963_s29 + $0x18] sm:$0xff]  }
 0x557   : > { %v3015_v58 = vpop.xlane.xlu1 %3014  ;;  %v4107_v61 = vrot.slane %v6301_v30, %v8491_v53  ;;  %v4103_v3 = vsel %vm3849_vm8, %v4102_v57, %v4098_v0  ;;  %v4545_v30 = vunpack.c.h.bf16 %v6395_v24 }
 0x558   : > { %v3045_v28 = vpop.xlane.xlu0 %3044  ;;  %6314 = vrcp.f32 %v3015_v58  ;;  %v4544_v58 = vunpack.c.l.bf16 %v6395_v24 }
 0x559   : > { %6316 = vrcp.f32 %v3045_v28  ;;  %v4108_v18 = vsel %vm3856_vm9, %v4107_v61, %v4103_v3 }
 0x55a   : > { %v6303_v35 = vpop.eup %6302  ;;  %6318 = vrcp.f32 %v3049_v47 }
 0x55b   : > { %v3057_v48 = vpop.xlane.xlu1 %3056  ;;  %v4112_v4 = vrot.slane %v6303_v35, %v8503_v14  ;;  %v6305_v19 = vpop.eup %6304 }
 0x55c   : > { %v3051_v37 = vpop.xlane.xlu0 %3050  ;;  %v6307_v39 = vpop.eup %6306  ;;  %v4117_v5 = vrot.slane %v6305_v19, %v8518_v20 }
 0x55d   : > { %v4113_v1 = vsel %vm3863_vm10, %v4112_v4, %v4108_v18  ;;  %6320 = vrcp.f32 %v3051_v37  ;;  %v4122_v51 = vrot.slane %v6307_v39, %v8494_v49 }
 0x55e   : > { %v4118_v22 = vsel %vm3870_vm11, %v4117_v5, %v4113_v1 }
 0x55f   : > { %v3059_v6 = vpop.xlane.xlu1 %3058  ;;  %v4123_v15 = vsel %vm3877_vm12, %v4122_v51, %v4118_v22 }
 0x560   : > { %v3047_v8 = vpop.xlane.xlu0 %3046 }
 0x561   : > { %v6309_v11 = vpop.eup %6308  ;;  %6322 = vrcp.f32 %v3047_v8 }
 0x562   : > { %v6311_v32 = vpop.eup %6310  ;;  %v4127_v44 = vrot.slane %v6309_v11, %v8535_v52 }
 0x563   : > { %v3055_v42 = vpop.xlane.xlu1 %3054  ;;  %v6313_v33 = vpop.eup %6312  ;;  %v4137_v13 = vrot.slane %v6311_v32, %v8546_v34 }
 0x564   : > { %v3053_v60 = vpop.xlane.xlu0 %3052  ;;  %v8810_v59 = vpop.f32.mrf.mxu0  ;;  %6324 = vrcp.f32 %v3055_v42  ;;  %v4128_v10 = vsel %vm3884_vm13, %v4127_v44, %v4123_v15  ;;  %v4142_v46 = vrot.slane %v6313_v33, %v8552_v63  ;;  %v6396_v33 = vld [vmem:[%s6963_s29 + $0x20] sm:$0xff]  }
 0x565   : > { %v6315_v7 = vpop.eup %6314  ;;  %6326 = vrcp.f32 %v3053_v60  ;;  %v4546_v51 = vunpack.c.l.bf16 %v6396_v33 }
 0x566   : > { %v4132_v40 = vrot.slane %v6315_v7, %v8539_v31  ;;  %v5656_v27 = vpop.f32.mrf.mxu0  ;;  %v6317_v56 = vpop.eup %6316  ;;  %6328 = vrcp.f32 %v3057_v48 }
 0x567   : > { %v3065_v9 = vpop.xlane.xlu1 %3064  ;;  %v6319_v4 = vpop.eup %6318  ;;  %v4206_v37 = vrot.slane %v6317_v56, %v8535_v52 }
 0x568   : > { %v3067_v54 = vpop.xlane.xlu0 %3066  ;;  %v8816_v47 = vpop.f32.mrf.mxu0  ;;  %v4133_v41 = vsel %vm3891_vm14, %v4132_v40, %v4128_v10  ;;  %v4216_v32 = vrot.slane %v6319_v4, %v8546_v34 }
 0x569   : > { %v4138_v28 = vsel %vm3898_vm15, %v4137_v13, %v4133_v41 }
 0x56a   : > { %v5657_v0 = vpop.f32.mrf.mxu0  ;;  %v4143_v35 = vsel %vm3905_vm0, %v4142_v46, %v4138_v28  ;;  %v6321_v18 = vpop.eup %6320 }
 0x56b   : > { %v3061_v57 = vpop.xlane.xlu1 %3060  ;;  %v4528_v61 = vmul.f32 %v4143_v35, %v8662_v50  ;;  %v4529_v3 = vmul.f32 %v4143_v35, %v8669_v38  ;;  %v4207_v38 = vsel %vm3884_vm13, %v4206_v37, %v8628_v2  ;;  %v4221_v42 = vrot.slane %v6321_v18, %v8552_v63 }
 0x56c   : > { %v3069_v19 = vpop.xlane.xlu0 %3068  ;;  %6330 = vrcp.f32 %v3061_v57 }
 0x56d   : > { %v4560_v39 = vsub.f32 %v4544_v58, %v4528_v61  ;;  %v4561_v1 = vsub.f32 %v4545_v30, %v4529_v3  ;;  %6332 = vrcp.f32 %v3059_v6  ;;  %v4547_v6 = vunpack.c.h.bf16 %v6396_v33 }
 0x56e   : > { %v6323_v8 = vpop.eup %6322 }
 0x56f   : > { %v4211_v11 = vrot.slane %v6323_v8, %v8539_v31  ;;  %v3063_v5 = vpop.xlane.xlu1 %3062  ;;  %v4573_v48 = vpack.c.bf16 %v4561_v1, %v4560_v39 }
 0x570   : > { %v3071_v50 = vpop.xlane.xlu0 %3070  ;;  %6334 = vrcp.f32 %v3063_v5 }
 0x571   : > { %5699 = vmatmul.mubr.bf16.gmra.mxu0 %v4573_v48  ;;  %v4212_v44 = vsel %vm3891_vm14, %v4211_v11, %v4207_v38  ;;  %v6325_v22 = vpop.eup %6324  ;;  %6336 = vrcp.f32 %v3065_v9 }
 0x572   : > { %v4217_v60 = vsel %vm3898_vm15, %v4216_v32, %v4212_v44  ;;  %v6327_v7 = vpop.eup %6326  ;;  %6338 = vrcp.f32 %v3067_v54  ;;  %v4230_v41 = vrot.slane %v6325_v22, %v8435_v21 }
 0x573   : > { %v3073_v40 = vpop.xlane.xlu1 %3072  ;;  %v4222_v27 = vsel %vm3905_vm0, %v4221_v42, %v4217_v60  ;;  %v4226_v10 = vrot.slane %v6327_v7, %v8421_v12  ;;  %v6329_v58 = vpop.eup %6328  ;;  %6340 = vrcp.f32 %v3069_v19 }
 0x574   : > { %v3083_v15 = vpop.xlane.xlu0 %3082  ;;  %v4530_v13 = vmul.f32 %v4222_v27, %v8738_v36  ;;  %v4531_v2 = vmul.f32 %v4222_v27, %v8741_v16  ;;  %v4235_v36 = vrot.slane %v6329_v58, %v8429_v43  ;;  %6342 = vrcp.f32 %v3071_v50 }
 0x575   : > { %v4231_v0 = vsel %vm3807_vm2, %v4230_v41, %v4226_v10  ;;  %6344 = vrcp.f32 %v3073_v40 }
 0x576   : > { %v4562_v46 = vsub.f32 %v4546_v51, %v4530_v13  ;;  %v4563_v56 = vsub.f32 %v4547_v6, %v4531_v2  ;;  %v4236_v61 = vsel %vm3814_vm3, %v4235_v36, %v4231_v0 }
 0x577   : > { %v3075_v24 = vpop.xlane.xlu1 %3074 }
 0x578   : > { %v3117_v30 = vpop.xlane.xlu0 %3116  ;;  %v4574_v28 = vpack.c.bf16 %v4563_v56, %v4562_v46  ;;  %6346 = vrcp.f32 %v3075_v24 }
 0x579   : > { %v6331_v9 = vpop.eup %6330 }
 0x57a   : > { %5702 = vmatprep.mubr.bf16.mxu0 %v4574_v28  ;;  %v6333_v35 = vpop.eup %6332  ;;  %v4245_v3 = vrot.slane %v6331_v9, %v8451_v55 }
 0x57b   : > { %v3081_v16 = vpop.xlane.xlu1 %3080  ;;  %v4240_v4 = vrot.slane %v6333_v35, %v8442_v29 }
 0x57c   : > { %v8841_v54 = vpop.xlane.xlu0 %3130 }
 0x57d   : > { %v6335_v57 = vpop.eup %6334  ;;  %v4241_v39 = vsel %vm3821_vm4, %v4240_v4, %v4236_v61 }
 0x57e   : > { %v4250_v37 = vrot.slane %v6335_v57, %v8473_v45  ;;  %v6337_v18 = vpop.eup %6336  ;;  %v4246_v11 = vsel %vm3828_vm5, %v4245_v3, %v4241_v39 }
 0x57f   : > { %v3077_v19 = vpop.xlane.xlu1 %3076  ;;  %v6339_v5 = vpop.eup %6338  ;;  %v4255_v50 = vrot.slane %v6337_v18, %v8456_v26 }
 0x580   : > { %v8848_v1 = vpop.xlane.xlu0 %3136  ;;  %v8850_v8 = vpop.f32.mrf.mxu1  ;;  %6348 = vrcp.f32 %v3077_v19  ;;  %v4251_v48 = vsel %vm3835_vm6, %v4250_v37, %v4246_v11  ;;  %v4260_v51 = vrot.slane %v6339_v5, %v8482_v25  ;;  %v6397_v5 = vld [vmem:[%s6963_s29 + $0x28] sm:$0xff]  }
 0x581   : > { %6350 = vrcp.f32 %v3083_v15  ;;  %v4256_v22 = vsel %vm3842_vm7, %v4255_v50, %v4251_v48  ;;  %v6341_v33 = vpop.eup %6340  ;;  %v4548_v48 = vunpack.c.l.bf16 %v6397_v5 }
 0x582   : > { %v5676_v32 = vpop.f32.mrf.mxu1  ;;  %6352 = vrcp.f32 %v3081_v16  ;;  %v4261_v7 = vsel %vm3849_vm8, %v4260_v51, %v4256_v22  ;;  %v6343_v40 = vpop.eup %6342  ;;  %v4265_v27 = vrot.slane %v6341_v33, %v8491_v53 }
 0x583   : > { %v3079_v38 = vpop.xlane.xlu1 %3078  ;;  %v6345_v15 = vpop.eup %6344  ;;  %v4270_v46 = vrot.slane %v6343_v40, %v8503_v14  ;;  %v4549_v32 = vunpack.c.h.bf16 %v6397_v5 }
 0x584   : > { %v3133_v44 = vpop.xlane.xlu0 %3132  ;;  %v8855_v42 = vpop.f32.mrf.mxu1  ;;  %6354 = vrcp.f32 %v3079_v38  ;;  %v4266_v10 = vsel %vm3856_vm9, %v4265_v27, %v4261_v7  ;;  %v4275_v24 = vrot.slane %v6345_v15, %v8518_v20 }
 0x585   : > { %v6347_v2 = vpop.eup %6346  ;;  %v4271_v58 = vsel %vm3863_vm10, %v4270_v46, %v4266_v10 }
 0x586   : > { %v5677_v6 = vpop.f32.mrf.mxu1  ;;  %v4280_v28 = vrot.slane %v6347_v2, %v8494_v49  ;;  %v4276_v61 = vsel %vm3870_vm11, %v4275_v24, %v4271_v58 }
 0x587   : > { %v3121_v60 = vpop.xlane.xlu1 %3120 }
 0x588   : > { %v3139_v13 = vpop.xlane.xlu0 %3138  ;;  %v4281_v4 = vsel %vm3877_vm12, %v4280_v28, %v4276_v61 }
 0x58b   : > { %v3123_v41 = vpop.xlane.xlu1 %3122 }
 0x58c   : > { %v3135_v16 = vpop.xlane.xlu0 %3134 }
 0x58d   : > { %v6349_v56 = vpop.eup %6348 }
 0x58e   : > { %v6351_v9 = vpop.eup %6350  ;;  %v4285_v0 = vrot.slane %v6349_v56, %v8535_v52 }
 0x58f   : > { %v3119_v35 = vpop.xlane.xlu1 %3118  ;;  %v6353_v36 = vpop.eup %6352  ;;  %v4300_v11 = vrot.slane %v6351_v9, %v8552_v63 }
 0x590   : > { %6356 = vrcp.f32 %v3119_v35  ;;  %v4295_v37 = vrot.slane %v6353_v36, %v8546_v34  ;;  %v4286_v18 = vsel %vm3884_vm13, %v4285_v0, %v4281_v4 }
 0x591   : > { %v6355_v57 = vpop.eup %6354  ;;  %6358 = vrcp.f32 %v3117_v30  ;;  %v3141_v30 = vpop.xlane.xlu0 %3140 }
 0x592   : > { %v4290_v3 = vrot.slane %v6355_v57, %v8539_v31  ;;  %6360 = vrcp.f32 %v3121_v60 }
 0x593   : > { %v3129_v19 = vpop.xlane.xlu1 %3128  ;;  %6362 = vrcp.f32 %v3123_v41 }
 0x594   : > { %v4291_v39 = vsel %vm3891_vm14, %v4290_v3, %v4286_v18 }
 0x595   : > { %v4296_v50 = vsel %vm3898_vm15, %v4295_v37, %v4291_v39  ;;  %v3143_v27 = vpop.xlane.xlu0 %3142 }
 0x596   : > { %v4301_v38 = vsel %vm3905_vm0, %v4300_v11, %v4296_v50 }
 0x597   : > { %v3125_v22 = vpop.xlane.xlu1 %3124  ;;  %v4532_v33 = vmul.f32 %v4301_v38, %v8765_v62  ;;  %v4533_v51 = vmul.f32 %v4301_v38, %v8769_v23 }
 0x598   : > { %6364 = vrcp.f32 %v3125_v22 }
 0x599   : > { %6366 = vrcp.f32 %v8841_v54  ;;  %v4564_v6 = vsub.f32 %v4548_v48, %v4532_v33  ;;  %v4565_v7 = vsub.f32 %v4549_v32, %v4533_v51  ;;  %v6398_v51 = vld [vmem:[%s6963_s29 + $0x30] sm:$0xff]  }
 0x59a   : > { %6368 = vrcp.f32 %v8848_v1  ;;  %v3145_v1 = vpop.xlane.xlu0 %3144 }
 0x59b   : > { %6370 = vrcp.f32 %v3129_v19  ;;  %v3127_v60 = vpop.xlane.xlu1 %3126  ;;  %v4575_v40 = vpack.c.bf16 %v4565_v7, %v4564_v6  ;;  %v4550_v6 = vunpack.c.l.bf16 %v6398_v51  ;;  %v4551_v7 = vunpack.c.h.bf16 %v6398_v51 }
 0x59c   : > { %6372 = vrcp.f32 %v3127_v60 }
 0x59d   : > { %v6357_v15 = vpop.eup %6356  ;;  %6374 = vrcp.f32 %v3133_v44  ;;  %5703 = vmatmul.mubr.bf16.gmra.mxu0 %v4575_v40 }
 0x59e   : > { %6376 = vrcp.f32 %v3135_v16  ;;  %v6359_v2 = vpop.eup %6358  ;;  %v4388_v23 = vrot.slane %v6357_v15, %v8435_v21 }
 0x59f   : > { %6378 = vrcp.f32 %v3139_v13  ;;  %v3113_v62 = vpop.xlane.xlu1 %3112  ;;  %v6361_v54 = vpop.eup %6360  ;;  %v4384_v10 = vrot.slane %v6359_v2, %v8421_v12 }
 0x5a0   : > { %6380 = vrcp.f32 %v3113_v62  ;;  %v6363_v46 = vpop.eup %6362  ;;  %v4393_v24 = vrot.slane %v6361_v54, %v8429_v43  ;;  %v6399_v62 = vld [vmem:[%s6963_s29 + $0x38] sm:$0xff]  }
 0x5a1   : > { %6382 = vrcp.f32 %v3141_v30  ;;  %v4389_v56 = vsel %vm3807_vm2, %v4388_v23, %v4384_v10  ;;  %v4398_v12 = vrot.slane %v6363_v46, %v8442_v29  ;;  %v4552_v23 = vunpack.c.l.bf16 %v6399_v62 }
 0x5a2   : > { %6384 = vrcp.f32 %v3143_v27  ;;  %v4394_v21 = vsel %vm3814_vm3, %v4393_v24, %v4389_v56  ;;  %v4553_v10 = vunpack.c.h.bf16 %v6399_v62 }
 0x5a3   : > { %v3115_v41 = vpop.xlane.xlu1 %3114  ;;  %v4399_v16 = vsel %vm3821_vm4, %v4398_v12, %v4394_v21 }
 0x5a4   : > { %6386 = vrcp.f32 %v3115_v41 }
 0x5a5   : > { %v6365_v44 = vpop.eup %6364  ;;  %6388 = vrcp.f32 %v3145_v1 }
 0x5a6   : > { %v6367_v13 = vpop.eup %6366  ;;  %v4403_v28 = vrot.slane %v6365_v44, %v8451_v55 }
 0x5a7   : > { %v6369_v58 = vpop.eup %6368  ;;  %v3147_v9 = vpop.xlane.xlu1 %3146  ;;  %v4418_v37 = vrot.slane %v6367_v13, %v8482_v25 }
 0x5a8   : > { %v6371_v0 = vpop.eup %6370  ;;  %6390 = vrcp.f32 %v3147_v9  ;;  %v4404_v3 = vsel %vm3828_vm5, %v4403_v28, %v4399_v16 }
 0x5a9   : > { %v6373_v35 = vpop.eup %6372  ;;  %v4413_v43 = vrot.slane %v6371_v0, %v8456_v26  ;;  %v4433_v26 = vrot.slane %v6369_v58, %v8518_v20 }
 0x5aa   : > { %v6375_v36 = vpop.eup %6374  ;;  %v4408_v57 = vrot.slane %v6373_v35, %v8473_v45 }
 0x5ab   : > { %v6377_v61 = vpop.eup %6376  ;;  %v4423_v29 = vrot.slane %v6375_v36, %v8491_v53 }
 0x5ac   : > { %v6379_v4 = vpop.eup %6378  ;;  %v4409_v55 = vsel %vm3835_vm6, %v4408_v57, %v4404_v3  ;;  %v4428_v11 = vrot.slane %v6377_v61, %v8503_v14 }
 0x5ad   : > { %v6381_v19 = vpop.eup %6380  ;;  %v4414_v18 = vsel %vm3842_vm7, %v4413_v43, %v4409_v55  ;;  %v4438_v32 = vrot.slane %v6379_v4, %v8494_v49 }
 0x5ae   : > { %v6383_v39 = vpop.eup %6382  ;;  %v4419_v45 = vsel %vm3849_vm8, %v4418_v37, %v4414_v18  ;;  %v4374_v48 = vrot.slane %v6381_v19, %v8546_v34 }
 0x5af   : > { %v6385_v5 = vpop.eup %6384  ;;  %v4424_v25 = vsel %vm3856_vm9, %v4423_v29, %v4419_v45  ;;  %v4443_v30 = vrot.slane %v6383_v39, %v8535_v52 }
 0x5b0   : > { %v4429_v50 = vsel %vm3863_vm10, %v4428_v11, %v4424_v25  ;;  %v4448_v22 = vrot.slane %v6385_v5, %v8539_v31  ;;  %v4375_v49 = vsel %vm3898_vm15, %v4374_v48, %v8749_v17 }
 0x5b1   : > { %v6387_v53 = vpop.eup %6386  ;;  %v4434_v38 = vsel %vm3870_vm11, %v4433_v26, %v4429_v50 }
 0x5b2   : > { %v6389_v14 = vpop.eup %6388  ;;  %v4379_v33 = vrot.slane %v6387_v53, %v8552_v63  ;;  %v4439_v20 = vsel %vm3877_vm12, %v4438_v32, %v4434_v38 }
 0x5b3   : > { %v4444_v60 = vsel %vm3884_vm13, %v4443_v30, %v4439_v20  ;;  %v4453_v15 = vrot.slane %v6389_v14, %v8546_v34 }
 0x5b4   : > { %v4380_v52 = vsel %vm3905_vm0, %v4379_v33, %v4375_v49  ;;  %v4449_v40 = vsel %vm3891_vm14, %v4448_v22, %v4444_v60 }
 0x5b5   : > { %v6391_v27 = vpop.eup %6390  ;;  %v4534_v31 = vmul.f32 %v4380_v52, %v8810_v59  ;;  %v4535_v2 = vmul.f32 %v4380_v52, %v8816_v47  ;;  %v4454_v41 = vsel %vm3898_vm15, %v4453_v15, %v4449_v40 }
 0x5b6   : > { %v4458_v54 = vrot.slane %v6391_v27, %v8552_v63 }
 0x5b7   : > { %v4566_v17 = vsub.f32 %v4550_v6, %v4534_v31  ;;  %v4567_v1 = vsub.f32 %v4551_v7, %v4535_v2 }
 0x5b8   : > { %v4459_v46 = vsel %vm3905_vm0, %v4458_v54, %v4454_v41 }
 0x5b9   : > { %v4576_v56 = vpack.c.bf16 %v4567_v1, %v4566_v17  ;;  %v4536_v44 = vmul.f32 %v4459_v46, %v8850_v8  ;;  %v4537_v34 = vmul.f32 %v4459_v46, %v8855_v42 }
 0x5bb   : > { %5706 = vmatprep.mubr.bf16.mxu0 %v4576_v56  ;;  %v4568_v59 = vsub.f32 %v4552_v23, %v4536_v44  ;;  %v4569_v47 = vsub.f32 %v4553_v10, %v4537_v34 }
 0x5bd   : > { %v4577_v24 = vpack.c.bf16 %v4569_v47, %v4568_v59 }
 0x5bf   : > { %5707 = vmatmul.mubr.bf16.gmra.mxu0 %v4577_v24 }
 0x5e8   : > { %v5696_v13 = vpop.f32.mrf.mxu0 }
 0x5e9   : > { %4725 = vst [vmem:[%s8924_s23 + $0x10] sm:$0xff] %v5696_v13 }
 0x5ea   : > { %v4660_v63 = vpop.f32.mrf.mxu0 }
 0x5eb   : > { %4723 = vst [vmem:[%s8924_s23] sm:$0xff] %v4660_v63 }
 0x5ec   : > { %v5697_v8 = vpop.f32.mrf.mxu0 }
 0x5ed   : > { %4726 = vst [vmem:[%s8924_s23 + $0x18] sm:$0xff] %v5697_v8 }
 0x5ee   : > { %v4663_v42 = vpop.f32.mrf.mxu0 }
 0x5ef   : > { %4724 = vst [vmem:[%s8924_s23 + $0x8] sm:$0xff] %v4663_v42 }
 0x631   : > { %v5700_v58 = vpop.f32.mrf.mxu0 }
 0x632   : > { %4729 = vst [vmem:[%s8924_s23 + $0x30] sm:$0xff] %v5700_v58 }
 0x633   : > { %v4676_v21 = vpop.f32.mrf.mxu0 }
 0x634   : > { %4727 = vst [vmem:[%s8924_s23 + $0x20] sm:$0xff] %v4676_v21 }
 0x635   : > { %v5701_v28 = vpop.f32.mrf.mxu0 }
 0x636   : > { %4730 = vst [vmem:[%s8924_s23 + $0x38] sm:$0xff] %v5701_v28 }
 0x637   : > { %v4679_v9 = vpop.f32.mrf.mxu0 }
 0x638   : > { %4728 = vst [vmem:[%s8924_s23 + $0x28] sm:$0xff] %v4679_v9 }
 0x65d   : > { %v5704_v0 = vpop.f32.mrf.mxu0 }
 0x65e   : > { %4733 = vst [vmem:[%s8924_s23 + $0x50] sm:$0xff] %v5704_v0 }
 0x65f   : > { %v4692_v12 = vpop.f32.mrf.mxu0 }
 0x660   : > { %4731 = vst [vmem:[%s8924_s23 + $0x40] sm:$0xff] %v4692_v12 }
 0x661   : > { %v5705_v35 = vpop.f32.mrf.mxu0 }
 0x662   : > { %4734 = vst [vmem:[%s8924_s23 + $0x58] sm:$0xff] %v5705_v35 }
 0x663   : > { %v4695_v36 = vpop.f32.mrf.mxu0 }
 0x664   : > { %4732 = vst [vmem:[%s8924_s23 + $0x48] sm:$0xff] %v4695_v36 }
 0x67f   : > { %v5708_v16 = vpop.f32.mrf.mxu0 }
 0x680   : > { %4737 = vst [vmem:[%s8924_s23 + $0x70] sm:$0xff] %v5708_v16 }
 0x681   : > { %v4708_v57 = vpop.f32.mrf.mxu0 }
 0x682   : > { %4735 = vst [vmem:[%s8924_s23 + $0x60] sm:$0xff] %v4708_v57 }
 0x683   : > { %v5709_v61 = vpop.f32.mrf.mxu0 }
 0x684   : > { %4738 = vst [vmem:[%s8924_s23 + $0x78] sm:$0xff] %v5709_v61 }
 0x685   : > { %v4711_v43 = vpop.f32.mrf.mxu0 }
 0x686   : > { %4736 = vst [vmem:[%s8924_s23 + $0x68] sm:$0xff] %v4711_v43 }
 0x687   : > { %6601 = shalt.err (!%p6598_p6)
}
 0x688   : > { %s6602_s17 = scalar_lea.hbm %s8945_s16, 2048  ;;  %s6606_s29 = scalar_lea.hbm %s8999_s7, 4096 }
 0x689   : > { %p6603_p13 = scmp.ne.s32.totalorder %s8945_s16, %s6602_s17  ;;  %p6607_p2 = scmp.lt.s32.totalorder %s8945_s16, %s8999_s7 }
 0x68a   : > { %p6608_p0 = scmp.lt.s32.totalorder %s6606_s29, %s6602_s17 }
 0x68b   : > { %p6604_p7 = pnand %p6603_p13, %p9518_p5 }
 0x68c   : > { %p6609_p1 = por %p6608_p0, %p6607_p2 }
 0x68d   : > { %p6605_p9 = pneg %p6604_p7 }
 0x68f   : > { %p6610_p12 = pnand %p6609_p1, %p6605_p9 }
 0x691   : > { %6613 = shalt.err (!%p6610_p12)
}
 0x692   : > { %s6678_s19 = smov 128   ;;  %s6679_s5 = smov 8  }
 0x693   : > { %5734 = dma.vmem_to_hbm [thread:$0]  (%p9518_p5), %s8947_s12, 2048, %s8945_s16, %s4740_s20, %s6678_s19, %s6678_s19, %s6679_s5  }
 0x694 PF: > { %s9519_s30 = sld [smem:[#allocation20_spill]]  ;;  %s4769_s23 = sand.u32 1, %s6652_s24  }
 0x695   : > { %p9520_p4 = scmp.ne.s32.totalorder %s9175_s8, 0  ;;  %s4770_s22 = scalar_lea.sflag [#allocation4], %s4769_s23 }
 0x69a   : > { %p9521_p8 = scmp.ge.s32.totalorder %s9519_s30, 2 }
 0x69c   : > { %p5760_p11 = pnand %p9521_p8, %p9520_p4 }
 0x69e   : > { %p5761_p10 = pneg %p5760_p11 }
 0x6a0   : > { %6647 = dma.done.wait (%p5761_p10), %s4770_s22, 2048  }
 0x6a1   : > { %6649 = vsyncadd (%p5761_p10), %s4770_s22, 4294965248  ;;  %s9522_s27 = sld [smem:[#allocation21_spill]]  ;;  %s9524_s24 = smov %s6656_s25 }
 0x6a2   : > { %s9523_s21 = sld [smem:[#allocation22_spill]]  ;;  %s9525_s25 = smov %s6660_s26 }
 0x6a7   : > { %p25_p3 = scmp.ge.s32.totalorder %s9522_s27, 4  }
 0x6a8   : > { %s9526_s26 = smov %s9523_s21 }
 0x6a9   :  { %27 = sbr.rel (!%p25_p3) target bundleno = 13 (0xd), region = 133 }
 0x6ae   :  { %4775 = vsyncpa [#allocation3], 1 }
 0x6af   :  { %4777 = vsyncpa [#allocation3 + $0x1], 1 }
 0x6b0   :  { %4778 = vsyncpa [#allocation6], 1 }
 0x6b1   :  { %4780 = vsyncpa [#allocation6 + $0x1], 1 }
 0x6b2   :  { %4781 = vsyncpa [#allocation9], 1 }
 0x6b3   :  { %4782 = vsyncpa [#allocation12], 1 }
 0x6b4   :  { %4783 = vsyncpa [#allocation4], 1 }
 0x6b5   :  { %4785 = vsyncpa [#allocation4 + $0x1], 1 }

</bundles_post_ra>
